<compile_context>
chip_gen: v6e
topology: v6e:2x2x1
jax: 0.10.0
libtpu: 0.0.40
codegen_flags: <defaults>
</compile_context>

<pallas_src>
import functools

import jax
import jax.numpy as jnp
from jax.experimental import pallas as pl
from jax.experimental.pallas import tpu as pltpu


def _conv_add_kernel(x_ref, w_ref, add_ref, out_ref, xwin_ref, *,
                     cin, cout, kh, kw, h, ow, th_add, th_conv, sub_rows,
                     num_tiles):
    """One (batch, row-tile) grid step.

    x_ref   : (1, Cin, H, W)          full image, resident across row tiles (VMEM)
    w_ref   : (Cout*Cin*KH*KW,)       flattened conv weight (SMEM scalars)
    add_ref : (1, Cin, TH_ADD, W)     output tile of  x + 1
    out_ref : (1, Cout, TH_CONV, OW)  output tile of  conv(x+1) + 1
    xwin_ref: (Cin, TH_CONV+KH-1, W)  VMEM scratch: (x+1) rows + halo for this tile
    """
    t = pl.program_id(1)
    aligned = (th_add % 8 == 0)
    row_start = t * th_add
    if aligned:
        row_start = pl.multiple_of(row_start, 8)

    need = th_conv + kh - 1          # window rows needed by the conv
    extra = need - th_add            # halo rows below this tile (0 in fallback)

    # ---- add = x + 1, streamed per (row-chunk, channel) to bound vreg use ----
    for cs in range(0, th_add, sub_rows):
        r = min(sub_rows, th_add - cs)
        for c in range(cin):
            blk = x_ref[0, c, pl.ds(row_start + cs, r), :] + jnp.float32(1.0)
            add_ref[0, c, cs:cs + r, :] = blk
            if extra > 0:
                xwin_ref[c, cs:cs + r, :] = blk
            elif cs < need:
                rr = min(r, need - cs)
                xwin_ref[c, cs:cs + rr, :] = blk[:rr]

    # ---- halo: (KH-1) extra (x+1) rows below this tile ------------------------
    if extra > 0:
        if num_tiles > 1:
            @pl.when(t != num_tiles - 1)
            def _():
                estart = row_start + th_add
                if aligned:
                    estart = pl.multiple_of(estart, 8)
                xwin_ref[:, th_add:, :] = (
                    x_ref[0, :, pl.ds(estart, extra), :] + jnp.float32(1.0))

        @pl.when(t == num_tiles - 1)
        def _():
            # Clamped in-bounds halo (static slice).  The rows it feeds are conv
            # rows >= OH, which Pallas clips on the output write.
            xwin_ref[:, th_add:, :] = (
                x_ref[0, :, h - extra:h, :] + jnp.float32(1.0))

    # ---- conv as shifted multiply-accumulate on the VPU -----------------------
    # out[co, r, x] = 1 + sum_{c,i,j} w[co,c,i,j] * (x+1)[c, r+i, x+j]
    # Weights are read once (SMEM scalars) and reused across all row chunks.
    wts = [[[[w_ref[((co * cin + c) * kh + i) * kw + j]
              for j in range(kw)] for i in range(kh)]
            for c in range(cin)] for co in range(cout)]

    for cs in range(0, th_conv, sub_rows):
        rows = min(sub_rows, th_conv - cs)
        # Cout independent accumulator chains; the trailing "+1" is the init.
        accs = [jnp.full((rows, ow), 1.0, dtype=jnp.float32)
                for _ in range(cout)]
        for c in range(cin):
            for i in range(kh):
                # One sublane-shifted band load per (c, i), shared across j/co.
                band = xwin_ref[c, cs + i:cs + i + rows, :]
                for j in range(kw):
                    # One lane shift per tap, shared across all Cout.
                    slab = band[:, j:j + ow]
                    for co in range(cout):
                        accs[co] = accs[co] + wts[co][c][i][j] * slab
        for co in range(cout):
            out_ref[0, co, cs:cs + rows, :] = accs[co]


def _pick_row_tile(h, kh, n, row_tile):
    if row_tile:
        if row_tile % 8 == 0 and row_tile >= kh and h % row_tile == 0:
            return row_tile
    for cand in (112, 56, 32, 16, 8):      # prefer the biggest tile that fits
        if cand >= kh and h % cand == 0:
            if n == 1 and h // cand < 2:
                continue                   # keep >=2 grid steps for v7x dual-TC
            return cand
    return None


def repro_forward(primals_1, primals_2, *, row_tile=None):
    """primals_1: conv weight OIHW (Cout, Cin, KH, KW)
       primals_2: input NCHW      (N, Cin, H, W)
       returns [add_1 (NCHW), primals_1, add (NCHW)] — same as the PyTorch module.
    """
    cout, cin, kh, kw = primals_1.shape
    n, cin2, h, w = primals_2.shape
    assert cin == cin2, "channel mismatch"
    oh, ow = h - kh + 1, w - kw + 1
    assert oh >= 1 and ow >= 1

    th = _pick_row_tile(h, kh, n, row_tile)
    if th is not None:
        th_add, th_conv, num_tiles = th, th, h // th
    else:                                   # single full-image tile fallback
        th_add, th_conv, num_tiles = h, oh, 1

    # Row sub-chunk: bound the register footprint of the Cout accumulator
    # chains (co innermost).  acc vregs per co = ceil(sub/8) * ceil(ow/128).
    lane_groups = -(-ow // 128)
    sub_rows = 8 * max(1, 24 // max(1, cout * lane_groups))
    sub_rows = max(8, min(sub_rows, 32))
    sub_rows = min(sub_rows, th_conv)

    x = primals_2.astype(jnp.float32)                    # NCHW, no transpose
    w_flat = primals_1.astype(jnp.float32).reshape(-1)   # tiny -> SMEM scalars

    kernel = functools.partial(
        _conv_add_kernel, cin=cin, cout=cout, kh=kh, kw=kw, h=h, ow=ow,
        th_add=th_add, th_conv=th_conv, sub_rows=sub_rows, num_tiles=num_tiles)

    # VMEM budget: double-buffered x / add / out blocks + the window scratch.
    def _pad_lanes(v):
        return -(-v // 128) * 128

    f32 = 4
    blk_bytes = (2 * cin * h * _pad_lanes(w)
                 + 2 * cin * th_add * _pad_lanes(w)
                 + 2 * cout * th_conv * _pad_lanes(ow)
                 + cin * (th_conv + kh - 1) * _pad_lanes(w)) * f32
    vmem_limit = int(min(64 * 1024 * 1024,
                         max(32 * 1024 * 1024, 2 * blk_bytes)))

    cost = pl.CostEstimate(
        flops=2 * n * cout * cin * kh * kw * oh * ow
              + n * cin * h * w + n * cout * oh * ow,
        transcendentals=0,
        bytes_accessed=4 * (2 * n * cin * h * w + n * cout * oh * ow
                            + cout * cin * kh * kw))

    add, add_1 = pl.pallas_call(
        kernel,
        out_shape=(
            jax.ShapeDtypeStruct((n, cin, h, w), jnp.float32),     # add
            jax.ShapeDtypeStruct((n, cout, oh, ow), jnp.float32),  # conv + 1
        ),
        grid_spec=pltpu.PrefetchScalarGridSpec(
            num_scalar_prefetch=0,
            grid=(n, num_tiles),
            in_specs=[
                pl.BlockSpec((1, cin, h, w), lambda b, t: (b, 0, 0, 0)),
                pl.BlockSpec(memory_space=pltpu.MemorySpace.SMEM),
            ],
            out_specs=[
                pl.BlockSpec((1, cin, th_add, w), lambda b, t: (b, 0, t, 0)),
                pl.BlockSpec((1, cout, th_conv, ow), lambda b, t: (b, 0, t, 0)),
            ],
            scratch_shapes=[
                pltpu.VMEM((cin, th_conv + kh - 1, w), jnp.float32),
            ]),
        compiler_params=pltpu.CompilerParams(
            dimension_semantics=("parallel", "parallel"),
            vmem_limit_bytes=vmem_limit),
        cost_estimate=cost,
    )(x, w_flat)

    return [add_1, primals_1, add]


if __name__ == "__main__":
    # Small shapes consistent with the module (original: input [1,3,224,224],
    # conv weight [Cout,3,KH,KW]).  Here: weight [4,3,3,3], input [N,3,32,32].
    key = jax.random.PRNGKey(0)
    k1, k2, k3 = jax.random.split(key, 3)
    primals_1 = jax.random.normal(k1, (4, 3, 3, 3), dtype=jnp.float32)    # OIHW

    def reference(wgt, x):
        ref_add = x + 1.0
        ref_conv = jax.lax.conv_general_dilated(
            ref_add, wgt, window_strides=(1, 1), padding="VALID",
            dimension_numbers=("NCHW", "OIHW", "NCHW"))
        return ref_add, ref_conv + 1.0

    def check(x, row_tile=None):
        add_1, w_out, add = repro_forward(primals_1, x, row_tile=row_tile)
        jax.block_until_ready((add_1, w_out, add))
        ref_add, ref_add_1 = reference(primals_1, x)
        assert add.shape == ref_add.shape and add_1.shape == ref_add_1.shape
        assert jnp.allclose(add, ref_add, atol=1e-5, rtol=1e-5)
        assert jnp.allclose(add_1, ref_add_1, atol=1e-4, rtol=1e-4)
        assert jnp.array_equal(w_out, primals_1)

    # Batch=2, default tiling: one 32-row tile per image, grid (2, 1).
    x2 = jax.random.normal(k2, (2, 3, 32, 32), dtype=jnp.float32)          # NCHW
    check(x2)
    # Same input, forced row_tile=8: multi-tile path + ragged last-tile clip.
    check(x2, row_tile=8)
    # Batch=1, default tiling: exercises the N==1 H/2 cap -> TH=16, grid (1, 2).
    x1 = jax.random.normal(k3, (1, 3, 32, 32), dtype=jnp.float32)
    check(x1)

    print("KERNEL_OK")
</pallas_src>

<mosaic_0001>
module attributes {stable_mosaic.version = 11 : i64} {
  func.func @_conv_add_kernel(%arg0: i32, %arg1: i32, %arg2: memref<1x3x32x32xf32, #tpu.memory_space<vmem>>, %arg3: memref<108xf32, #tpu.memory_space<smem>>, %arg4: memref<1x3x32x32xf32, #tpu.memory_space<vmem>>, %arg5: memref<1x4x32x30xf32, #tpu.memory_space<vmem>>, %arg6: memref<3x34x32xf32, #tpu.memory_space<vmem>>) attributes {dimension_semantics = [#tpu.dimension_semantics<parallel>, #tpu.dimension_semantics<parallel>], iteration_bounds = array<i64: 2, 1>, scalar_prefetch = 0 : i64, scratch_operands = 1 : i64, tpu.core_type = #tpu.core_type<tc>, window_params = [{transform_indices = @transform_0, window_bounds = array<i64: 1, 3, 32, 32>}, {transform_indices = @transform_1, window_bounds = array<i64: 108>}, {transform_indices = @transform_2, window_bounds = array<i64: 1, 3, 32, 32>}, {transform_indices = @transform_3, window_bounds = array<i64: 1, 4, 32, 30>}]} {
    %c32_i32 = arith.constant 32 : i32
    %0 = arith.muli %arg1, %c32_i32 : i32
    %1 = tpu.assume_multiple %0, 8 : i32
    %c0_i32 = arith.constant 0 : i32
    %2 = arith.addi %1, %c0_i32 : i32
    %c0 = arith.constant 0 : index
    %c0_0 = arith.constant 0 : index
    %3 = arith.index_cast %2 : i32 to index
    %c0_1 = arith.constant 0 : index
    %4 = vector.load %arg2[%c0, %c0_0, %3, %c0_1] : memref<1x3x32x32xf32, #tpu.memory_space<vmem>>, vector<1x1x32x32xf32>
    %5 = vector.shape_cast %4 : vector<1x1x32x32xf32> to vector<32x32xf32>
    %cst = arith.constant 1.000000e+00 : f32
    %6 = vector.broadcast %cst : f32 to vector<32x32xf32>
    %7 = arith.addf %5, %6 : vector<32x32xf32>
    %c0_2 = arith.constant 0 : index
    %c0_3 = arith.constant 0 : index
    %c0_4 = arith.constant 0 : index
    %c0_5 = arith.constant 0 : index
    %8 = vector.load %arg4[%c0_2, %c0_3, %c0_4, %c0_5] : memref<1x3x32x32xf32, #tpu.memory_space<vmem>>, vector<1x1x32x32xf32>
    %9 = vector.shape_cast %8 : vector<1x1x32x32xf32> to vector<32x32xf32>
    %10 = vector.shape_cast %7 : vector<32x32xf32> to vector<1x1x32x32xf32>
    tpu.vector_store %arg4[%c0_2, %c0_3, %c0_4, %c0_5], %10 {strides = array<i32>} : memref<1x3x32x32xf32, #tpu.memory_space<vmem>>, vector<1x1x32x32xf32>,
    %c0_6 = arith.constant 0 : index
    %c0_7 = arith.constant 0 : index
    %c0_8 = arith.constant 0 : index
    %11 = vector.load %arg6[%c0_6, %c0_7, %c0_8] : memref<3x34x32xf32, #tpu.memory_space<vmem>>, vector<1x32x32xf32>
    %12 = vector.shape_cast %11 : vector<1x32x32xf32> to vector<32x32xf32>
    %13 = vector.shape_cast %7 : vector<32x32xf32> to vector<1x32x32xf32>
    tpu.vector_store %arg6[%c0_6, %c0_7, %c0_8], %13 {strides = array<i32>} : memref<3x34x32xf32, #tpu.memory_space<vmem>>, vector<1x32x32xf32>,
    %c0_i32_9 = arith.constant 0 : i32
    %14 = arith.addi %1, %c0_i32_9 : i32
    %c0_10 = arith.constant 0 : index
    %c1 = arith.constant 1 : index
    %15 = arith.index_cast %14 : i32 to index
    %c0_11 = arith.constant 0 : index
    %16 = vector.load %arg2[%c0_10, %c1, %15, %c0_11] : memref<1x3x32x32xf32, #tpu.memory_space<vmem>>, vector<1x1x32x32xf32>
    %17 = vector.shape_cast %16 : vector<1x1x32x32xf32> to vector<32x32xf32>
    %cst_12 = arith.constant 1.000000e+00 : f32
    %18 = vector.broadcast %cst_12 : f32 to vector<32x32xf32>
    %19 = arith.addf %17, %18 : vector<32x32xf32>
    %c0_13 = arith.constant 0 : index
    %c1_14 = arith.constant 1 : index
    %c0_15 = arith.constant 0 : index
    %c0_16 = arith.constant 0 : index
    %20 = vector.load %arg4[%c0_13, %c1_14, %c0_15, %c0_16] : memref<1x3x32x32xf32, #tpu.memory_space<vmem>>, vector<1x1x32x32xf32>
    %21 = vector.shape_cast %20 : vector<1x1x32x32xf32> to vector<32x32xf32>
    %22 = vector.shape_cast %19 : vector<32x32xf32> to vector<1x1x32x32xf32>
    tpu.vector_store %arg4[%c0_13, %c1_14, %c0_15, %c0_16], %22 {strides = array<i32>} : memref<1x3x32x32xf32, #tpu.memory_space<vmem>>, vector<1x1x32x32xf32>,
    %c1_17 = arith.constant 1 : index
    %c0_18 = arith.constant 0 : index
    %c0_19 = arith.constant 0 : index
    %23 = vector.load %arg6[%c1_17, %c0_18, %c0_19] : memref<3x34x32xf32, #tpu.memory_space<vmem>>, vector<1x32x32xf32>
    %24 = vector.shape_cast %23 : vector<1x32x32xf32> to vector<32x32xf32>
    %25 = vector.shape_cast %19 : vector<32x32xf32> to vector<1x32x32xf32>
    tpu.vector_store %arg6[%c1_17, %c0_18, %c0_19], %25 {strides = array<i32>} : memref<3x34x32xf32, #tpu.memory_space<vmem>>, vector<1x32x32xf32>,
    %c0_i32_20 = arith.constant 0 : i32
    %26 = arith.addi %1, %c0_i32_20 : i32
    %c0_21 = arith.constant 0 : index
    %c2 = arith.constant 2 : index
    %27 = arith.index_cast %26 : i32 to index
    %c0_22 = arith.constant 0 : index
    %28 = vector.load %arg2[%c0_21, %c2, %27, %c0_22] : memref<1x3x32x32xf32, #tpu.memory_space<vmem>>, vector<1x1x32x32xf32>
    %29 = vector.shape_cast %28 : vector<1x1x32x32xf32> to vector<32x32xf32>
    %cst_23 = arith.constant 1.000000e+00 : f32
    %30 = vector.broadcast %cst_23 : f32 to vector<32x32xf32>
    %31 = arith.addf %29, %30 : vector<32x32xf32>
    %c0_24 = arith.constant 0 : index
    %c2_25 = arith.constant 2 : index
    %c0_26 = arith.constant 0 : index
    %c0_27 = arith.constant 0 : index
    %32 = vector.load %arg4[%c0_24, %c2_25, %c0_26, %c0_27] : memref<1x3x32x32xf32, #tpu.memory_space<vmem>>, vector<1x1x32x32xf32>
    %33 = vector.shape_cast %32 : vector<1x1x32x32xf32> to vector<32x32xf32>
    %34 = vector.shape_cast %31 : vector<32x32xf32> to vector<1x1x32x32xf32>
    tpu.vector_store %arg4[%c0_24, %c2_25, %c0_26, %c0_27], %34 {strides = array<i32>} : memref<1x3x32x32xf32, #tpu.memory_space<vmem>>, vector<1x1x32x32xf32>,
    %c2_28 = arith.constant 2 : index
    %c0_29 = arith.constant 0 : index
    %c0_30 = arith.constant 0 : index
    %35 = vector.load %arg6[%c2_28, %c0_29, %c0_30] : memref<3x34x32xf32, #tpu.memory_space<vmem>>, vector<1x32x32xf32>
    %36 = vector.shape_cast %35 : vector<1x32x32xf32> to vector<32x32xf32>
    %37 = vector.shape_cast %31 : vector<32x32xf32> to vector<1x32x32xf32>
    tpu.vector_store %arg6[%c2_28, %c0_29, %c0_30], %37 {strides = array<i32>} : memref<3x34x32xf32, #tpu.memory_space<vmem>>, vector<1x32x32xf32>,
    %c0_i32_31 = arith.constant 0 : i32
    %38 = arith.cmpi eq, %arg1, %c0_i32_31 : i32
    %39 = arith.extui %38 : i1 to i32
    %c0_i32_32 = arith.constant 0 : i32
    %40 = arith.cmpi ne, %39, %c0_i32_32 : i32
    scf.if %40 {
      %c0_83 = arith.constant 0 : index
      %c0_84 = arith.constant 0 : index
      %c30_85 = arith.constant 30 : index
      %c0_86 = arith.constant 0 : index
      %534 = vector.load %arg2[%c0_83, %c0_84, %c30_85, %c0_86] : memref<1x3x32x32xf32, #tpu.memory_space<vmem>>, vector<1x3x2x32xf32>
      %535 = vector.shape_cast %534 : vector<1x3x2x32xf32> to vector<3x2x32xf32>
      %cst_87 = arith.constant 1.000000e+00 : f32
      %536 = vector.broadcast %cst_87 : f32 to vector<3x2x32xf32>
      %537 = arith.addf %535, %536 : vector<3x2x32xf32>
      %c0_88 = arith.constant 0 : index
      %c32_89 = arith.constant 32 : index
      %c0_90 = arith.constant 0 : index
      %538 = vector.load %arg6[%c0_88, %c32_89, %c0_90] : memref<3x34x32xf32, #tpu.memory_space<vmem>>, vector<3x2x32xf32>
      tpu.vector_store %arg6[%c0_88, %c32_89, %c0_90], %537 {strides = array<i32>} : memref<3x34x32xf32, #tpu.memory_space<vmem>>, vector<3x2x32xf32>,
    } else {
    }
    %c0_33 = arith.constant 0 : index
    %41 = memref.load %arg3[%c0_33] : memref<108xf32, #tpu.memory_space<smem>>
    %c1_34 = arith.constant 1 : index
    %42 = memref.load %arg3[%c1_34] : memref<108xf32, #tpu.memory_space<smem>>
    %c2_35 = arith.constant 2 : index
    %43 = memref.load %arg3[%c2_35] : memref<108xf32, #tpu.memory_space<smem>>
    %c3 = arith.constant 3 : index
    %44 = memref.load %arg3[%c3] : memref<108xf32, #tpu.memory_space<smem>>
    %c4 = arith.constant 4 : index
    %45 = memref.load %arg3[%c4] : memref<108xf32, #tpu.memory_space<smem>>
    %c5 = arith.constant 5 : index
    %46 = memref.load %arg3[%c5] : memref<108xf32, #tpu.memory_space<smem>>
    %c6 = arith.constant 6 : index
    %47 = memref.load %arg3[%c6] : memref<108xf32, #tpu.memory_space<smem>>
    %c7 = arith.constant 7 : index
    %48 = memref.load %arg3[%c7] : memref<108xf32, #tpu.memory_space<smem>>
    %c8 = arith.constant 8 : index
    %49 = memref.load %arg3[%c8] : memref<108xf32, #tpu.memory_space<smem>>
    %c9 = arith.constant 9 : index
    %50 = memref.load %arg3[%c9] : memref<108xf32, #tpu.memory_space<smem>>
    %c10 = arith.constant 10 : index
    %51 = memref.load %arg3[%c10] : memref<108xf32, #tpu.memory_space<smem>>
    %c11 = arith.constant 11 : index
    %52 = memref.load %arg3[%c11] : memref<108xf32, #tpu.memory_space<smem>>
    %c12 = arith.constant 12 : index
    %53 = memref.load %arg3[%c12] : memref<108xf32, #tpu.memory_space<smem>>
    %c13 = arith.constant 13 : index
    %54 = memref.load %arg3[%c13] : memref<108xf32, #tpu.memory_space<smem>>
    %c14 = arith.constant 14 : index
    %55 = memref.load %arg3[%c14] : memref<108xf32, #tpu.memory_space<smem>>
    %c15 = arith.constant 15 : index
    %56 = memref.load %arg3[%c15] : memref<108xf32, #tpu.memory_space<smem>>
    %c16 = arith.constant 16 : index
    %57 = memref.load %arg3[%c16] : memref<108xf32, #tpu.memory_space<smem>>
    %c17 = arith.constant 17 : index
    %58 = memref.load %arg3[%c17] : memref<108xf32, #tpu.memory_space<smem>>
    %c18 = arith.constant 18 : index
    %59 = memref.load %arg3[%c18] : memref<108xf32, #tpu.memory_space<smem>>
    %c19 = arith.constant 19 : index
    %60 = memref.load %arg3[%c19] : memref<108xf32, #tpu.memory_space<smem>>
    %c20 = arith.constant 20 : index
    %61 = memref.load %arg3[%c20] : memref<108xf32, #tpu.memory_space<smem>>
    %c21 = arith.constant 21 : index
    %62 = memref.load %arg3[%c21] : memref<108xf32, #tpu.memory_space<smem>>
    %c22 = arith.constant 22 : index
    %63 = memref.load %arg3[%c22] : memref<108xf32, #tpu.memory_space<smem>>
    %c23 = arith.constant 23 : index
    %64 = memref.load %arg3[%c23] : memref<108xf32, #tpu.memory_space<smem>>
    %c24 = arith.constant 24 : index
    %65 = memref.load %arg3[%c24] : memref<108xf32, #tpu.memory_space<smem>>
    %c25 = arith.constant 25 : index
    %66 = memref.load %arg3[%c25] : memref<108xf32, #tpu.memory_space<smem>>
    %c26 = arith.constant 26 : index
    %67 = memref.load %arg3[%c26] : memref<108xf32, #tpu.memory_space<smem>>
    %c27 = arith.constant 27 : index
    %68 = memref.load %arg3[%c27] : memref<108xf32, #tpu.memory_space<smem>>
    %c28 = arith.constant 28 : index
    %69 = memref.load %arg3[%c28] : memref<108xf32, #tpu.memory_space<smem>>
    %c29 = arith.constant 29 : index
    %70 = memref.load %arg3[%c29] : memref<108xf32, #tpu.memory_space<smem>>
    %c30 = arith.constant 30 : index
    %71 = memref.load %arg3[%c30] : memref<108xf32, #tpu.memory_space<smem>>
    %c31 = arith.constant 31 : index
    %72 = memref.load %arg3[%c31] : memref<108xf32, #tpu.memory_space<smem>>
    %c32 = arith.constant 32 : index
    %73 = memref.load %arg3[%c32] : memref<108xf32, #tpu.memory_space<smem>>
    %c33 = arith.constant 33 : index
    %74 = memref.load %arg3[%c33] : memref<108xf32, #tpu.memory_space<smem>>
    %c34 = arith.constant 34 : index
    %75 = memref.load %arg3[%c34] : memref<108xf32, #tpu.memory_space<smem>>
    %c35 = arith.constant 35 : index
    %76 = memref.load %arg3[%c35] : memref<108xf32, #tpu.memory_space<smem>>
    %c36 = arith.constant 36 : index
    %77 = memref.load %arg3[%c36] : memref<108xf32, #tpu.memory_space<smem>>
    %c37 = arith.constant 37 : index
    %78 = memref.load %arg3[%c37] : memref<108xf32, #tpu.memory_space<smem>>
    %c38 = arith.constant 38 : index
    %79 = memref.load %arg3[%c38] : memref<108xf32, #tpu.memory_space<smem>>
    %c39 = arith.constant 39 : index
    %80 = memref.load %arg3[%c39] : memref<108xf32, #tpu.memory_space<smem>>
    %c40 = arith.constant 40 : index
    %81 = memref.load %arg3[%c40] : memref<108xf32, #tpu.memory_space<smem>>
    %c41 = arith.constant 41 : index
    %82 = memref.load %arg3[%c41] : memref<108xf32, #tpu.memory_space<smem>>
    %c42 = arith.constant 42 : index
    %83 = memref.load %arg3[%c42] : memref<108xf32, #tpu.memory_space<smem>>
    %c43 = arith.constant 43 : index
    %84 = memref.load %arg3[%c43] : memref<108xf32, #tpu.memory_space<smem>>
    %c44 = arith.constant 44 : index
    %85 = memref.load %arg3[%c44] : memref<108xf32, #tpu.memory_space<smem>>
    %c45 = arith.constant 45 : index
    %86 = memref.load %arg3[%c45] : memref<108xf32, #tpu.memory_space<smem>>
    %c46 = arith.constant 46 : index
    %87 = memref.load %arg3[%c46] : memref<108xf32, #tpu.memory_space<smem>>
    %c47 = arith.constant 47 : index
    %88 = memref.load %arg3[%c47] : memref<108xf32, #tpu.memory_space<smem>>
    %c48 = arith.constant 48 : index
    %89 = memref.load %arg3[%c48] : memref<108xf32, #tpu.memory_space<smem>>
    %c49 = arith.constant 49 : index
    %90 = memref.load %arg3[%c49] : memref<108xf32, #tpu.memory_space<smem>>
    %c50 = arith.constant 50 : index
    %91 = memref.load %arg3[%c50] : memref<108xf32, #tpu.memory_space<smem>>
    %c51 = arith.constant 51 : index
    %92 = memref.load %arg3[%c51] : memref<108xf32, #tpu.memory_space<smem>>
    %c52 = arith.constant 52 : index
    %93 = memref.load %arg3[%c52] : memref<108xf32, #tpu.memory_space<smem>>
    %c53 = arith.constant 53 : index
    %94 = memref.load %arg3[%c53] : memref<108xf32, #tpu.memory_space<smem>>
    %c54 = arith.constant 54 : index
    %95 = memref.load %arg3[%c54] : memref<108xf32, #tpu.memory_space<smem>>
    %c55 = arith.constant 55 : index
    %96 = memref.load %arg3[%c55] : memref<108xf32, #tpu.memory_space<smem>>
    %c56 = arith.constant 56 : index
    %97 = memref.load %arg3[%c56] : memref<108xf32, #tpu.memory_space<smem>>
    %c57 = arith.constant 57 : index
    %98 = memref.load %arg3[%c57] : memref<108xf32, #tpu.memory_space<smem>>
    %c58 = arith.constant 58 : index
    %99 = memref.load %arg3[%c58] : memref<108xf32, #tpu.memory_space<smem>>
    %c59 = arith.constant 59 : index
    %100 = memref.load %arg3[%c59] : memref<108xf32, #tpu.memory_space<smem>>
    %c60 = arith.constant 60 : index
    %101 = memref.load %arg3[%c60] : memref<108xf32, #tpu.memory_space<smem>>
    %c61 = arith.constant 61 : index
    %102 = memref.load %arg3[%c61] : memref<108xf32, #tpu.memory_space<smem>>
    %c62 = arith.constant 62 : index
    %103 = memref.load %arg3[%c62] : memref<108xf32, #tpu.memory_space<smem>>
    %c63 = arith.constant 63 : index
    %104 = memref.load %arg3[%c63] : memref<108xf32, #tpu.memory_space<smem>>
    %c64 = arith.constant 64 : index
    %105 = memref.load %arg3[%c64] : memref<108xf32, #tpu.memory_space<smem>>
    %c65 = arith.constant 65 : index
    %106 = memref.load %arg3[%c65] : memref<108xf32, #tpu.memory_space<smem>>
    %c66 = arith.constant 66 : index
    %107 = memref.load %arg3[%c66] : memref<108xf32, #tpu.memory_space<smem>>
    %c67 = arith.constant 67 : index
    %108 = memref.load %arg3[%c67] : memref<108xf32, #tpu.memory_space<smem>>
    %c68 = arith.constant 68 : index
    %109 = memref.load %arg3[%c68] : memref<108xf32, #tpu.memory_space<smem>>
    %c69 = arith.constant 69 : index
    %110 = memref.load %arg3[%c69] : memref<108xf32, #tpu.memory_space<smem>>
    %c70 = arith.constant 70 : index
    %111 = memref.load %arg3[%c70] : memref<108xf32, #tpu.memory_space<smem>>
    %c71 = arith.constant 71 : index
    %112 = memref.load %arg3[%c71] : memref<108xf32, #tpu.memory_space<smem>>
    %c72 = arith.constant 72 : index
    %113 = memref.load %arg3[%c72] : memref<108xf32, #tpu.memory_space<smem>>
    %c73 = arith.constant 73 : index
    %114 = memref.load %arg3[%c73] : memref<108xf32, #tpu.memory_space<smem>>
    %c74 = arith.constant 74 : index
    %115 = memref.load %arg3[%c74] : memref<108xf32, #tpu.memory_space<smem>>
    %c75 = arith.constant 75 : index
    %116 = memref.load %arg3[%c75] : memref<108xf32, #tpu.memory_space<smem>>
    %c76 = arith.constant 76 : index
    %117 = memref.load %arg3[%c76] : memref<108xf32, #tpu.memory_space<smem>>
    %c77 = arith.constant 77 : index
    %118 = memref.load %arg3[%c77] : memref<108xf32, #tpu.memory_space<smem>>
    %c78 = arith.constant 78 : index
    %119 = memref.load %arg3[%c78] : memref<108xf32, #tpu.memory_space<smem>>
    %c79 = arith.constant 79 : index
    %120 = memref.load %arg3[%c79] : memref<108xf32, #tpu.memory_space<smem>>
    %c80 = arith.constant 80 : index
    %121 = memref.load %arg3[%c80] : memref<108xf32, #tpu.memory_space<smem>>
    %c81 = arith.constant 81 : index
    %122 = memref.load %arg3[%c81] : memref<108xf32, #tpu.memory_space<smem>>
    %c82 = arith.constant 82 : index
    %123 = memref.load %arg3[%c82] : memref<108xf32, #tpu.memory_space<smem>>
    %c83 = arith.constant 83 : index
    %124 = memref.load %arg3[%c83] : memref<108xf32, #tpu.memory_space<smem>>
    %c84 = arith.constant 84 : index
    %125 = memref.load %arg3[%c84] : memref<108xf32, #tpu.memory_space<smem>>
    %c85 = arith.constant 85 : index
    %126 = memref.load %arg3[%c85] : memref<108xf32, #tpu.memory_space<smem>>
    %c86 = arith.constant 86 : index
    %127 = memref.load %arg3[%c86] : memref<108xf32, #tpu.memory_space<smem>>
    %c87 = arith.constant 87 : index
    %128 = memref.load %arg3[%c87] : memref<108xf32, #tpu.memory_space<smem>>
    %c88 = arith.constant 88 : index
    %129 = memref.load %arg3[%c88] : memref<108xf32, #tpu.memory_space<smem>>
    %c89 = arith.constant 89 : index
    %130 = memref.load %arg3[%c89] : memref<108xf32, #tpu.memory_space<smem>>
    %c90 = arith.constant 90 : index
    %131 = memref.load %arg3[%c90] : memref<108xf32, #tpu.memory_space<smem>>
    %c91 = arith.constant 91 : index
    %132 = memref.load %arg3[%c91] : memref<108xf32, #tpu.memory_space<smem>>
    %c92 = arith.constant 92 : index
    %133 = memref.load %arg3[%c92] : memref<108xf32, #tpu.memory_space<smem>>
    %c93 = arith.constant 93 : index
    %134 = memref.load %arg3[%c93] : memref<108xf32, #tpu.memory_space<smem>>
    %c94 = arith.constant 94 : index
    %135 = memref.load %arg3[%c94] : memref<108xf32, #tpu.memory_space<smem>>
    %c95 = arith.constant 95 : index
    %136 = memref.load %arg3[%c95] : memref<108xf32, #tpu.memory_space<smem>>
    %c96 = arith.constant 96 : index
    %137 = memref.load %arg3[%c96] : memref<108xf32, #tpu.memory_space<smem>>
    %c97 = arith.constant 97 : index
    %138 = memref.load %arg3[%c97] : memref<108xf32, #tpu.memory_space<smem>>
    %c98 = arith.constant 98 : index
    %139 = memref.load %arg3[%c98] : memref<108xf32, #tpu.memory_space<smem>>
    %c99 = arith.constant 99 : index
    %140 = memref.load %arg3[%c99] : memref<108xf32, #tpu.memory_space<smem>>
    %c100 = arith.constant 100 : index
    %141 = memref.load %arg3[%c100] : memref<108xf32, #tpu.memory_space<smem>>
    %c101 = arith.constant 101 : index
    %142 = memref.load %arg3[%c101] : memref<108xf32, #tpu.memory_space<smem>>
    %c102 = arith.constant 102 : index
    %143 = memref.load %arg3[%c102] : memref<108xf32, #tpu.memory_space<smem>>
    %c103 = arith.constant 103 : index
    %144 = memref.load %arg3[%c103] : memref<108xf32, #tpu.memory_space<smem>>
    %c104 = arith.constant 104 : index
    %145 = memref.load %arg3[%c104] : memref<108xf32, #tpu.memory_space<smem>>
    %c105 = arith.constant 105 : index
    %146 = memref.load %arg3[%c105] : memref<108xf32, #tpu.memory_space<smem>>
    %c106 = arith.constant 106 : index
    %147 = memref.load %arg3[%c106] : memref<108xf32, #tpu.memory_space<smem>>
    %c107 = arith.constant 107 : index
    %148 = memref.load %arg3[%c107] : memref<108xf32, #tpu.memory_space<smem>>
    %cst_36 = arith.constant 1.000000e+00 : f32
    %149 = vector.broadcast %cst_36 : f32 to vector<32x30xf32>
    %cst_37 = arith.constant 1.000000e+00 : f32
    %150 = vector.broadcast %cst_37 : f32 to vector<32x30xf32>
    %cst_38 = arith.constant 1.000000e+00 : f32
    %151 = vector.broadcast %cst_38 : f32 to vector<32x30xf32>
    %cst_39 = arith.constant 1.000000e+00 : f32
    %152 = vector.broadcast %cst_39 : f32 to vector<32x30xf32>
    %c0_40 = arith.constant 0 : index
    %c0_41 = arith.constant 0 : index
    %c0_42 = arith.constant 0 : index
    %153 = vector.load %arg6[%c0_40, %c0_41, %c0_42] : memref<3x34x32xf32, #tpu.memory_space<vmem>>, vector<1x32x32xf32>
    %154 = vector.shape_cast %153 : vector<1x32x32xf32> to vector<32x32xf32>
    %155 = vector.extract_strided_slice %154 {offsets = [0, 0], sizes = [32, 30], strides = [1, 1]} : vector<32x32xf32> to vector<32x30xf32>
    %156 = vector.broadcast %41 : f32 to vector<32x30xf32>
    %157 = arith.mulf %156, %155 : vector<32x30xf32>
    %158 = arith.addf %149, %157 : vector<32x30xf32>
    %159 = vector.broadcast %68 : f32 to vector<32x30xf32>
    %160 = arith.mulf %159, %155 : vector<32x30xf32>
    %161 = arith.addf %150, %160 : vector<32x30xf32>
    %162 = vector.broadcast %95 : f32 to vector<32x30xf32>
    %163 = arith.mulf %162, %155 : vector<32x30xf32>
    %164 = arith.addf %151, %163 : vector<32x30xf32>
    %165 = vector.broadcast %122 : f32 to vector<32x30xf32>
    %166 = arith.mulf %165, %155 : vector<32x30xf32>
    %167 = arith.addf %152, %166 : vector<32x30xf32>
    %168 = vector.extract_strided_slice %154 {offsets = [0, 1], sizes = [32, 30], strides = [1, 1]} : vector<32x32xf32> to vector<32x30xf32>
    %169 = vector.broadcast %42 : f32 to vector<32x30xf32>
    %170 = arith.mulf %169, %168 : vector<32x30xf32>
    %171 = arith.addf %158, %170 : vector<32x30xf32>
    %172 = vector.broadcast %69 : f32 to vector<32x30xf32>
    %173 = arith.mulf %172, %168 : vector<32x30xf32>
    %174 = arith.addf %161, %173 : vector<32x30xf32>
    %175 = vector.broadcast %96 : f32 to vector<32x30xf32>
    %176 = arith.mulf %175, %168 : vector<32x30xf32>
    %177 = arith.addf %164, %176 : vector<32x30xf32>
    %178 = vector.broadcast %123 : f32 to vector<32x30xf32>
    %179 = arith.mulf %178, %168 : vector<32x30xf32>
    %180 = arith.addf %167, %179 : vector<32x30xf32>
    %181 = vector.extract_strided_slice %154 {offsets = [0, 2], sizes = [32, 30], strides = [1, 1]} : vector<32x32xf32> to vector<32x30xf32>
    %182 = vector.broadcast %43 : f32 to vector<32x30xf32>
    %183 = arith.mulf %182, %181 : vector<32x30xf32>
    %184 = arith.addf %171, %183 : vector<32x30xf32>
    %185 = vector.broadcast %70 : f32 to vector<32x30xf32>
    %186 = arith.mulf %185, %181 : vector<32x30xf32>
    %187 = arith.addf %174, %186 : vector<32x30xf32>
    %188 = vector.broadcast %97 : f32 to vector<32x30xf32>
    %189 = arith.mulf %188, %181 : vector<32x30xf32>
    %190 = arith.addf %177, %189 : vector<32x30xf32>
    %191 = vector.broadcast %124 : f32 to vector<32x30xf32>
    %192 = arith.mulf %191, %181 : vector<32x30xf32>
    %193 = arith.addf %180, %192 : vector<32x30xf32>
    %c0_43 = arith.constant 0 : index
    %c1_44 = arith.constant 1 : index
    %c0_45 = arith.constant 0 : index
    %194 = vector.load %arg6[%c0_43, %c1_44, %c0_45] : memref<3x34x32xf32, #tpu.memory_space<vmem>>, vector<1x32x32xf32>
    %195 = vector.shape_cast %194 : vector<1x32x32xf32> to vector<32x32xf32>
    %196 = vector.extract_strided_slice %195 {offsets = [0, 0], sizes = [32, 30], strides = [1, 1]} : vector<32x32xf32> to vector<32x30xf32>
    %197 = vector.broadcast %44 : f32 to vector<32x30xf32>
    %198 = arith.mulf %197, %196 : vector<32x30xf32>
    %199 = arith.addf %184, %198 : vector<32x30xf32>
    %200 = vector.broadcast %71 : f32 to vector<32x30xf32>
    %201 = arith.mulf %200, %196 : vector<32x30xf32>
    %202 = arith.addf %187, %201 : vector<32x30xf32>
    %203 = vector.broadcast %98 : f32 to vector<32x30xf32>
    %204 = arith.mulf %203, %196 : vector<32x30xf32>
    %205 = arith.addf %190, %204 : vector<32x30xf32>
    %206 = vector.broadcast %125 : f32 to vector<32x30xf32>
    %207 = arith.mulf %206, %196 : vector<32x30xf32>
    %208 = arith.addf %193, %207 : vector<32x30xf32>
    %209 = vector.extract_strided_slice %195 {offsets = [0, 1], sizes = [32, 30], strides = [1, 1]} : vector<32x32xf32> to vector<32x30xf32>
    %210 = vector.broadcast %45 : f32 to vector<32x30xf32>
    %211 = arith.mulf %210, %209 : vector<32x30xf32>
    %212 = arith.addf %199, %211 : vector<32x30xf32>
    %213 = vector.broadcast %72 : f32 to vector<32x30xf32>
    %214 = arith.mulf %213, %209 : vector<32x30xf32>
    %215 = arith.addf %202, %214 : vector<32x30xf32>
    %216 = vector.broadcast %99 : f32 to vector<32x30xf32>
    %217 = arith.mulf %216, %209 : vector<32x30xf32>
    %218 = arith.addf %205, %217 : vector<32x30xf32>
    %219 = vector.broadcast %126 : f32 to vector<32x30xf32>
    %220 = arith.mulf %219, %209 : vector<32x30xf32>
    %221 = arith.addf %208, %220 : vector<32x30xf32>
    %222 = vector.extract_strided_slice %195 {offsets = [0, 2], sizes = [32, 30], strides = [1, 1]} : vector<32x32xf32> to vector<32x30xf32>
    %223 = vector.broadcast %46 : f32 to vector<32x30xf32>
    %224 = arith.mulf %223, %222 : vector<32x30xf32>
    %225 = arith.addf %212, %224 : vector<32x30xf32>
    %226 = vector.broadcast %73 : f32 to vector<32x30xf32>
    %227 = arith.mulf %226, %222 : vector<32x30xf32>
    %228 = arith.addf %215, %227 : vector<32x30xf32>
    %229 = vector.broadcast %100 : f32 to vector<32x30xf32>
    %230 = arith.mulf %229, %222 : vector<32x30xf32>
    %231 = arith.addf %218, %230 : vector<32x30xf32>
    %232 = vector.broadcast %127 : f32 to vector<32x30xf32>
    %233 = arith.mulf %232, %222 : vector<32x30xf32>
    %234 = arith.addf %221, %233 : vector<32x30xf32>
    %c0_46 = arith.constant 0 : index
    %c2_47 = arith.constant 2 : index
    %c0_48 = arith.constant 0 : index
    %235 = vector.load %arg6[%c0_46, %c2_47, %c0_48] : memref<3x34x32xf32, #tpu.memory_space<vmem>>, vector<1x32x32xf32>
    %236 = vector.shape_cast %235 : vector<1x32x32xf32> to vector<32x32xf32>
    %237 = vector.extract_strided_slice %236 {offsets = [0, 0], sizes = [32, 30], strides = [1, 1]} : vector<32x32xf32> to vector<32x30xf32>
    %238 = vector.broadcast %47 : f32 to vector<32x30xf32>
    %239 = arith.mulf %238, %237 : vector<32x30xf32>
    %240 = arith.addf %225, %239 : vector<32x30xf32>
    %241 = vector.broadcast %74 : f32 to vector<32x30xf32>
    %242 = arith.mulf %241, %237 : vector<32x30xf32>
    %243 = arith.addf %228, %242 : vector<32x30xf32>
    %244 = vector.broadcast %101 : f32 to vector<32x30xf32>
    %245 = arith.mulf %244, %237 : vector<32x30xf32>
    %246 = arith.addf %231, %245 : vector<32x30xf32>
    %247 = vector.broadcast %128 : f32 to vector<32x30xf32>
    %248 = arith.mulf %247, %237 : vector<32x30xf32>
    %249 = arith.addf %234, %248 : vector<32x30xf32>
    %250 = vector.extract_strided_slice %236 {offsets = [0, 1], sizes = [32, 30], strides = [1, 1]} : vector<32x32xf32> to vector<32x30xf32>
    %251 = vector.broadcast %48 : f32 to vector<32x30xf32>
    %252 = arith.mulf %251, %250 : vector<32x30xf32>
    %253 = arith.addf %240, %252 : vector<32x30xf32>
    %254 = vector.broadcast %75 : f32 to vector<32x30xf32>
    %255 = arith.mulf %254, %250 : vector<32x30xf32>
    %256 = arith.addf %243, %255 : vector<32x30xf32>
    %257 = vector.broadcast %102 : f32 to vector<32x30xf32>
    %258 = arith.mulf %257, %250 : vector<32x30xf32>
    %259 = arith.addf %246, %258 : vector<32x30xf32>
    %260 = vector.broadcast %129 : f32 to vector<32x30xf32>
    %261 = arith.mulf %260, %250 : vector<32x30xf32>
    %262 = arith.addf %249, %261 : vector<32x30xf32>
    %263 = vector.extract_strided_slice %236 {offsets = [0, 2], sizes = [32, 30], strides = [1, 1]} : vector<32x32xf32> to vector<32x30xf32>
    %264 = vector.broadcast %49 : f32 to vector<32x30xf32>
    %265 = arith.mulf %264, %263 : vector<32x30xf32>
    %266 = arith.addf %253, %265 : vector<32x30xf32>
    %267 = vector.broadcast %76 : f32 to vector<32x30xf32>
    %268 = arith.mulf %267, %263 : vector<32x30xf32>
    %269 = arith.addf %256, %268 : vector<32x30xf32>
    %270 = vector.broadcast %103 : f32 to vector<32x30xf32>
    %271 = arith.mulf %270, %263 : vector<32x30xf32>
    %272 = arith.addf %259, %271 : vector<32x30xf32>
    %273 = vector.broadcast %130 : f32 to vector<32x30xf32>
    %274 = arith.mulf %273, %263 : vector<32x30xf32>
    %275 = arith.addf %262, %274 : vector<32x30xf32>
    %c1_49 = arith.constant 1 : index
    %c0_50 = arith.constant 0 : index
    %c0_51 = arith.constant 0 : index
    %276 = vector.load %arg6[%c1_49, %c0_50, %c0_51] : memref<3x34x32xf32, #tpu.memory_space<vmem>>, vector<1x32x32xf32>
    %277 = vector.shape_cast %276 : vector<1x32x32xf32> to vector<32x32xf32>
    %278 = vector.extract_strided_slice %277 {offsets = [0, 0], sizes = [32, 30], strides = [1, 1]} : vector<32x32xf32> to vector<32x30xf32>
    %279 = vector.broadcast %50 : f32 to vector<32x30xf32>
    %280 = arith.mulf %279, %278 : vector<32x30xf32>
    %281 = arith.addf %266, %280 : vector<32x30xf32>
    %282 = vector.broadcast %77 : f32 to vector<32x30xf32>
    %283 = arith.mulf %282, %278 : vector<32x30xf32>
    %284 = arith.addf %269, %283 : vector<32x30xf32>
    %285 = vector.broadcast %104 : f32 to vector<32x30xf32>
    %286 = arith.mulf %285, %278 : vector<32x30xf32>
    %287 = arith.addf %272, %286 : vector<32x30xf32>
    %288 = vector.broadcast %131 : f32 to vector<32x30xf32>
    %289 = arith.mulf %288, %278 : vector<32x30xf32>
    %290 = arith.addf %275, %289 : vector<32x30xf32>
    %291 = vector.extract_strided_slice %277 {offsets = [0, 1], sizes = [32, 30], strides = [1, 1]} : vector<32x32xf32> to vector<32x30xf32>
    %292 = vector.broadcast %51 : f32 to vector<32x30xf32>
    %293 = arith.mulf %292, %291 : vector<32x30xf32>
    %294 = arith.addf %281, %293 : vector<32x30xf32>
    %295 = vector.broadcast %78 : f32 to vector<32x30xf32>
    %296 = arith.mulf %295, %291 : vector<32x30xf32>
    %297 = arith.addf %284, %296 : vector<32x30xf32>
    %298 = vector.broadcast %105 : f32 to vector<32x30xf32>
    %299 = arith.mulf %298, %291 : vector<32x30xf32>
    %300 = arith.addf %287, %299 : vector<32x30xf32>
    %301 = vector.broadcast %132 : f32 to vector<32x30xf32>
    %302 = arith.mulf %301, %291 : vector<32x30xf32>
    %303 = arith.addf %290, %302 : vector<32x30xf32>
    %304 = vector.extract_strided_slice %277 {offsets = [0, 2], sizes = [32, 30], strides = [1, 1]} : vector<32x32xf32> to vector<32x30xf32>
    %305 = vector.broadcast %52 : f32 to vector<32x30xf32>
    %306 = arith.mulf %305, %304 : vector<32x30xf32>
    %307 = arith.addf %294, %306 : vector<32x30xf32>
    %308 = vector.broadcast %79 : f32 to vector<32x30xf32>
    %309 = arith.mulf %308, %304 : vector<32x30xf32>
    %310 = arith.addf %297, %309 : vector<32x30xf32>
    %311 = vector.broadcast %106 : f32 to vector<32x30xf32>
    %312 = arith.mulf %311, %304 : vector<32x30xf32>
    %313 = arith.addf %300, %312 : vector<32x30xf32>
    %314 = vector.broadcast %133 : f32 to vector<32x30xf32>
    %315 = arith.mulf %314, %304 : vector<32x30xf32>
    %316 = arith.addf %303, %315 : vector<32x30xf32>
    %c1_52 = arith.constant 1 : index
    %c1_53 = arith.constant 1 : index
    %c0_54 = arith.constant 0 : index
    %317 = vector.load %arg6[%c1_52, %c1_53, %c0_54] : memref<3x34x32xf32, #tpu.memory_space<vmem>>, vector<1x32x32xf32>
    %318 = vector.shape_cast %317 : vector<1x32x32xf32> to vector<32x32xf32>
    %319 = vector.extract_strided_slice %318 {offsets = [0, 0], sizes = [32, 30], strides = [1, 1]} : vector<32x32xf32> to vector<32x30xf32>
    %320 = vector.broadcast %53 : f32 to vector<32x30xf32>
    %321 = arith.mulf %320, %319 : vector<32x30xf32>
    %322 = arith.addf %307, %321 : vector<32x30xf32>
    %323 = vector.broadcast %80 : f32 to vector<32x30xf32>
    %324 = arith.mulf %323, %319 : vector<32x30xf32>
    %325 = arith.addf %310, %324 : vector<32x30xf32>
    %326 = vector.broadcast %107 : f32 to vector<32x30xf32>
    %327 = arith.mulf %326, %319 : vector<32x30xf32>
    %328 = arith.addf %313, %327 : vector<32x30xf32>
    %329 = vector.broadcast %134 : f32 to vector<32x30xf32>
    %330 = arith.mulf %329, %319 : vector<32x30xf32>
    %331 = arith.addf %316, %330 : vector<32x30xf32>
    %332 = vector.extract_strided_slice %318 {offsets = [0, 1], sizes = [32, 30], strides = [1, 1]} : vector<32x32xf32> to vector<32x30xf32>
    %333 = vector.broadcast %54 : f32 to vector<32x30xf32>
    %334 = arith.mulf %333, %332 : vector<32x30xf32>
    %335 = arith.addf %322, %334 : vector<32x30xf32>
    %336 = vector.broadcast %81 : f32 to vector<32x30xf32>
    %337 = arith.mulf %336, %332 : vector<32x30xf32>
    %338 = arith.addf %325, %337 : vector<32x30xf32>
    %339 = vector.broadcast %108 : f32 to vector<32x30xf32>
    %340 = arith.mulf %339, %332 : vector<32x30xf32>
    %341 = arith.addf %328, %340 : vector<32x30xf32>
    %342 = vector.broadcast %135 : f32 to vector<32x30xf32>
    %343 = arith.mulf %342, %332 : vector<32x30xf32>
    %344 = arith.addf %331, %343 : vector<32x30xf32>
    %345 = vector.extract_strided_slice %318 {offsets = [0, 2], sizes = [32, 30], strides = [1, 1]} : vector<32x32xf32> to vector<32x30xf32>
    %346 = vector.broadcast %55 : f32 to vector<32x30xf32>
    %347 = arith.mulf %346, %345 : vector<32x30xf32>
    %348 = arith.addf %335, %347 : vector<32x30xf32>
    %349 = vector.broadcast %82 : f32 to vector<32x30xf32>
    %350 = arith.mulf %349, %345 : vector<32x30xf32>
    %351 = arith.addf %338, %350 : vector<32x30xf32>
    %352 = vector.broadcast %109 : f32 to vector<32x30xf32>
    %353 = arith.mulf %352, %345 : vector<32x30xf32>
    %354 = arith.addf %341, %353 : vector<32x30xf32>
    %355 = vector.broadcast %136 : f32 to vector<32x30xf32>
    %356 = arith.mulf %355, %345 : vector<32x30xf32>
    %357 = arith.addf %344, %356 : vector<32x30xf32>
    %c1_55 = arith.constant 1 : index
    %c2_56 = arith.constant 2 : index
    %c0_57 = arith.constant 0 : index
    %358 = vector.load %arg6[%c1_55, %c2_56, %c0_57] : memref<3x34x32xf32, #tpu.memory_space<vmem>>, vector<1x32x32xf32>
    %359 = vector.shape_cast %358 : vector<1x32x32xf32> to vector<32x32xf32>
    %360 = vector.extract_strided_slice %359 {offsets = [0, 0], sizes = [32, 30], strides = [1, 1]} : vector<32x32xf32> to vector<32x30xf32>
    %361 = vector.broadcast %56 : f32 to vector<32x30xf32>
    %362 = arith.mulf %361, %360 : vector<32x30xf32>
    %363 = arith.addf %348, %362 : vector<32x30xf32>
    %364 = vector.broadcast %83 : f32 to vector<32x30xf32>
    %365 = arith.mulf %364, %360 : vector<32x30xf32>
    %366 = arith.addf %351, %365 : vector<32x30xf32>
    %367 = vector.broadcast %110 : f32 to vector<32x30xf32>
    %368 = arith.mulf %367, %360 : vector<32x30xf32>
    %369 = arith.addf %354, %368 : vector<32x30xf32>
    %370 = vector.broadcast %137 : f32 to vector<32x30xf32>
    %371 = arith.mulf %370, %360 : vector<32x30xf32>
    %372 = arith.addf %357, %371 : vector<32x30xf32>
    %373 = vector.extract_strided_slice %359 {offsets = [0, 1], sizes = [32, 30], strides = [1, 1]} : vector<32x32xf32> to vector<32x30xf32>
    %374 = vector.broadcast %57 : f32 to vector<32x30xf32>
    %375 = arith.mulf %374, %373 : vector<32x30xf32>
    %376 = arith.addf %363, %375 : vector<32x30xf32>
    %377 = vector.broadcast %84 : f32 to vector<32x30xf32>
    %378 = arith.mulf %377, %373 : vector<32x30xf32>
    %379 = arith.addf %366, %378 : vector<32x30xf32>
    %380 = vector.broadcast %111 : f32 to vector<32x30xf32>
    %381 = arith.mulf %380, %373 : vector<32x30xf32>
    %382 = arith.addf %369, %381 : vector<32x30xf32>
    %383 = vector.broadcast %138 : f32 to vector<32x30xf32>
    %384 = arith.mulf %383, %373 : vector<32x30xf32>
    %385 = arith.addf %372, %384 : vector<32x30xf32>
    %386 = vector.extract_strided_slice %359 {offsets = [0, 2], sizes = [32, 30], strides = [1, 1]} : vector<32x32xf32> to vector<32x30xf32>
    %387 = vector.broadcast %58 : f32 to vector<32x30xf32>
    %388 = arith.mulf %387, %386 : vector<32x30xf32>
    %389 = arith.addf %376, %388 : vector<32x30xf32>
    %390 = vector.broadcast %85 : f32 to vector<32x30xf32>
    %391 = arith.mulf %390, %386 : vector<32x30xf32>
    %392 = arith.addf %379, %391 : vector<32x30xf32>
    %393 = vector.broadcast %112 : f32 to vector<32x30xf32>
    %394 = arith.mulf %393, %386 : vector<32x30xf32>
    %395 = arith.addf %382, %394 : vector<32x30xf32>
    %396 = vector.broadcast %139 : f32 to vector<32x30xf32>
    %397 = arith.mulf %396, %386 : vector<32x30xf32>
    %398 = arith.addf %385, %397 : vector<32x30xf32>
    %c2_58 = arith.constant 2 : index
    %c0_59 = arith.constant 0 : index
    %c0_60 = arith.constant 0 : index
    %399 = vector.load %arg6[%c2_58, %c0_59, %c0_60] : memref<3x34x32xf32, #tpu.memory_space<vmem>>, vector<1x32x32xf32>
    %400 = vector.shape_cast %399 : vector<1x32x32xf32> to vector<32x32xf32>
    %401 = vector.extract_strided_slice %400 {offsets = [0, 0], sizes = [32, 30], strides = [1, 1]} : vector<32x32xf32> to vector<32x30xf32>
    %402 = vector.broadcast %59 : f32 to vector<32x30xf32>
    %403 = arith.mulf %402, %401 : vector<32x30xf32>
    %404 = arith.addf %389, %403 : vector<32x30xf32>
    %405 = vector.broadcast %86 : f32 to vector<32x30xf32>
    %406 = arith.mulf %405, %401 : vector<32x30xf32>
    %407 = arith.addf %392, %406 : vector<32x30xf32>
    %408 = vector.broadcast %113 : f32 to vector<32x30xf32>
    %409 = arith.mulf %408, %401 : vector<32x30xf32>
    %410 = arith.addf %395, %409 : vector<32x30xf32>
    %411 = vector.broadcast %140 : f32 to vector<32x30xf32>
    %412 = arith.mulf %411, %401 : vector<32x30xf32>
    %413 = arith.addf %398, %412 : vector<32x30xf32>
    %414 = vector.extract_strided_slice %400 {offsets = [0, 1], sizes = [32, 30], strides = [1, 1]} : vector<32x32xf32> to vector<32x30xf32>
    %415 = vector.broadcast %60 : f32 to vector<32x30xf32>
    %416 = arith.mulf %415, %414 : vector<32x30xf32>
    %417 = arith.addf %404, %416 : vector<32x30xf32>
    %418 = vector.broadcast %87 : f32 to vector<32x30xf32>
    %419 = arith.mulf %418, %414 : vector<32x30xf32>
    %420 = arith.addf %407, %419 : vector<32x30xf32>
    %421 = vector.broadcast %114 : f32 to vector<32x30xf32>
    %422 = arith.mulf %421, %414 : vector<32x30xf32>
    %423 = arith.addf %410, %422 : vector<32x30xf32>
    %424 = vector.broadcast %141 : f32 to vector<32x30xf32>
    %425 = arith.mulf %424, %414 : vector<32x30xf32>
    %426 = arith.addf %413, %425 : vector<32x30xf32>
    %427 = vector.extract_strided_slice %400 {offsets = [0, 2], sizes = [32, 30], strides = [1, 1]} : vector<32x32xf32> to vector<32x30xf32>
    %428 = vector.broadcast %61 : f32 to vector<32x30xf32>
    %429 = arith.mulf %428, %427 : vector<32x30xf32>
    %430 = arith.addf %417, %429 : vector<32x30xf32>
    %431 = vector.broadcast %88 : f32 to vector<32x30xf32>
    %432 = arith.mulf %431, %427 : vector<32x30xf32>
    %433 = arith.addf %420, %432 : vector<32x30xf32>
    %434 = vector.broadcast %115 : f32 to vector<32x30xf32>
    %435 = arith.mulf %434, %427 : vector<32x30xf32>
    %436 = arith.addf %423, %435 : vector<32x30xf32>
    %437 = vector.broadcast %142 : f32 to vector<32x30xf32>
    %438 = arith.mulf %437, %427 : vector<32x30xf32>
    %439 = arith.addf %426, %438 : vector<32x30xf32>
    %c2_61 = arith.constant 2 : index
    %c1_62 = arith.constant 1 : index
    %c0_63 = arith.constant 0 : index
    %440 = vector.load %arg6[%c2_61, %c1_62, %c0_63] : memref<3x34x32xf32, #tpu.memory_space<vmem>>, vector<1x32x32xf32>
    %441 = vector.shape_cast %440 : vector<1x32x32xf32> to vector<32x32xf32>
    %442 = vector.extract_strided_slice %441 {offsets = [0, 0], sizes = [32, 30], strides = [1, 1]} : vector<32x32xf32> to vector<32x30xf32>
    %443 = vector.broadcast %62 : f32 to vector<32x30xf32>
    %444 = arith.mulf %443, %442 : vector<32x30xf32>
    %445 = arith.addf %430, %444 : vector<32x30xf32>
    %446 = vector.broadcast %89 : f32 to vector<32x30xf32>
    %447 = arith.mulf %446, %442 : vector<32x30xf32>
    %448 = arith.addf %433, %447 : vector<32x30xf32>
    %449 = vector.broadcast %116 : f32 to vector<32x30xf32>
    %450 = arith.mulf %449, %442 : vector<32x30xf32>
    %451 = arith.addf %436, %450 : vector<32x30xf32>
    %452 = vector.broadcast %143 : f32 to vector<32x30xf32>
    %453 = arith.mulf %452, %442 : vector<32x30xf32>
    %454 = arith.addf %439, %453 : vector<32x30xf32>
    %455 = vector.extract_strided_slice %441 {offsets = [0, 1], sizes = [32, 30], strides = [1, 1]} : vector<32x32xf32> to vector<32x30xf32>
    %456 = vector.broadcast %63 : f32 to vector<32x30xf32>
    %457 = arith.mulf %456, %455 : vector<32x30xf32>
    %458 = arith.addf %445, %457 : vector<32x30xf32>
    %459 = vector.broadcast %90 : f32 to vector<32x30xf32>
    %460 = arith.mulf %459, %455 : vector<32x30xf32>
    %461 = arith.addf %448, %460 : vector<32x30xf32>
    %462 = vector.broadcast %117 : f32 to vector<32x30xf32>
    %463 = arith.mulf %462, %455 : vector<32x30xf32>
    %464 = arith.addf %451, %463 : vector<32x30xf32>
    %465 = vector.broadcast %144 : f32 to vector<32x30xf32>
    %466 = arith.mulf %465, %455 : vector<32x30xf32>
    %467 = arith.addf %454, %466 : vector<32x30xf32>
    %468 = vector.extract_strided_slice %441 {offsets = [0, 2], sizes = [32, 30], strides = [1, 1]} : vector<32x32xf32> to vector<32x30xf32>
    %469 = vector.broadcast %64 : f32 to vector<32x30xf32>
    %470 = arith.mulf %469, %468 : vector<32x30xf32>
    %471 = arith.addf %458, %470 : vector<32x30xf32>
    %472 = vector.broadcast %91 : f32 to vector<32x30xf32>
    %473 = arith.mulf %472, %468 : vector<32x30xf32>
    %474 = arith.addf %461, %473 : vector<32x30xf32>
    %475 = vector.broadcast %118 : f32 to vector<32x30xf32>
    %476 = arith.mulf %475, %468 : vector<32x30xf32>
    %477 = arith.addf %464, %476 : vector<32x30xf32>
    %478 = vector.broadcast %145 : f32 to vector<32x30xf32>
    %479 = arith.mulf %478, %468 : vector<32x30xf32>
    %480 = arith.addf %467, %479 : vector<32x30xf32>
    %c2_64 = arith.constant 2 : index
    %c2_65 = arith.constant 2 : index
    %c0_66 = arith.constant 0 : index
    %481 = vector.load %arg6[%c2_64, %c2_65, %c0_66] : memref<3x34x32xf32, #tpu.memory_space<vmem>>, vector<1x32x32xf32>
    %482 = vector.shape_cast %481 : vector<1x32x32xf32> to vector<32x32xf32>
    %483 = vector.extract_strided_slice %482 {offsets = [0, 0], sizes = [32, 30], strides = [1, 1]} : vector<32x32xf32> to vector<32x30xf32>
    %484 = vector.broadcast %65 : f32 to vector<32x30xf32>
    %485 = arith.mulf %484, %483 : vector<32x30xf32>
    %486 = arith.addf %471, %485 : vector<32x30xf32>
    %487 = vector.broadcast %92 : f32 to vector<32x30xf32>
    %488 = arith.mulf %487, %483 : vector<32x30xf32>
    %489 = arith.addf %474, %488 : vector<32x30xf32>
    %490 = vector.broadcast %119 : f32 to vector<32x30xf32>
    %491 = arith.mulf %490, %483 : vector<32x30xf32>
    %492 = arith.addf %477, %491 : vector<32x30xf32>
    %493 = vector.broadcast %146 : f32 to vector<32x30xf32>
    %494 = arith.mulf %493, %483 : vector<32x30xf32>
    %495 = arith.addf %480, %494 : vector<32x30xf32>
    %496 = vector.extract_strided_slice %482 {offsets = [0, 1], sizes = [32, 30], strides = [1, 1]} : vector<32x32xf32> to vector<32x30xf32>
    %497 = vector.broadcast %66 : f32 to vector<32x30xf32>
    %498 = arith.mulf %497, %496 : vector<32x30xf32>
    %499 = arith.addf %486, %498 : vector<32x30xf32>
    %500 = vector.broadcast %93 : f32 to vector<32x30xf32>
    %501 = arith.mulf %500, %496 : vector<32x30xf32>
    %502 = arith.addf %489, %501 : vector<32x30xf32>
    %503 = vector.broadcast %120 : f32 to vector<32x30xf32>
    %504 = arith.mulf %503, %496 : vector<32x30xf32>
    %505 = arith.addf %492, %504 : vector<32x30xf32>
    %506 = vector.broadcast %147 : f32 to vector<32x30xf32>
    %507 = arith.mulf %506, %496 : vector<32x30xf32>
    %508 = arith.addf %495, %507 : vector<32x30xf32>
    %509 = vector.extract_strided_slice %482 {offsets = [0, 2], sizes = [32, 30], strides = [1, 1]} : vector<32x32xf32> to vector<32x30xf32>
    %510 = vector.broadcast %67 : f32 to vector<32x30xf32>
    %511 = arith.mulf %510, %509 : vector<32x30xf32>
    %512 = arith.addf %499, %511 : vector<32x30xf32>
    %513 = vector.broadcast %94 : f32 to vector<32x30xf32>
    %514 = arith.mulf %513, %509 : vector<32x30xf32>
    %515 = arith.addf %502, %514 : vector<32x30xf32>
    %516 = vector.broadcast %121 : f32 to vector<32x30xf32>
    %517 = arith.mulf %516, %509 : vector<32x30xf32>
    %518 = arith.addf %505, %517 : vector<32x30xf32>
    %519 = vector.broadcast %148 : f32 to vector<32x30xf32>
    %520 = arith.mulf %519, %509 : vector<32x30xf32>
    %521 = arith.addf %508, %520 : vector<32x30xf32>
    %c0_67 = arith.constant 0 : index
    %c0_68 = arith.constant 0 : index
    %c0_69 = arith.constant 0 : index
    %c0_70 = arith.constant 0 : index
    %522 = vector.load %arg5[%c0_67, %c0_68, %c0_69, %c0_70] : memref<1x4x32x30xf32, #tpu.memory_space<vmem>>, vector<1x1x32x30xf32>
    %523 = vector.shape_cast %522 : vector<1x1x32x30xf32> to vector<32x30xf32>
    %524 = vector.shape_cast %512 : vector<32x30xf32> to vector<1x1x32x30xf32>
    tpu.vector_store %arg5[%c0_67, %c0_68, %c0_69, %c0_70], %524 {strides = array<i32>} : memref<1x4x32x30xf32, #tpu.memory_space<vmem>>, vector<1x1x32x30xf32>,
    %c0_71 = arith.constant 0 : index
    %c1_72 = arith.constant 1 : index
    %c0_73 = arith.constant 0 : index
    %c0_74 = arith.constant 0 : index
    %525 = vector.load %arg5[%c0_71, %c1_72, %c0_73, %c0_74] : memref<1x4x32x30xf32, #tpu.memory_space<vmem>>, vector<1x1x32x30xf32>
    %526 = vector.shape_cast %525 : vector<1x1x32x30xf32> to vector<32x30xf32>
    %527 = vector.shape_cast %515 : vector<32x30xf32> to vector<1x1x32x30xf32>
    tpu.vector_store %arg5[%c0_71, %c1_72, %c0_73, %c0_74], %527 {strides = array<i32>} : memref<1x4x32x30xf32, #tpu.memory_space<vmem>>, vector<1x1x32x30xf32>,
    %c0_75 = arith.constant 0 : index
    %c2_76 = arith.constant 2 : index
    %c0_77 = arith.constant 0 : index
    %c0_78 = arith.constant 0 : index
    %528 = vector.load %arg5[%c0_75, %c2_76, %c0_77, %c0_78] : memref<1x4x32x30xf32, #tpu.memory_space<vmem>>, vector<1x1x32x30xf32>
    %529 = vector.shape_cast %528 : vector<1x1x32x30xf32> to vector<32x30xf32>
    %530 = vector.shape_cast %518 : vector<32x30xf32> to vector<1x1x32x30xf32>
    tpu.vector_store %arg5[%c0_75, %c2_76, %c0_77, %c0_78], %530 {strides = array<i32>} : memref<1x4x32x30xf32, #tpu.memory_space<vmem>>, vector<1x1x32x30xf32>,
    %c0_79 = arith.constant 0 : index
    %c3_80 = arith.constant 3 : index
    %c0_81 = arith.constant 0 : index
    %c0_82 = arith.constant 0 : index
    %531 = vector.load %arg5[%c0_79, %c3_80, %c0_81, %c0_82] : memref<1x4x32x30xf32, #tpu.memory_space<vmem>>, vector<1x1x32x30xf32>
    %532 = vector.shape_cast %531 : vector<1x1x32x30xf32> to vector<32x30xf32>
    %533 = vector.shape_cast %521 : vector<32x30xf32> to vector<1x1x32x30xf32>
    tpu.vector_store %arg5[%c0_79, %c3_80, %c0_81, %c0_82], %533 {strides = array<i32>} : memref<1x4x32x30xf32, #tpu.memory_space<vmem>>, vector<1x1x32x30xf32>,
    return
  }
  func.func @transform_0(%arg0: i32, %arg1: i32) -> (i32, i32, i32, i32) {
    %c0_i32 = arith.constant 0 : i32
    %c0_i32_0 = arith.constant 0 : i32
    %c0_i32_1 = arith.constant 0 : i32
    %c0_i32_2 = arith.constant 0 : i32
    return %arg0, %c0_i32, %c0_i32_0, %c0_i32_1 : i32, i32, i32, i32
  }
  func.func @transform_1(%arg0: i32, %arg1: i32) -> i32 {
    %c0_i32 = arith.constant 0 : i32
    %c0_i32_0 = arith.constant 0 : i32
    return %c0_i32 : i32
  }
  func.func @transform_2(%arg0: i32, %arg1: i32) -> (i32, i32, i32, i32) {
    %c0_i32 = arith.constant 0 : i32
    %c0_i32_0 = arith.constant 0 : i32
    %c0_i32_1 = arith.constant 0 : i32
    return %arg0, %c0_i32, %arg1, %c0_i32_0 : i32, i32, i32, i32
  }
  func.func @transform_3(%arg0: i32, %arg1: i32) -> (i32, i32, i32, i32) {
    %c0_i32 = arith.constant 0 : i32
    %c0_i32_0 = arith.constant 0 : i32
    %c0_i32_1 = arith.constant 0 : i32
    return %arg0, %c0_i32, %arg1, %c0_i32_0 : i32, i32, i32, i32
  }
}

</mosaic_0001>

<bundles_post_ra>
// kernel: tpu_custom_call.1
= control target key start
LH: loop header
LB: loop body
LE: loop exit
PB: predicated region body
PF: predicated region fallthrough
CT: control target
= control target key end

     0   :  { %s5454_s0 = inlined_call_operand.hbm [shape: f32[2,3,32,32], index: 0, kind: input, shape index: {}]   ;;  %s5455_s1 = inlined_call_operand.vmem [shape: f32[108], index: 1, kind: input, shape index: {}]   ;;  %s5456_s2 = inlined_call_operand.hbm [shape: f32[2,3,32,32], index: 2, kind: output, shape index: {0}]   ;;  %s5457_s3 = inlined_call_operand.vmem [shape: f32[2,4,30,30], index: 3, kind: output, shape index: {1}]  }
   0x1   :  { %5490 = sst [smem:[#allocation157_spill]] %s5455_s1 }
   0x2   :  { %9 = vsyncpa [#allocation4], 0 }
   0x3   :  { %11 = vsyncpa [#allocation4 + $0x1], 0 }
   0x4   :  { %12 = vsyncpa [#allocation6], 0 }
   0x5   :  { %13 = vsyncpa [#allocation5], 0 }
   0x6   :  { %15 = vsyncpa [#allocation5 + $0x1], 0  ;;  %s3175_s12 = smov 0   ;;  %s3177_s13 = smov 0  }
   0x7   :  { %s3179_s14 = smov 0   ;;  %s3181_s15 = smov 0  }
   0x8   :  { %s3183_s16 = smov 0   ;;  %s3185_s17 = smov 0  }
   0x9 LB: > { %s2773_s18 = sadd.s32 4294967295, %s3144_s17   ;;  %s2774_s19 = sadd.s32 4294967294, %s3144_s17   ;;  %s3144_s17 = sphi %s3185_s17, %s21_s17   ;;  %s3140_s16 = sphi %s3183_s16, %s5888_s16   ;;  %s3136_s15 = sphi %s3181_s15, %s5887_s15   ;;  %s3132_s14 = sphi %s3179_s14, %s5886_s14   ;;  %s3128_s13 = sphi %s3177_s13, %s5885_s13   ;;  %s3124_s12 = sphi %s3175_s12, %s5884_s12  }
   0xa   : > { %s40_s20 = sadd.s32 1, %s3132_s14  ;;  %p47_p0 = scmp.ne.s32.totalorder %s3132_s14, %s3128_s13 }
   0xb   : > { %p48_p1 = scmp.eq.s32.totalorder %s3144_s17, 0  ;;  %p53_p2 = scmp.ne.s32.totalorder %s3128_s13, %s3124_s12 }
   0xc   : > { %p3213_p3 = scmp.eq.s32.totalorder %s2773_s18, 0  ;;  %p100_p4 = scmp.eq.s32.totalorder %s2773_s18, 1 }
   0xd   : > { %p3217_p5 = por %p48_p1, %p47_p0  ;;  %p106_p6 = scmp.eq.s32.totalorder %s2774_s19, 1 }
   0xe   : > { %p3223_p7 = por %p3213_p3, %p53_p2  ;;  %p3227_p8 = por %p100_p4, %p47_p0 }
   0xf   : > { %p3231_p9 = por %p106_p6, %p53_p2  ;;  %p2775_p10 = scmp.ge.s32.totalorder %s3144_s17, 1 }
  0x10   : > { %s5494_s24 = scalar_select %p3227_p8, 1, 0 }
  0x11   : > { %s5495_s25 = scalar_select %p3231_p9, 1, 0 }
  0x12   : > { %p141_p11 = scmp.lt.s32.totalorder %s3144_s17, 3  ;;  %s5496_s1 = sld [smem:[#allocation157_spill]] }
  0x13   : > { %p2947_p0 = scmp.lt.s32.totalorder %s3144_s17, 2  ;;  %s33_s5 = sadd.s32 1, %s3140_s16 }
  0x14   : > { %p3240_p12 = pnand %p2775_p10, %p141_p11  ;;  %p3261_p6 = scmp.ge.s32.totalorder %s33_s5, 2 }
  0x15   : > { %p3250_p2 = pnand %p2947_p0, %p3217_p5  ;;  %s165_s7 = sand.u32 1, %s3132_s14  }
  0x16   : > { %p2934_p1 = pneg %p3240_p12 }
  0x18   : > { %s154_s28 = sshll.u32 %s5496_s1, 4  ;;  %p3256_p4 = pnand %p2934_p1, %p3213_p3  ;;  %s155_s28 = int_to_ptr.vmem [resolvable:$true] %s154_s28 }
  0x19   : > { %s3017_s8 = scalar_lea.vmem %s155_s28, 16  ;;  %p3025_p13 = scmp.lt.s32.totalorder %s155_s28, %s155_s28 }
  0x1a   : > { %p3018_p10 = scmp.ne.s32.totalorder %s155_s28, %s3017_s8  ;;  %p3019_p11 = pneg %p3256_p4 }
  0x1b   : > { %p3026_p9 = scmp.lt.s32.totalorder %s3017_s8, %s3017_s8 }
  0x1c   : > { %p3020_p5 = pnand %p3019_p11, %p3018_p10 }
  0x1d   : > { %p3027_p8 = por %p3026_p9, %p3025_p13 }
  0x1e   : > { %p3021_p0 = pneg %p3020_p5 }
  0x20   : > { %p3028_p1 = pnand %p3027_p8, %p3021_p0 }
  0x22   : > { %3031 = shalt.err (!%p3028_p1)
}
  0x23   : > { %s3146_s9 = smov [#allocation7]   ;;  %s5890_s5 = smov (%p3261_p6, %s33_s5), 0 }
  0x24   : > { %2937 = dma.vmem_to_smem (!%p3256_p4), %s155_s28, 16, %s3146_s9, [#allocation6]  }
  0x25   : > { %s2922_s10 = smul.u32 96, %s165_s7  ;;  %s37_s11 = ssub.s32 %s3140_s16, %s5890_s5 }
  0x26   : > { %s2923_s18 = smul.u32 1536, %s3140_s16  ;;  %p38_p9 = scmp.eq.s32.totalorder %s37_s11, 0 }
  0x27   : > { %s169_s27 = scalar_lea.vmem [#allocation3], %s2922_s10  ;;  %s166_s1 = scalar_lea.sflag [#allocation4], %s165_s7 }
  0x28   : > { %s175_s26 = scalar_lea.hbm %s5454_s0, %s2923_s18  ;;  %s176_s4 = sshll.u32 %s169_s27, 4  ;;  %s177_s4 = int_to_ptr.vmem [resolvable:$true] %s176_s4 }
  0x29   : > { %s3283_s8 = scalar_select %p38_p9, %s3132_s14, %s40_s20  }
  0x2a   : > { %p3034_p8 = pneg %p3250_p2  ;;  %s3045_s28 = scalar_lea.vmem %s177_s4, 1536 }
  0x2b   : > { %p3046_p13 = scmp.ne.s32.totalorder %s177_s4, %s3045_s28  ;;  %s3147_s6 = smov [#allocation3]  }
  0x2c   : > { %s3050_s9 = sshll.u32 %s3147_s6, 4  ;;  %s3051_s9 = int_to_ptr.vmem [resolvable:$false] %s3050_s9 }
  0x2d   : > { %p3048_p4 = pnand %p3046_p13, %p3034_p8  ;;  %s3052_s11 = scalar_lea.vmem %s3051_s9, 3072 }
  0x2e   : > { %p3053_p10 = scmp.lt.s32.totalorder %s177_s4, %s3051_s9  ;;  %p3054_p11 = scmp.lt.s32.totalorder %s3052_s11, %s3045_s28 }
  0x2f   : > { %p3049_p6 = pneg %p3048_p4 }
  0x30   : > { %p3055_p5 = por %p3054_p11, %p3053_p10 }
  0x32   : > { %p3056_p0 = pnand %p3055_p5, %p3049_p6 }
  0x34   : > { %3059 = shalt.err (!%p3056_p0)
}
  0x35   : > { %s3148_s10 = smov 128   ;;  %s3149_s20 = smov 8  }
  0x36   : > { %2941 = dma.hbm_to_vmem [thread:$0]  (!%p3250_p2), %s175_s26, 1536, %s177_s4, %s166_s1, %s3148_s10, %s3148_s10, %s3149_s20  }
  0x37   : > { %188 = sbr.rel (%p3240_p12) target bundleno = 785 (0x311), region = 28 }
  0x3c   : > { %s3292_s7 = sand.u32 1, %s3128_s13  }
  0x3d   : > { %s2924_s18 = smul.u32 96, %s3292_s7  ;;  %s191_s19 = scalar_lea.sflag [#allocation4], %s3292_s7 }
  0x3f   : > { %s3298_s22 = scalar_lea.vmem [#allocation3], %s2924_s18 }
  0x40   : > { %3111 = dma.done.wait (%p3223_p7), %s191_s19, 1536  }
  0x41   : > { %3113 = vsyncadd (%p3223_p7), %s191_s19, 4294965760 }
  0x42   : > { %3115 = dma.done.wait (%p3213_p3), [#allocation6], 16  }
  0x43   : > { %3117 = vsyncadd (%p3213_p3), [#allocation6], 4294967280 }
  0x44   : > { %203 = sfence }
  0x45   : > { %v246_v0 = vld [vmem:[%s3298_s22 + $0x10] sm:$0xff]  ;;  %vm252_vm0 = vcmask 261120   ;;  %s2799_s1 = sld [smem:[#allocation7 + $0x1]]  ;;  %v244_v1 = vld [vmem:[%s3298_s22] sm:$0xff]  ;;  %v247_v4 = vld [vmem:[%s3298_s22 + $0x18] sm:$0xff]  ;;  %vm311_vm1 = vcmask 254976  }
  0x46   : > { %v3310_v2 = vadd.f32 1.0, %v246_v0  ;;  %v3312_v3 = vadd.f32 1.0, %v244_v1  ;;  %v245_v5 = vld [vmem:[%s3298_s22 + $0x8] sm:$0xff]  ;;  %v3316_v6 = vadd.f32 1.0, %v247_v4  ;;  %v305_v8 = vld [vmem:[%s3298_s22 + $0x1e] sm:$0x3] }
  0x47   : > { %v3318_v7 = vadd.f32 1.0, %v245_v5  ;;  %v308_v9 = vadd.f32 1.0, %v305_v8  ;;  %s2826_s21 = sld [smem:[#allocation7 + $0x1c]]  ;;  %s3150_s23 = smov 127   ;;  %v2784_v50 = vld [vmem:[%s3298_s22 + $0x28] sm:$0xff]  ;;  %v2783_v51 = vld [vmem:[%s3298_s22 + $0x20] sm:$0xff] }
  0x48   : > { %5501 = vst [vmem:[#allocation12_spill] sm:$0xff] %v3310_v2  ;;  %5502 = vst [vmem:[#allocation13_spill] sm:$0xff] %v3312_v3  ;;  %s2853_s29 = sld [smem:[#allocation7 + $0x37]]  ;;  %s3151_s4 = smov 126   ;;  %v3398_v54 = vadd.f32 1.0, %v2784_v50  ;;  %v3400_v55 = vadd.f32 1.0, %v2783_v51 }
  0x49   : > { %5503 = vst [vmem:[#allocation14_spill] sm:$0xff] %v3316_v6  ;;  %5504 = vst [vmem:[#allocation15_spill] sm:$0xff] %v3318_v7  ;;  %s2880_s30 = sld [smem:[#allocation7 + $0x52]]  ;;  %v2786_v56 = vld [vmem:[%s3298_s22 + $0x38] sm:$0xff]  ;;  %v2785_v57 = vld [vmem:[%s3298_s22 + $0x30] sm:$0xff]  ;;  %p5877_p7 = scmp.ne.s32.totalorder %s5494_s24, 0 }
  0x4a   : > { %259 = vst.msk [vmem:[#allocation2 + $0x10] sm:$0xff] %vm252_vm0, %v3310_v2  ;;  %257 = vst.msk [vmem:[#allocation2] sm:$0xff] %vm252_vm0, %v3312_v3  ;;  %s2800_s26 = sld [smem:[#allocation7 + $0x2]]  ;;  %v3412_v60 = vadd.f32 1.0, %v2786_v56  ;;  %v3414_v61 = vadd.f32 1.0, %v2785_v57  ;;  %v2791_v2 = vld [vmem:[%s3298_s22 + $0x40] sm:$0xff] }
  0x4b   : > { %260 = vst.msk [vmem:[#allocation2 + $0x18] sm:$0xff] %vm252_vm0, %v3316_v6  ;;  %258 = vst.msk [vmem:[#allocation2 + $0x8] sm:$0xff] %vm252_vm0, %v3318_v7  ;;  %v463_v10 = vstv %s2799_s1  ;;  %s2827_s27 = sld [smem:[#allocation7 + $0x1d]]  ;;  %v2792_v6 = vld [vmem:[%s3298_s22 + $0x48] sm:$0xff] }
  0x4c   : > { %312 = vst.msk [vmem:[#allocation2 + $0x20] sm:$0x3] %vm311_vm1, %v308_v9  ;;  %s2854_s28 = sld [smem:[#allocation7 + $0x38]]  ;;  %5505 = vst [vmem:[#allocation16_spill] sm:$0xff] %v3398_v54  ;;  %v3840_v7 = vadd.f32 1.0, %v2792_v6 }
  0x4d   : > { %v488_v19 = vstv %s2826_s21  ;;  %s2881_s6 = sld [smem:[#allocation7 + $0x53]]  ;;  %5506 = vst [vmem:[#allocation17_spill] sm:$0xff] %v3400_v55  ;;  %278 = vst.msk [vmem:[#allocation2 + $0x30] sm:$0xff] %vm252_vm0, %v3398_v54 }
  0x4e   : > { %v513_v24 = vstv %s2853_s29  ;;  %s2802_s9 = sld [smem:[#allocation7 + $0x4]]  ;;  %277 = vst.msk [vmem:[#allocation2 + $0x28] sm:$0xff] %vm252_vm0, %v3400_v55  ;;  %5507 = vst [vmem:[#allocation18_spill] sm:$0xff] %v3412_v60 }
  0x4f   : > { %v538_v29 = vstv %s2880_s30  ;;  %5508 = vst [vmem:[#allocation19_spill] sm:$0xff] %v3414_v61  ;;  %s2829_s11 = sld [smem:[#allocation7 + $0x1f]]  ;;  %280 = vst.msk [vmem:[#allocation2 + $0x40] sm:$0xff] %vm252_vm0, %v3412_v60 }
  0x50   : > { %v563_v34 = vstv %s2800_s26  ;;  %279 = vst.msk [vmem:[#allocation2 + $0x38] sm:$0xff] %vm252_vm0, %v3414_v61  ;;  %s2856_s10 = sld [smem:[#allocation7 + $0x3a]]  ;;  %5524 = vst [vmem:[#allocation35_spill] sm:$0xff] %v3840_v7 }
  0x51   : > { %v3330_v11 = vld [vmem:[#allocation2 + $0x10] sm:$0xff]  ;;  %v3332_v12 = vld [vmem:[#allocation2] sm:$0xff]  ;;  %v588_v39 = vstv %s2827_s27  ;;  %s2883_s20 = sld [smem:[#allocation7 + $0x55]]  ;;  %298 = vst.msk [vmem:[#allocation2 + $0x58] sm:$0xff] %vm252_vm0, %v3840_v7 }
  0x52   : > { %v466_v13 = vmul.f32 %v463_v10, %v3330_v11  ;;  %v464_v14 = vmul.f32 %v463_v10, %v3332_v12  ;;  %v3336_v15 = vld [vmem:[#allocation2 + $0x18] sm:$0xff]  ;;  %v3338_v16 = vld [vmem:[#allocation2 + $0x8] sm:$0xff]  ;;  %v489_v21 = vmul.f32 %v488_v19, %v3332_v12  ;;  %v491_v23 = vmul.f32 %v488_v19, %v3330_v11  ;;  %s2803_s19 = sld [smem:[#allocation7 + $0x5]] }
  0x53   : > { %v467_v17 = vmul.f32 %v463_v10, %v3336_v15  ;;  %v465_v18 = vmul.f32 %v463_v10, %v3338_v16  ;;  %v490_v20 = vmul.f32 %v488_v19, %v3338_v16  ;;  %v492_v22 = vmul.f32 %v488_v19, %v3336_v15  ;;  %v3416_v62 = vld [vmem:[#allocation2 + $0x9] sm:$0xff]  ;;  %v3418_v0 = vld [vmem:[#allocation2 + $0x1] sm:$0xff]  ;;  %v3428_v5 = vld [vmem:[#allocation2 + $0x19] sm:$0xff]  ;;  %s2830_s1 = sld [smem:[#allocation7 + $0x20]] }
  0x54   : > { %476 = vrot.lane.b32.xlu1 %v466_v13, %s3150_s23  ;;  %472 = vrot.lane.b32.xlu0 %v464_v14, %s3150_s23  ;;  %v515_v25 = vmul.f32 %v513_v24, %v3338_v16  ;;  %v514_v26 = vmul.f32 %v513_v24, %v3332_v12  ;;  %v517_v27 = vmul.f32 %v513_v24, %v3336_v15  ;;  %v613_v44 = vstv %s2854_s28  ;;  %v3430_v8 = vld [vmem:[#allocation2 + $0x11] sm:$0xff]  ;;  %s2857_s21 = sld [smem:[#allocation7 + $0x3b]] }
  0x55   : > { %v516_v28 = vmul.f32 %v513_v24, %v3330_v11  ;;  %v540_v30 = vmul.f32 %v538_v29, %v3338_v16  ;;  %v539_v31 = vmul.f32 %v538_v29, %v3332_v12  ;;  %v542_v32 = vmul.f32 %v538_v29, %v3336_v15  ;;  %s2884_s29 = sld [smem:[#allocation7 + $0x56]] }
  0x56   : > { %v541_v33 = vmul.f32 %v538_v29, %v3330_v11  ;;  %v565_v35 = vmul.f32 %v563_v34, %v3338_v16  ;;  %v564_v36 = vmul.f32 %v563_v34, %v3332_v12  ;;  %v567_v37 = vmul.f32 %v563_v34, %v3336_v15  ;;  %s2805_s30 = sld [smem:[#allocation7 + $0x7]] }
  0x57   : > { %v566_v38 = vmul.f32 %v563_v34, %v3330_v11  ;;  %v590_v40 = vmul.f32 %v588_v39, %v3338_v16  ;;  %v589_v41 = vmul.f32 %v588_v39, %v3332_v12  ;;  %v592_v42 = vmul.f32 %v588_v39, %v3336_v15  ;;  %s2832_s26 = sld [smem:[#allocation7 + $0x22]] }
  0x58   : > { %478 = vrot.lane.b32.xlu1 %v467_v17, %s3150_s23  ;;  %474 = vrot.lane.b32.xlu0 %v465_v18, %s3150_s23  ;;  %v591_v43 = vmul.f32 %v588_v39, %v3330_v11  ;;  %v615_v45 = vmul.f32 %v613_v44, %v3338_v16  ;;  %v614_v46 = vmul.f32 %v613_v44, %v3332_v12  ;;  %v638_v49 = vstv %s2881_s6  ;;  %s315_s27 = sld [smem:[#allocation7]] }
  0x59   : > { %v617_v47 = vmul.f32 %v613_v44, %v3336_v15  ;;  %v616_v48 = vmul.f32 %v613_v44, %v3330_v11  ;;  %v640_v52 = vmul.f32 %v638_v49, %v3338_v16  ;;  %v639_v53 = vmul.f32 %v638_v49, %v3332_v12  ;;  %s2859_s28 = sld [smem:[#allocation7 + $0x3d]] }
  0x5a   : > { %v642_v58 = vmul.f32 %v638_v49, %v3336_v15  ;;  %v641_v59 = vmul.f32 %v638_v49, %v3330_v11  ;;  %v703_v63 = vstv %s2802_s9  ;;  %v728_v13 = vstv %s2829_s11  ;;  %s2825_s6 = sld [smem:[#allocation7 + $0x1b]] }
  0x5b   : > { %v705_v1 = vmul.f32 %v703_v63, %v3416_v62  ;;  %v704_v4 = vmul.f32 %v703_v63, %v3418_v0  ;;  %v707_v9 = vmul.f32 %v703_v63, %v3428_v5  ;;  %v706_v10 = vmul.f32 %v703_v63, %v3430_v8  ;;  %v3503_v63 = vld [vmem:[#allocation2 + $0x2] sm:$0xff]  ;;  %s2801_s9 = sld [smem:[#allocation7 + $0x3]] }
  0x5c   : > { %499 = vrot.lane.b32.xlu1 %v490_v20, %s3150_s23  ;;  %497 = vrot.lane.b32.xlu0 %v489_v21, %s3150_s23  ;;  %v730_v14 = vmul.f32 %v728_v13, %v3416_v62  ;;  %v729_v17 = vmul.f32 %v728_v13, %v3418_v0  ;;  %v732_v18 = vmul.f32 %v728_v13, %v3428_v5  ;;  %v753_v20 = vstv %s2856_s10  ;;  %s2886_s11 = sld [smem:[#allocation7 + $0x58]] }
  0x5d   : > { %v731_v19 = vmul.f32 %v728_v13, %v3430_v8  ;;  %v755_v21 = vmul.f32 %v753_v20, %v3416_v62  ;;  %v756_v24 = vmul.f32 %v753_v20, %v3430_v8  ;;  %v3514_v13 = vld [vmem:[#allocation2 + $0x1a] sm:$0xff]  ;;  %s3544_s10 = sld [smem:[#allocation7 + $0x36]] }
  0x60   : > { %503 = vrot.lane.b32.xlu1 %v492_v22, %s3150_s23  ;;  %501 = vrot.lane.b32.xlu0 %v491_v23, %s3150_s23  ;;  %v754_v22 = vmul.f32 %v753_v20, %v3418_v0  ;;  %v757_v23 = vmul.f32 %v753_v20, %v3428_v5 }
  0x64   : > { %524 = vrot.lane.b32.xlu1 %v515_v25, %s3150_s23  ;;  %522 = vrot.lane.b32.xlu0 %v514_v26, %s3150_s23  ;;  %v778_v25 = vstv %s2883_s20  ;;  %s3556_s20 = sld [smem:[#allocation7 + $0x1e]] }
  0x65   : > { %v780_v26 = vmul.f32 %v778_v25, %v3416_v62  ;;  %v781_v29 = vmul.f32 %v778_v25, %v3430_v8 }
  0x68   : > { %528 = vrot.lane.b32.xlu1 %v517_v27, %s3150_s23  ;;  %526 = vrot.lane.b32.xlu0 %v516_v28, %s3150_s23  ;;  %v779_v27 = vmul.f32 %v778_v25, %v3418_v0  ;;  %v782_v28 = vmul.f32 %v778_v25, %v3428_v5 }
  0x6c   : > { %549 = vrot.lane.b32.xlu1 %v540_v30, %s3150_s23  ;;  %547 = vrot.lane.b32.xlu0 %v539_v31, %s3150_s23  ;;  %v803_v30 = vstv %s2803_s19  ;;  %s3568_s19 = sld [smem:[#allocation7 + $0x8]] }
  0x6d   : > { %v805_v31 = vmul.f32 %v803_v30, %v3416_v62  ;;  %v806_v34 = vmul.f32 %v803_v30, %v3430_v8 }
  0x70   : > { %553 = vrot.lane.b32.xlu1 %v542_v32, %s3150_s23  ;;  %551 = vrot.lane.b32.xlu0 %v541_v33, %s3150_s23  ;;  %v804_v32 = vmul.f32 %v803_v30, %v3418_v0  ;;  %v807_v33 = vmul.f32 %v803_v30, %v3428_v5 }
  0x74   : > { %574 = vrot.lane.b32.xlu1 %v565_v35, %s3151_s4  ;;  %572 = vrot.lane.b32.xlu0 %v564_v36, %s3151_s4  ;;  %v828_v35 = vstv %s2830_s1  ;;  %s3577_s1 = sld [smem:[#allocation7 + $0x51]] }
  0x75   : > { %v830_v36 = vmul.f32 %v828_v35, %v3416_v62  ;;  %v831_v39 = vmul.f32 %v828_v35, %v3430_v8 }
  0x78   : > { %578 = vrot.lane.b32.xlu1 %v567_v37, %s3151_s4  ;;  %576 = vrot.lane.b32.xlu0 %v566_v38, %s3151_s4  ;;  %v829_v37 = vmul.f32 %v828_v35, %v3418_v0  ;;  %v832_v38 = vmul.f32 %v828_v35, %v3428_v5 }
  0x7c   : > { %599 = vrot.lane.b32.xlu1 %v590_v40, %s3151_s4  ;;  %597 = vrot.lane.b32.xlu0 %v589_v41, %s3151_s4  ;;  %v853_v40 = vstv %s2857_s21  ;;  %s3586_s21 = sld [smem:[#allocation7 + $0x39]] }
  0x7d   : > { %v855_v41 = vmul.f32 %v853_v40, %v3416_v62  ;;  %v856_v44 = vmul.f32 %v853_v40, %v3430_v8 }
  0x80   : > { %603 = vrot.lane.b32.xlu1 %v592_v42, %s3151_s4  ;;  %601 = vrot.lane.b32.xlu0 %v591_v43, %s3151_s4  ;;  %v854_v42 = vmul.f32 %v853_v40, %v3418_v0  ;;  %v857_v43 = vmul.f32 %v853_v40, %v3428_v5 }
  0x84   : > { %624 = vrot.lane.b32.xlu1 %v615_v45, %s3151_s4  ;;  %622 = vrot.lane.b32.xlu0 %v614_v46, %s3151_s4  ;;  %v878_v45 = vstv %s2884_s29  ;;  %s3601_s29 = sld [smem:[#allocation7 + $0x23]] }
  0x85   : > { %v879_v49 = vmul.f32 %v878_v45, %v3418_v0  ;;  %v881_v56 = vmul.f32 %v878_v45, %v3430_v8 }
  0x88   : > { %628 = vrot.lane.b32.xlu1 %v617_v47, %s3151_s4  ;;  %626 = vrot.lane.b32.xlu0 %v616_v48, %s3151_s4  ;;  %v880_v48 = vmul.f32 %v878_v45, %v3416_v62 }
  0x8c   : > { %649 = vrot.lane.b32.xlu1 %v640_v52, %s3151_s4  ;;  %647 = vrot.lane.b32.xlu0 %v639_v53, %s3151_s4  ;;  %v306_v52 = vld [vmem:[%s3298_s22 + $0x3e] sm:$0x3]  ;;  %v882_v53 = vmul.f32 %v878_v45, %v3428_v5 }
  0x8d   : > { %v309_v57 = vadd.f32 1.0, %v306_v52 }
  0x8f   : > { %313 = vst.msk [vmem:[#allocation2 + $0x48] sm:$0x3] %vm311_vm1, %v309_v57 }
  0x90   : > { %653 = vrot.lane.b32.xlu1 %v642_v58, %s3151_s4  ;;  %651 = vrot.lane.b32.xlu0 %v641_v59, %s3151_s4  ;;  %v3501_v58 = vld [vmem:[#allocation2 + $0xa] sm:$0xff]  ;;  %v943_v59 = vstv %s2805_s30  ;;  %s3621_s30 = sld [smem:[#allocation7 + $0x54]] }
  0x94   : > { %714 = vrot.lane.b32.xlu1 %v705_v1, %s3150_s23  ;;  %712 = vrot.lane.b32.xlu0 %v704_v4, %s3150_s23 }
  0x98   : > { %718 = vrot.lane.b32.xlu1 %v707_v9, %s3150_s23  ;;  %716 = vrot.lane.b32.xlu0 %v706_v10, %s3150_s23  ;;  %v945_v9 = vmul.f32 %v943_v59, %v3501_v58  ;;  %v944_v10 = vmul.f32 %v943_v59, %v3503_v63 }
  0x9c   : > { %739 = vrot.lane.b32.xlu1 %v730_v14, %s3150_s23  ;;  %737 = vrot.lane.b32.xlu0 %v729_v17, %s3150_s23  ;;  %v3516_v14 = vld [vmem:[#allocation2 + $0x12] sm:$0xff] }
  0x9d   : > { %v946_v20 = vmul.f32 %v943_v59, %v3516_v14 }
  0xa0   : > { %743 = vrot.lane.b32.xlu1 %v732_v18, %s3150_s23  ;;  %741 = vrot.lane.b32.xlu0 %v731_v19, %s3150_s23  ;;  %v947_v19 = vmul.f32 %v943_v59, %v3514_v13  ;;  %v1018_v59 = vstv %s2886_s11  ;;  %s2889_s11 = sld [smem:[#allocation7 + $0x5b]] }
  0xa4   : > { %764 = vrot.lane.b32.xlu1 %v755_v21, %s3150_s23  ;;  %762 = vrot.lane.b32.xlu0 %v754_v22, %s3150_s23  ;;  %v968_v21 = vstv %s2832_s26  ;;  %s3636_s26 = sld [smem:[#allocation7 + $0x3e]] }
  0xa5   : > { %v969_v25 = vmul.f32 %v968_v21, %v3503_v63  ;;  %v971_v30 = vmul.f32 %v968_v21, %v3516_v14 }
  0xa8   : > { %768 = vrot.lane.b32.xlu1 %v757_v23, %s3150_s23  ;;  %766 = vrot.lane.b32.xlu0 %v756_v24, %s3150_s23  ;;  %v970_v24 = vmul.f32 %v968_v21, %v3501_v58 }
  0xac   : > { %789 = vrot.lane.b32.xlu1 %v780_v26, %s3150_s23  ;;  %787 = vrot.lane.b32.xlu0 %v779_v27, %s3150_s23  ;;  %v427_v26 = vstv %s315_s27  ;;  %s2887_s27 = sld [smem:[#allocation7 + $0x59]] }
  0xb0   : > { %793 = vrot.lane.b32.xlu1 %v782_v28, %s3150_s23  ;;  %791 = vrot.lane.b32.xlu0 %v781_v29, %s3150_s23  ;;  %v972_v29 = vmul.f32 %v968_v21, %v3514_v13 }
  0xb4   : > { %814 = vrot.lane.b32.xlu1 %v805_v31, %s3151_s4  ;;  %812 = vrot.lane.b32.xlu0 %v804_v32, %s3151_s4  ;;  %v428_v31 = vmul.f32 %v427_v26, %v3332_v12  ;;  %v429_v32 = vmul.f32 %v427_v26, %v3338_v16 }
  0xb8   : > { %818 = vrot.lane.b32.xlu1 %v807_v33, %s3151_s4  ;;  %816 = vrot.lane.b32.xlu0 %v806_v34, %s3151_s4  ;;  %v993_v33 = vstv %s2859_s28  ;;  %s2808_s28 = sld [smem:[#allocation7 + $0xa]] }
  0xb9   : > { %v994_v40 = vmul.f32 %v993_v33, %v3503_v63  ;;  %v996_v57 = vmul.f32 %v993_v33, %v3516_v14 }
  0xbc   : > { %839 = vrot.lane.b32.xlu1 %v830_v36, %s3151_s4  ;;  %837 = vrot.lane.b32.xlu0 %v829_v37, %s3151_s4  ;;  %v430_v36 = vmul.f32 %v427_v26, %v3330_v11  ;;  %v436_v37 = vstv %s2825_s6  ;;  %s2835_s6 = sld [smem:[#allocation7 + $0x25]] }
  0xbd   : > { %v437_v52 = vmul.f32 %v436_v37, %v3332_v12 }
  0xc0   : > { %843 = vrot.lane.b32.xlu1 %v832_v38, %s3151_s4  ;;  %841 = vrot.lane.b32.xlu0 %v831_v39, %s3151_s4  ;;  %v431_v38 = vmul.f32 %v427_v26, %v3336_v15  ;;  %v995_v39 = vmul.f32 %v993_v33, %v3501_v58  ;;  %v445_v26 = vstv %s3544_s10  ;;  %s2809_s10 = sld [smem:[#allocation7 + $0xb]] }
  0xc4   : > { %864 = vrot.lane.b32.xlu1 %v855_v41, %s3151_s4  ;;  %862 = vrot.lane.b32.xlu0 %v854_v42, %s3151_s4  ;;  %v432_v41 = vadd.f32 1.0, %v428_v31  ;;  %v433_v42 = vadd.f32 1.0, %v429_v32  ;;  %v441_v31 = vadd.f32 1.0, %v437_v52  ;;  %v447_v52 = vmul.f32 %v445_v26, %v3338_v16 }
  0xc6   : > { %v3484_v46 = vpop.permute.xlu1 %476  ;;  %v3486_v47 = vpop.permute.xlu0 %472 }
  0xc8   : > { %868 = vrot.lane.b32.xlu1 %v857_v43, %s3151_s4  ;;  %866 = vrot.lane.b32.xlu0 %v856_v44, %s3151_s4  ;;  %v438_v43 = vmul.f32 %v436_v37, %v3338_v16 }
  0xca   : > { %v3492_v50 = vpop.permute.xlu1 %478  ;;  %v3494_v51 = vpop.permute.xlu0 %474  ;;  %v442_v21 = vadd.f32 1.0, %v438_v43 }
  0xcc   : > { %889 = vrot.lane.b32.xlu1 %v880_v48, %s3151_s4  ;;  %887 = vrot.lane.b32.xlu0 %v879_v49, %s3151_s4  ;;  %v667_v48 = vstv %s2801_s9  ;;  %v434_v49 = vadd.f32 1.0, %v430_v36  ;;  %s2862_s9 = sld [smem:[#allocation7 + $0x40]] }
  0xcd   : > { %v671_v36 = vmul.f32 %v667_v48, %v3428_v5 }
  0xce   : > { %v3505_v1 = vpop.permute.xlu1 %499  ;;  %v3507_v4 = vpop.permute.xlu0 %497 }
  0xd0   : > { %893 = vrot.lane.b32.xlu1 %v882_v53, %s3151_s4  ;;  %891 = vrot.lane.b32.xlu0 %v881_v56, %s3151_s4  ;;  %v435_v53 = vadd.f32 1.0, %v431_v38  ;;  %v997_v56 = vmul.f32 %v993_v33, %v3514_v13  ;;  %v1019_v33 = vmul.f32 %v1018_v59, %v3503_v63  ;;  %v676_v38 = vstv %s3556_s20  ;;  %s2836_s20 = sld [smem:[#allocation7 + $0x26]] }
  0xd2   : > { %v3518_v17 = vpop.permute.xlu1 %503  ;;  %v3520_v18 = vpop.permute.xlu0 %501 }
  0xd4   : > { %954 = vrot.lane.b32.xlu1 %v945_v9, %s3150_s23  ;;  %952 = vrot.lane.b32.xlu0 %v944_v10, %s3150_s23  ;;  %v484_v9 = vadd.f32 %v3486_v47, %v432_v41  ;;  %v485_v10 = vadd.f32 %v3494_v51, %v433_v42  ;;  %v1020_v51 = vmul.f32 %v1018_v59, %v3501_v58 }
  0xd6   : > { %v3526_v22 = vpop.permute.xlu1 %524  ;;  %v3528_v23 = vpop.permute.xlu0 %522 }
  0xd8   : > { %958 = vrot.lane.b32.xlu1 %v947_v19, %s3150_s23  ;;  %956 = vrot.lane.b32.xlu0 %v946_v20, %s3150_s23  ;;  %v669_v19 = vmul.f32 %v667_v48, %v3416_v62  ;;  %v668_v20 = vmul.f32 %v667_v48, %v3418_v0 }
  0xda   : > { %v3534_v27 = vpop.permute.xlu1 %528  ;;  %v3536_v28 = vpop.permute.xlu0 %526 }
  0xdc   : > { %979 = vrot.lane.b32.xlu1 %v970_v24, %s3150_s23  ;;  %977 = vrot.lane.b32.xlu0 %v969_v25, %s3150_s23  ;;  %v440_v24 = vmul.f32 %v436_v37, %v3336_v15  ;;  %v439_v25 = vmul.f32 %v436_v37, %v3330_v11  ;;  %v670_v37 = vmul.f32 %v667_v48, %v3430_v8 }
  0xde   : > { %v3546_v34 = vpop.permute.xlu1 %549  ;;  %v3548_v35 = vpop.permute.xlu0 %547  ;;  %v444_v43 = vadd.f32 1.0, %v440_v24  ;;  %v443_v48 = vadd.f32 1.0, %v439_v25 }
  0xe0   : > { %983 = vrot.lane.b32.xlu1 %v972_v29, %s3150_s23  ;;  %981 = vrot.lane.b32.xlu0 %v971_v30, %s3150_s23 }
  0xe2   : > { %v3559_v44 = vpop.permute.xlu1 %553  ;;  %v3561_v45 = vpop.permute.xlu0 %551 }
  0xe4   : > { %1004 = vrot.lane.b32.xlu1 %v995_v39, %s3150_s23  ;;  %1002 = vrot.lane.b32.xlu0 %v994_v40, %s3150_s23  ;;  %v486_v39 = vadd.f32 %v3484_v46, %v434_v49  ;;  %v487_v40 = vadd.f32 %v3492_v50, %v435_v53  ;;  %v1021_v46 = vmul.f32 %v1018_v59, %v3516_v14  ;;  %v1043_v50 = vstv %s3568_s19  ;;  %s2863_s19 = sld [smem:[#allocation7 + $0x41]] }
  0xe5   : > { %v678_v49 = vmul.f32 %v676_v38, %v3416_v62  ;;  %v677_v53 = vmul.f32 %v676_v38, %v3418_v0 }
  0xe6   : > { %v575_v29 = vpop.permute.xlu1 %574  ;;  %v573_v30 = vpop.permute.xlu0 %572 }
  0xe7   : > { %v585_v32 = vadd.f32 %v575_v29, %v485_v10  ;;  %v584_v47 = vadd.f32 %v573_v30, %v484_v9  ;;  %v1022_v30 = vmul.f32 %v1018_v59, %v3514_v13  ;;  %v449_v59 = vmul.f32 %v445_v26, %v3336_v15 }
  0xe8   : > { %1008 = vrot.lane.b32.xlu1 %v997_v56, %s3150_s23  ;;  %1006 = vrot.lane.b32.xlu0 %v996_v57, %s3150_s23  ;;  %v446_v56 = vmul.f32 %v445_v26, %v3332_v12 }
  0xe9   : > { %v3590_v41 = vadd.f32 %v669_v19, %v585_v32  ;;  %v3592_v42 = vadd.f32 %v668_v20, %v584_v47  ;;  %v510_v19 = vadd.f32 %v3505_v1, %v442_v21  ;;  %v509_v20 = vadd.f32 %v3507_v4, %v441_v31 }
  0xea   : > { %v579_v57 = vpop.permute.xlu1 %578  ;;  %v577_v9 = vpop.permute.xlu0 %576  ;;  %v451_v32 = vadd.f32 1.0, %v447_v52  ;;  %v450_v47 = vadd.f32 1.0, %v446_v56  ;;  %v1045_v1 = vmul.f32 %v1043_v50, %v3501_v58  ;;  %v1044_v4 = vmul.f32 %v1043_v50, %v3503_v63 }
  0xeb   : > { %v587_v10 = vadd.f32 %v579_v57, %v487_v40  ;;  %v586_v29 = vadd.f32 %v577_v9, %v486_v39  ;;  %v454_v40 = vstv %s3577_s1  ;;  %v680_v21 = vmul.f32 %v676_v38, %v3428_v5  ;;  %s2890_s1 = sld [smem:[#allocation7 + $0x5c]] }
  0xec   : > { %1029 = vrot.lane.b32.xlu1 %v1020_v51, %s3150_s23  ;;  %1027 = vrot.lane.b32.xlu0 %v1019_v33, %s3150_s23  ;;  %v448_v51 = vmul.f32 %v445_v26, %v3330_v11  ;;  %v679_v31 = vmul.f32 %v676_v38, %v3430_v8  ;;  %v512_v26 = vadd.f32 %v3518_v17, %v444_v43 }
  0xed   : > { %v3607_v24 = vadd.f32 %v671_v36, %v587_v10  ;;  %v3609_v25 = vadd.f32 %v670_v37, %v586_v29  ;;  %v685_v36 = vstv %s3586_s21  ;;  %v511_v37 = vadd.f32 %v3520_v18, %v443_v48  ;;  %s2811_s21 = sld [smem:[#allocation7 + $0xd]] }
  0xee   : > { %v600_v33 = vpop.permute.xlu1 %599  ;;  %v598_v39 = vpop.permute.xlu0 %597  ;;  %v453_v10 = vadd.f32 1.0, %v449_v59  ;;  %v452_v29 = vadd.f32 1.0, %v448_v51  ;;  %v455_v38 = vmul.f32 %v454_v40, %v3332_v12  ;;  %v1046_v17 = vmul.f32 %v1043_v50, %v3516_v14 }
  0xef   : > { %v610_v57 = vadd.f32 %v600_v33, %v510_v19  ;;  %v609_v9 = vadd.f32 %v598_v39, %v509_v20  ;;  %v1047_v39 = vmul.f32 %v1043_v50, %v3514_v13  ;;  %v1068_v18 = vstv %s3601_s29  ;;  %s2838_s29 = sld [smem:[#allocation7 + $0x28]] }
  0xf0   : > { %1033 = vrot.lane.b32.xlu1 %v1022_v30, %s3150_s23  ;;  %1031 = vrot.lane.b32.xlu0 %v1021_v46, %s3150_s23  ;;  %v456_v30 = vmul.f32 %v454_v40, %v3338_v16  ;;  %v687_v43 = vmul.f32 %v685_v36, %v3416_v62  ;;  %v686_v16 = vmul.f32 %v685_v36, %v3418_v0 }
  0xf1   : > { %v3625_v52 = vadd.f32 %v678_v49, %v610_v57  ;;  %v3627_v56 = vadd.f32 %v677_v53, %v609_v9  ;;  %v535_v48 = vadd.f32 %v3526_v22, %v451_v32  ;;  %v534_v12 = vadd.f32 %v3528_v23, %v450_v47 }
  0xf2   : > { %v604_v46 = vpop.permute.xlu1 %603  ;;  %v602_v19 = vpop.permute.xlu0 %601  ;;  %v460_v59 = vadd.f32 1.0, %v456_v30  ;;  %v458_v51 = vmul.f32 %v454_v40, %v3336_v15  ;;  %v457_v50 = vmul.f32 %v454_v40, %v3330_v11  ;;  %v1069_v22 = vmul.f32 %v1068_v18, %v3503_v63 }
  0xf3   : > { %v612_v20 = vadd.f32 %v604_v46, %v512_v26  ;;  %v611_v33 = vadd.f32 %v602_v19, %v511_v37  ;;  %v1070_v37 = vmul.f32 %v1068_v18, %v3501_v58  ;;  %v689_v23 = vmul.f32 %v685_v36, %v3428_v5 }
  0xf4   : > { %1054 = vrot.lane.b32.xlu1 %v1045_v1, %s3151_s4  ;;  %1052 = vrot.lane.b32.xlu0 %v1044_v4, %s3151_s4  ;;  %v459_v1 = vadd.f32 1.0, %v455_v38  ;;  %v688_v32 = vmul.f32 %v685_v36, %v3430_v8  ;;  %v694_v15 = vstv %s3621_s30  ;;  %v537_v11 = vadd.f32 %v3534_v27, %v453_v10  ;;  %s2865_s30 = sld [smem:[#allocation7 + $0x43]] }
  0xf5   : > { %v3642_v49 = vadd.f32 %v680_v21, %v612_v20  ;;  %v3644_v53 = vadd.f32 %v679_v31, %v611_v33  ;;  %v536_v47 = vadd.f32 %v3536_v28, %v452_v29  ;;  %v462_v31 = vadd.f32 1.0, %v458_v51 }
  0xf6   : > { %v625_v57 = vpop.permute.xlu1 %624  ;;  %v623_v9 = vpop.permute.xlu0 %622  ;;  %v461_v19 = vadd.f32 1.0, %v457_v50  ;;  %v1072_v33 = vmul.f32 %v1068_v18, %v3514_v13  ;;  %v1071_v27 = vmul.f32 %v1068_v18, %v3516_v14  ;;  %v1093_v36 = vstv %s3636_s26  ;;  %s2892_s26 = sld [smem:[#allocation7 + $0x5e]] }
  0xf7   : > { %v635_v4 = vadd.f32 %v625_v57, %v535_v48  ;;  %v634_v26 = vadd.f32 %v623_v9, %v534_v12  ;;  %v696_v28 = vmul.f32 %v694_v15, %v3416_v62  ;;  %v695_v10 = vmul.f32 %v694_v15, %v3418_v0 }
  0xf8   : > { %1058 = vrot.lane.b32.xlu1 %v1047_v39, %s3151_s4  ;;  %1056 = vrot.lane.b32.xlu0 %v1046_v17, %s3151_s4  ;;  %v560_v29 = vadd.f32 %v3546_v34, %v460_v59  ;;  %v559_v39 = vadd.f32 %v3548_v35, %v459_v1  ;;  %v1095_v18 = vmul.f32 %v1093_v36, %v3501_v58  ;;  %v1358_v55 = vstv %s2890_s1  ;;  %s2842_s1 = sld [smem:[#allocation7 + $0x2c]] }
  0xf9   : > { %v3657_v40 = vadd.f32 %v687_v43, %v635_v4  ;;  %v3659_v21 = vadd.f32 %v686_v16, %v634_v26  ;;  %v1094_v62 = vmul.f32 %v1093_v36, %v3503_v63  ;;  %v698_v0 = vmul.f32 %v694_v15, %v3428_v5 }
  0xfa   : > { %v629_v30 = vpop.permute.xlu1 %628  ;;  %v627_v46 = vpop.permute.xlu0 %626  ;;  %v697_v34 = vmul.f32 %v694_v15, %v3430_v8  ;;  %v562_v35 = vadd.f32 %v3559_v44, %v462_v31  ;;  %v561_v59 = vadd.f32 %v3561_v45, %v461_v19  ;;  %v1097_v5 = vmul.f32 %v1093_v36, %v3514_v13 }
  0xfb   : > { %v637_v38 = vadd.f32 %v629_v30, %v537_v11  ;;  %v636_v20 = vadd.f32 %v627_v46, %v536_v47  ;;  %v1096_v8 = vmul.f32 %v1093_v36, %v3516_v14  ;;  %v3710_v46 = vld [vmem:[#allocation2 + $0x30] sm:$0xff]  ;;  %v1183_v19 = vstv %s2808_s28  ;;  %s2839_s28 = sld [smem:[#allocation7 + $0x29]] }
  0xfc   : > { %1079 = vrot.lane.b32.xlu1 %v1070_v37, %s3151_s4  ;;  %1077 = vrot.lane.b32.xlu0 %v1069_v22, %s3151_s4  ;;  %v1118_v37 = vstv %s2887_s27  ;;  %v1423_v7 = vstv %s2811_s21  ;;  %s2812_s27 = sld [smem:[#allocation7 + $0xe]] }
  0xfd   : > { %v3670_v17 = vadd.f32 %v689_v23, %v637_v38  ;;  %v3672_v43 = vadd.f32 %v688_v32, %v636_v20  ;;  %v1120_v32 = vmul.f32 %v1118_v37, %v3501_v58  ;;  %v1119_v15 = vmul.f32 %v1118_v37, %v3503_v63  ;;  %v3712_v38 = vld [vmem:[#allocation2 + $0x28] sm:$0xff]  ;;  %s2869_s21 = sld [smem:[#allocation7 + $0x47]] }
  0xfe   : > { %v650_v16 = vpop.permute.xlu1 %649  ;;  %v648_v48 = vpop.permute.xlu0 %647  ;;  %v1122_v31 = vmul.f32 %v1118_v37, %v3514_v13  ;;  %v1121_v30 = vmul.f32 %v1118_v37, %v3516_v14  ;;  %v1185_v20 = vmul.f32 %v1183_v19, %v3710_v46  ;;  %v1184_v13 = vmul.f32 %v1183_v19, %v3712_v38  ;;  %v3724_v14 = vld [vmem:[#allocation2 + $0x38] sm:$0xff] }
  0xff   : > { %v660_v12 = vadd.f32 %v650_v16, %v560_v29  ;;  %v659_v51 = vadd.f32 %v648_v48, %v559_v39  ;;  %v1208_v29 = vstv %s2835_s6  ;;  %v1258_v37 = vstv %s2889_s11  ;;  %s2866_s6 = sld [smem:[#allocation7 + $0x44]] }
 0x100   : > { %1083 = vrot.lane.b32.xlu1 %v1072_v33, %s3151_s4  ;;  %1081 = vrot.lane.b32.xlu0 %v1071_v27, %s3151_s4  ;;  %v3722_v33 = vld [vmem:[#allocation2 + $0x40] sm:$0xff]  ;;  %v1210_v48 = vmul.f32 %v1208_v29, %v3710_v46  ;;  %s2814_s11 = sld [smem:[#allocation7 + $0x10]] }
 0x101   : > { %v3682_v50 = vadd.f32 %v696_v28, %v660_v12  ;;  %v3684_v57 = vadd.f32 %v695_v10, %v659_v51  ;;  %v1187_v28 = vmul.f32 %v1183_v19, %v3722_v33  ;;  %v1186_v10 = vmul.f32 %v1183_v19, %v3724_v14 }
 0x102   : > { %v654_v9 = vpop.permute.xlu1 %653  ;;  %v652_v1 = vpop.permute.xlu0 %651  ;;  %v1209_v12 = vmul.f32 %v1208_v29, %v3712_v38  ;;  %v1362_v6 = vmul.f32 %v1358_v55, %v3722_v33 }
 0x103   : > { %v662_v4 = vadd.f32 %v654_v9, %v562_v35  ;;  %v661_v26 = vadd.f32 %v652_v1, %v561_v59 }
 0x104   : > { %1104 = vrot.lane.b32.xlu1 %v1095_v18, %s3151_s4  ;;  %1102 = vrot.lane.b32.xlu0 %v1094_v62, %s3151_s4  ;;  %v1212_v62 = vmul.f32 %v1208_v29, %v3722_v33 }
 0x105   : > { %v3690_v44 = vadd.f32 %v698_v0, %v662_v4  ;;  %v3692_v45 = vadd.f32 %v697_v34, %v661_v26  ;;  %v1211_v0 = vmul.f32 %v1208_v29, %v3724_v14  ;;  %v1233_v34 = vstv %s2862_s9  ;;  %s2893_s9 = sld [smem:[#allocation7 + $0x5f]] }
 0x106   : > { %v3694_v22 = vpop.permute.xlu1 %714  ;;  %v3696_v23 = vpop.permute.xlu0 %712  ;;  %v1235_v9 = vmul.f32 %v1233_v34, %v3710_v46  ;;  %v1234_v1 = vmul.f32 %v1233_v34, %v3712_v38 }
 0x108   : > { %1108 = vrot.lane.b32.xlu1 %v1097_v5, %s3151_s4  ;;  %1106 = vrot.lane.b32.xlu0 %v1096_v8, %s3151_s4  ;;  %v1237_v5 = vmul.f32 %v1233_v34, %v3722_v33  ;;  %v1236_v8 = vmul.f32 %v1233_v34, %v3724_v14 }
 0x10a   : > { %v3702_v11 = vpop.permute.xlu1 %718  ;;  %v3704_v47 = vpop.permute.xlu0 %716 }
 0x10c   : > { %1129 = vrot.lane.b32.xlu1 %v1120_v32, %s3151_s4  ;;  %1127 = vrot.lane.b32.xlu0 %v1119_v15, %s3151_s4 }
 0x10e   : > { %v3714_v58 = vpop.permute.xlu1 %739  ;;  %v3716_v63 = vpop.permute.xlu0 %737 }
 0x110   : > { %1133 = vrot.lane.b32.xlu1 %v1122_v31, %s3151_s4  ;;  %1131 = vrot.lane.b32.xlu0 %v1121_v30, %s3151_s4  ;;  %v1260_v31 = vmul.f32 %v1258_v37, %v3710_v46  ;;  %v1259_v30 = vmul.f32 %v1258_v37, %v3712_v38 }
 0x112   : > { %v3726_v27 = vpop.permute.xlu1 %743  ;;  %v3728_v36 = vpop.permute.xlu0 %741 }
 0x114   : > { %1194 = vrot.lane.b32.xlu1 %v1185_v20, %s3150_s23  ;;  %1192 = vrot.lane.b32.xlu0 %v1184_v13, %s3150_s23  ;;  %v1262_v13 = vmul.f32 %v1258_v37, %v3722_v33 }
 0x116   : > { %v3734_v39 = vpop.permute.xlu1 %764  ;;  %v3736_v16 = vpop.permute.xlu0 %762 }
 0x118   : > { %1198 = vrot.lane.b32.xlu1 %v1187_v28, %s3150_s23  ;;  %1196 = vrot.lane.b32.xlu0 %v1186_v10, %s3150_s23  ;;  %v1261_v28 = vmul.f32 %v1258_v37, %v3724_v14  ;;  %v1283_v10 = vstv %s2809_s10  ;;  %s2841_s10 = sld [smem:[#allocation7 + $0x2b]] }
 0x11a   : > { %v3742_v51 = vpop.permute.xlu1 %768  ;;  %v3744_v18 = vpop.permute.xlu0 %766 }
 0x11c   : > { %1219 = vrot.lane.b32.xlu1 %v1210_v48, %s3150_s23  ;;  %1217 = vrot.lane.b32.xlu0 %v1209_v12, %s3150_s23  ;;  %v1285_v12 = vmul.f32 %v1283_v10, %v3710_v46 }
 0x11e   : > { %v3750_v35 = vpop.permute.xlu1 %789  ;;  %v3752_v59 = vpop.permute.xlu0 %787 }
 0x120   : > { %1223 = vrot.lane.b32.xlu1 %v1212_v62, %s3150_s23  ;;  %1221 = vrot.lane.b32.xlu0 %v1211_v0, %s3150_s23  ;;  %v1284_v62 = vmul.f32 %v1283_v10, %v3712_v38 }
 0x122   : > { %v3758_v4 = vpop.permute.xlu1 %793  ;;  %v3760_v26 = vpop.permute.xlu0 %791 }
 0x124   : > { %1244 = vrot.lane.b32.xlu1 %v1235_v9, %s3150_s23  ;;  %1242 = vrot.lane.b32.xlu0 %v1234_v1, %s3150_s23  ;;  %v1287_v9 = vmul.f32 %v1283_v10, %v3722_v33  ;;  %v1286_v1 = vmul.f32 %v1283_v10, %v3724_v14 }
 0x126   : > { %v3766_v32 = vpop.permute.xlu1 %814  ;;  %v3768_v15 = vpop.permute.xlu0 %812 }
 0x128   : > { %1248 = vrot.lane.b32.xlu1 %v1237_v5, %s3150_s23  ;;  %1246 = vrot.lane.b32.xlu0 %v1236_v8, %s3150_s23  ;;  %v1308_v5 = vstv %s2836_s20  ;;  %s2895_s20 = sld [smem:[#allocation7 + $0x61]] }
 0x129   : > { %v1312_v10 = vmul.f32 %v1308_v5, %v3722_v33 }
 0x12a   : > { %v3774_v19 = vpop.permute.xlu1 %818  ;;  %v3776_v20 = vpop.permute.xlu0 %816 }
 0x12b   : > { %5509 = vst [vmem:[#allocation20_spill] sm:$0xff] %v3776_v20 }
 0x12c   : > { %1269 = vrot.lane.b32.xlu1 %v1260_v31, %s3150_s23  ;;  %1267 = vrot.lane.b32.xlu0 %v1259_v30, %s3150_s23  ;;  %v1310_v31 = vmul.f32 %v1308_v5, %v3710_v46  ;;  %v1309_v30 = vmul.f32 %v1308_v5, %v3712_v38 }
 0x12e   : > { %v3782_v29 = vpop.permute.xlu1 %839  ;;  %v3784_v48 = vpop.permute.xlu0 %837 }
 0x12f   : > { %5510 = vst [vmem:[#allocation21_spill] sm:$0xff] %v3782_v29  ;;  %5511 = vst [vmem:[#allocation22_spill] sm:$0xff] %v3784_v48 }
 0x130   : > { %1273 = vrot.lane.b32.xlu1 %v1262_v13, %s3150_s23  ;;  %1271 = vrot.lane.b32.xlu0 %v1261_v28, %s3150_s23 }
 0x132   : > { %v3790_v0 = vpop.permute.xlu1 %843  ;;  %v3792_v34 = vpop.permute.xlu0 %841 }
 0x133   : > { %5512 = vst [vmem:[#allocation23_spill] sm:$0xff] %v3790_v0  ;;  %5513 = vst [vmem:[#allocation24_spill] sm:$0xff] %v3792_v34  ;;  %v3008_v0 = vld [vmem:[#allocation2 + $0x12] sm:$0xff] }
 0x134   : > { %1294 = vrot.lane.b32.xlu1 %v1285_v12, %s3151_s4  ;;  %1292 = vrot.lane.b32.xlu0 %v1284_v62, %s3151_s4  ;;  %v1311_v12 = vmul.f32 %v1308_v5, %v3724_v14  ;;  %v1333_v62 = vstv %s2863_s19  ;;  %s2815_s19 = sld [smem:[#allocation7 + $0x11]] }
 0x135   : > { %v1337_v5 = vmul.f32 %v1333_v62, %v3722_v33  ;;  %v1336_v54 = vmul.f32 %v1333_v62, %v3724_v14 }
 0x136   : > { %v3798_v8 = vpop.permute.xlu1 %864  ;;  %v3800_v37 = vpop.permute.xlu0 %862 }
 0x137   : > { %5514 = vst [vmem:[#allocation25_spill] sm:$0xff] %v3798_v8  ;;  %5515 = vst [vmem:[#allocation26_spill] sm:$0xff] %v3800_v37  ;;  %v3006_v37 = vld [vmem:[#allocation2 + $0x2] sm:$0xff] }
 0x138   : > { %1298 = vrot.lane.b32.xlu1 %v1287_v9, %s3151_s4  ;;  %1296 = vrot.lane.b32.xlu0 %v1286_v1, %s3151_s4 }
 0x13a   : > { %v3806_v13 = vpop.permute.xlu1 %868  ;;  %v3808_v28 = vpop.permute.xlu0 %866 }
 0x13b   : > { %5516 = vst [vmem:[#allocation27_spill] sm:$0xff] %v3806_v13  ;;  %5517 = vst [vmem:[#allocation28_spill] sm:$0xff] %v3808_v28 }
 0x13c   : > { %1319 = vrot.lane.b32.xlu1 %v1310_v31, %s3151_s4  ;;  %1317 = vrot.lane.b32.xlu0 %v1309_v30, %s3151_s4  ;;  %v1335_v31 = vmul.f32 %v1333_v62, %v3710_v46  ;;  %v1334_v30 = vmul.f32 %v1333_v62, %v3712_v38  ;;  %v3842_v62 = vadd.f32 1.0, %v2791_v2  ;;  %v1361_v2 = vmul.f32 %v1358_v55, %v3724_v14 }
 0x13e   : > { %v3814_v9 = vpop.permute.xlu1 %889  ;;  %v3816_v1 = vpop.permute.xlu0 %887  ;;  %5525 = vst [vmem:[#allocation36_spill] sm:$0xff] %v3842_v62  ;;  %297 = vst.msk [vmem:[#allocation2 + $0x50] sm:$0xff] %vm252_vm0, %v3842_v62 }
 0x13f   : > { %5518 = vst [vmem:[#allocation29_spill] sm:$0xff] %v3814_v9  ;;  %5519 = vst [vmem:[#allocation30_spill] sm:$0xff] %v3816_v1  ;;  %v307_v1 = vld [vmem:[%s3298_s22 + $0x5e] sm:$0x3]  ;;  %v4005_v9 = vld [vmem:[#allocation2 + $0x2a] sm:$0xff] }
 0x140   : > { %1323 = vrot.lane.b32.xlu1 %v1312_v10, %s3151_s4  ;;  %1321 = vrot.lane.b32.xlu0 %v1311_v12, %s3151_s4  ;;  %5567 = vst [vmem:[#allocation78_spill] sm:$0xff] %v4005_v9 }
 0x142   : > { %v3822_v60 = vpop.permute.xlu1 %893  ;;  %v3824_v61 = vpop.permute.xlu0 %891 }
 0x143   : > { %5520 = vst [vmem:[#allocation31_spill] sm:$0xff] %v3822_v60  ;;  %5521 = vst [vmem:[#allocation32_spill] sm:$0xff] %v3824_v61 }
 0x144   : > { %1344 = vrot.lane.b32.xlu1 %v1335_v31, %s3151_s4  ;;  %1342 = vrot.lane.b32.xlu0 %v1334_v30, %s3151_s4  ;;  %v1360_v31 = vmul.f32 %v1358_v55, %v3710_v46  ;;  %v1359_v30 = vmul.f32 %v1358_v55, %v3712_v38 }
 0x146   : > { %v3830_v10 = vpop.permute.xlu1 %954  ;;  %v3832_v12 = vpop.permute.xlu0 %952 }
 0x147   : > { %5522 = vst [vmem:[#allocation33_spill] sm:$0xff] %v3830_v10  ;;  %5523 = vst [vmem:[#allocation34_spill] sm:$0xff] %v3832_v12  ;;  %v3864_v10 = vld [vmem:[#allocation2 + $0x29] sm:$0xff] }
 0x148   : > { %1348 = vrot.lane.b32.xlu1 %v1337_v5, %s3151_s4  ;;  %1346 = vrot.lane.b32.xlu0 %v1336_v54, %s3151_s4  ;;  %v2794_v5 = vld [vmem:[%s3298_s22 + $0x58] sm:$0xff]  ;;  %v2793_v54 = vld [vmem:[%s3298_s22 + $0x50] sm:$0xff]  ;;  %5531 = vst [vmem:[#allocation42_spill] sm:$0xff] %v3864_v10  ;;  %s2868_s22 = sld [smem:[#allocation7 + $0x46]] }
 0x149   : > { %v3858_v12 = vadd.f32 1.0, %v2794_v5  ;;  %v3880_v5 = vld [vmem:[#allocation2 + $0x39] sm:$0xff] }
 0x14a   : > { %v3844_v3 = vpop.permute.xlu1 %958  ;;  %v3846_v61 = vpop.permute.xlu0 %956  ;;  %5535 = vst [vmem:[#allocation46_spill] sm:$0xff] %v3880_v5 }
 0x14b   : > { %5526 = vst [vmem:[#allocation37_spill] sm:$0xff] %v3844_v3  ;;  %5527 = vst [vmem:[#allocation38_spill] sm:$0xff] %v3846_v61  ;;  %v3860_v3 = vadd.f32 1.0, %v2793_v54  ;;  %v3862_v61 = vld [vmem:[#allocation2 + $0x31] sm:$0xff] }
 0x14c   : > { %1369 = vrot.lane.b32.xlu1 %v1360_v31, %s3151_s4  ;;  %1367 = vrot.lane.b32.xlu0 %v1359_v30, %s3151_s4  ;;  %5528 = vst [vmem:[#allocation39_spill] sm:$0xff] %v3858_v12  ;;  %5530 = vst [vmem:[#allocation41_spill] sm:$0xff] %v3862_v61  ;;  %v1425_v55 = vmul.f32 %v1423_v7, %v3862_v61  ;;  %v1424_v31 = vmul.f32 %v1423_v7, %v3864_v10  ;;  %v3878_v30 = vld [vmem:[#allocation2 + $0x41] sm:$0xff] }
 0x14d   : > { %5529 = vst [vmem:[#allocation40_spill] sm:$0xff] %v3860_v3  ;;  %300 = vst.msk [vmem:[#allocation2 + $0x68] sm:$0xff] %vm252_vm0, %v3858_v12  ;;  %v1448_v12 = vstv %s2838_s29  ;;  %s2896_s29 = sld [smem:[#allocation7 + $0x62]] }
 0x14e   : > { %v3866_v62 = vpop.permute.xlu1 %979  ;;  %v3868_v60 = vpop.permute.xlu0 %977  ;;  %299 = vst.msk [vmem:[#allocation2 + $0x60] sm:$0xff] %vm252_vm0, %v3860_v3  ;;  %5534 = vst [vmem:[#allocation45_spill] sm:$0xff] %v3878_v30 }
 0x14f   : > { %5532 = vst [vmem:[#allocation43_spill] sm:$0xff] %v3866_v62  ;;  %5533 = vst [vmem:[#allocation44_spill] sm:$0xff] %v3868_v60 }
 0x150   : > { %1373 = vrot.lane.b32.xlu1 %v1362_v6, %s3151_s4  ;;  %1371 = vrot.lane.b32.xlu0 %v1361_v2, %s3151_s4  ;;  %v1427_v6 = vmul.f32 %v1423_v7, %v3878_v30  ;;  %v1426_v2 = vmul.f32 %v1423_v7, %v3880_v5  ;;  %v1452_v7 = vmul.f32 %v1448_v12, %v3878_v30 }
 0x152   : > { %v3882_v54 = vpop.permute.xlu1 %983  ;;  %v3884_v60 = vpop.permute.xlu0 %981 }
 0x153   : > { %5536 = vst [vmem:[#allocation47_spill] sm:$0xff] %v3882_v54  ;;  %5537 = vst [vmem:[#allocation48_spill] sm:$0xff] %v3884_v60  ;;  %v1450_v60 = vmul.f32 %v1448_v12, %v3862_v61 }
 0x154   : > { %1434 = vrot.lane.b32.xlu1 %v1425_v55, %s3150_s23  ;;  %1432 = vrot.lane.b32.xlu0 %v1424_v31, %s3150_s23  ;;  %v1449_v55 = vmul.f32 %v1448_v12, %v3864_v10 }
 0x156   : > { %v3890_v3 = vpop.permute.xlu1 %1004  ;;  %v3892_v62 = vpop.permute.xlu0 %1002 }
 0x157   : > { %5538 = vst [vmem:[#allocation49_spill] sm:$0xff] %v3890_v3  ;;  %5539 = vst [vmem:[#allocation50_spill] sm:$0xff] %v3892_v62  ;;  %v1451_v62 = vmul.f32 %v1448_v12, %v3880_v5  ;;  %v1473_v3 = vstv %s2865_s30  ;;  %s2817_s30 = sld [smem:[#allocation7 + $0x13]] }
 0x158   : > { %1438 = vrot.lane.b32.xlu1 %v1427_v6, %s3150_s23  ;;  %1436 = vrot.lane.b32.xlu0 %v1426_v2, %s3150_s23  ;;  %v1477_v12 = vmul.f32 %v1473_v3, %v3878_v30 }
 0x15a   : > { %v3898_v54 = vpop.permute.xlu1 %1008  ;;  %v3900_v31 = vpop.permute.xlu0 %1006 }
 0x15b   : > { %5540 = vst [vmem:[#allocation51_spill] sm:$0xff] %v3898_v54  ;;  %5541 = vst [vmem:[#allocation52_spill] sm:$0xff] %v3900_v31  ;;  %v1475_v31 = vmul.f32 %v1473_v3, %v3862_v61 }
 0x15c   : > { %1459 = vrot.lane.b32.xlu1 %v1450_v60, %s3150_s23  ;;  %1457 = vrot.lane.b32.xlu0 %v1449_v55, %s3150_s23  ;;  %v1474_v60 = vmul.f32 %v1473_v3, %v3864_v10 }
 0x15e   : > { %v3906_v6 = vpop.permute.xlu1 %1029  ;;  %v3908_v2 = vpop.permute.xlu0 %1027 }
 0x15f   : > { %5542 = vst [vmem:[#allocation53_spill] sm:$0xff] %v3906_v6  ;;  %5543 = vst [vmem:[#allocation54_spill] sm:$0xff] %v3908_v2  ;;  %v1476_v2 = vmul.f32 %v1473_v3, %v3880_v5  ;;  %v1498_v6 = vstv %s2892_s26  ;;  %s2844_s26 = sld [smem:[#allocation7 + $0x2e]] }
 0x160   : > { %1463 = vrot.lane.b32.xlu1 %v1452_v7, %s3150_s23  ;;  %1461 = vrot.lane.b32.xlu0 %v1451_v62, %s3150_s23  ;;  %v1502_v3 = vmul.f32 %v1498_v6, %v3878_v30 }
 0x162   : > { %v3914_v54 = vpop.permute.xlu1 %1033  ;;  %v3916_v55 = vpop.permute.xlu0 %1031 }
 0x163   : > { %5544 = vst [vmem:[#allocation55_spill] sm:$0xff] %v3914_v54  ;;  %5545 = vst [vmem:[#allocation56_spill] sm:$0xff] %v3916_v55  ;;  %v1500_v55 = vmul.f32 %v1498_v6, %v3862_v61 }
 0x164   : > { %1484 = vrot.lane.b32.xlu1 %v1475_v31, %s3150_s23  ;;  %1482 = vrot.lane.b32.xlu0 %v1474_v60, %s3150_s23  ;;  %v1499_v31 = vmul.f32 %v1498_v6, %v3864_v10 }
 0x166   : > { %v3922_v7 = vpop.permute.xlu1 %1054  ;;  %v3924_v62 = vpop.permute.xlu0 %1052 }
 0x167   : > { %5546 = vst [vmem:[#allocation57_spill] sm:$0xff] %v3922_v7  ;;  %5547 = vst [vmem:[#allocation58_spill] sm:$0xff] %v3924_v62  ;;  %v1501_v62 = vmul.f32 %v1498_v6, %v3880_v5  ;;  %v1523_v7 = vstv %s2812_s27  ;;  %s2871_s27 = sld [smem:[#allocation7 + $0x49]] }
 0x168   : > { %1488 = vrot.lane.b32.xlu1 %v1477_v12, %s3150_s23  ;;  %1486 = vrot.lane.b32.xlu0 %v1476_v2, %s3150_s23  ;;  %v1527_v6 = vmul.f32 %v1523_v7, %v3878_v30 }
 0x16a   : > { %v3930_v54 = vpop.permute.xlu1 %1058  ;;  %v3932_v60 = vpop.permute.xlu0 %1056 }
 0x16b   : > { %5548 = vst [vmem:[#allocation59_spill] sm:$0xff] %v3930_v54  ;;  %5549 = vst [vmem:[#allocation60_spill] sm:$0xff] %v3932_v60  ;;  %v1525_v60 = vmul.f32 %v1523_v7, %v3862_v61 }
 0x16c   : > { %1509 = vrot.lane.b32.xlu1 %v1500_v55, %s3150_s23  ;;  %1507 = vrot.lane.b32.xlu0 %v1499_v31, %s3150_s23  ;;  %v1524_v55 = vmul.f32 %v1523_v7, %v3864_v10 }
 0x16e   : > { %v3938_v12 = vpop.permute.xlu1 %1079  ;;  %v3940_v2 = vpop.permute.xlu0 %1077 }
 0x16f   : > { %5550 = vst [vmem:[#allocation61_spill] sm:$0xff] %v3938_v12  ;;  %5551 = vst [vmem:[#allocation62_spill] sm:$0xff] %v3940_v2  ;;  %v1526_v2 = vmul.f32 %v1523_v7, %v3880_v5  ;;  %v1548_v12 = vstv %s2839_s28  ;;  %s2898_s28 = sld [smem:[#allocation7 + $0x64]] }
 0x170   : > { %1513 = vrot.lane.b32.xlu1 %v1502_v3, %s3150_s23  ;;  %1511 = vrot.lane.b32.xlu0 %v1501_v62, %s3150_s23  ;;  %v1552_v7 = vmul.f32 %v1548_v12, %v3878_v30 }
 0x172   : > { %v3946_v54 = vpop.permute.xlu1 %1083  ;;  %v3948_v31 = vpop.permute.xlu0 %1081 }
 0x173   : > { %5552 = vst [vmem:[#allocation63_spill] sm:$0xff] %v3946_v54  ;;  %5553 = vst [vmem:[#allocation64_spill] sm:$0xff] %v3948_v31  ;;  %v1550_v31 = vmul.f32 %v1548_v12, %v3862_v61 }
 0x174   : > { %1534 = vrot.lane.b32.xlu1 %v1525_v60, %s3151_s4  ;;  %1532 = vrot.lane.b32.xlu0 %v1524_v55, %s3151_s4  ;;  %v1549_v60 = vmul.f32 %v1548_v12, %v3864_v10 }
 0x176   : > { %v3954_v3 = vpop.permute.xlu1 %1104  ;;  %v3956_v62 = vpop.permute.xlu0 %1102 }
 0x177   : > { %5554 = vst [vmem:[#allocation65_spill] sm:$0xff] %v3954_v3  ;;  %5555 = vst [vmem:[#allocation66_spill] sm:$0xff] %v3956_v62  ;;  %v1551_v62 = vmul.f32 %v1548_v12, %v3880_v5  ;;  %v1573_v3 = vstv %s2866_s6  ;;  %s2804_s6 = sld [smem:[#allocation7 + $0x6]] }
 0x178   : > { %1538 = vrot.lane.b32.xlu1 %v1527_v6, %s3151_s4  ;;  %1536 = vrot.lane.b32.xlu0 %v1526_v2, %s3151_s4  ;;  %v1577_v12 = vmul.f32 %v1573_v3, %v3878_v30 }
 0x17a   : > { %v3962_v54 = vpop.permute.xlu1 %1108  ;;  %v3964_v55 = vpop.permute.xlu0 %1106 }
 0x17b   : > { %5556 = vst [vmem:[#allocation67_spill] sm:$0xff] %v3962_v54  ;;  %5557 = vst [vmem:[#allocation68_spill] sm:$0xff] %v3964_v55  ;;  %v1575_v55 = vmul.f32 %v1573_v3, %v3862_v61 }
 0x17c   : > { %1559 = vrot.lane.b32.xlu1 %v1550_v31, %s3151_s4  ;;  %1557 = vrot.lane.b32.xlu0 %v1549_v60, %s3151_s4  ;;  %v1574_v31 = vmul.f32 %v1573_v3, %v3864_v10 }
 0x17e   : > { %v3970_v6 = vpop.permute.xlu1 %1129  ;;  %v3972_v2 = vpop.permute.xlu0 %1127 }
 0x17f   : > { %5558 = vst [vmem:[#allocation69_spill] sm:$0xff] %v3970_v6  ;;  %5559 = vst [vmem:[#allocation70_spill] sm:$0xff] %v3972_v2  ;;  %v1576_v2 = vmul.f32 %v1573_v3, %v3880_v5 }
 0x180   : > { %1563 = vrot.lane.b32.xlu1 %v1552_v7, %s3151_s4  ;;  %1561 = vrot.lane.b32.xlu0 %v1551_v62, %s3151_s4  ;;  %v1598_v7 = vstv %s2893_s9  ;;  %s2831_s9 = sld [smem:[#allocation7 + $0x21]] }
 0x181   : > { %v1602_v3 = vmul.f32 %v1598_v7, %v3878_v30 }
 0x182   : > { %v3978_v54 = vpop.permute.xlu1 %1133  ;;  %v3980_v60 = vpop.permute.xlu0 %1131 }
 0x183   : > { %5560 = vst [vmem:[#allocation71_spill] sm:$0xff] %v3978_v54  ;;  %5561 = vst [vmem:[#allocation72_spill] sm:$0xff] %v3980_v60  ;;  %v1600_v60 = vmul.f32 %v1598_v7, %v3862_v61 }
 0x184   : > { %1584 = vrot.lane.b32.xlu1 %v1575_v55, %s3151_s4  ;;  %1582 = vrot.lane.b32.xlu0 %v1574_v31, %s3151_s4  ;;  %v1599_v55 = vmul.f32 %v1598_v7, %v3864_v10 }
 0x186   : > { %v3986_v62 = vpop.permute.xlu1 %1194  ;;  %v3988_v6 = vpop.permute.xlu0 %1192 }
 0x187   : > { %5562 = vst [vmem:[#allocation73_spill] sm:$0xff] %v3986_v62  ;;  %5563 = vst [vmem:[#allocation74_spill] sm:$0xff] %v3988_v6  ;;  %v1601_v6 = vmul.f32 %v1598_v7, %v3880_v5  ;;  %v4003_v62 = vld [vmem:[#allocation2 + $0x32] sm:$0xff]  ;;  %v4016_v7 = vld [vmem:[#allocation2 + $0x42] sm:$0xff] }
 0x188   : > { %1588 = vrot.lane.b32.xlu1 %v1577_v12, %s3151_s4  ;;  %1586 = vrot.lane.b32.xlu0 %v1576_v2, %s3151_s4  ;;  %v310_v12 = vadd.f32 1.0, %v307_v1  ;;  %5566 = vst [vmem:[#allocation77_spill] sm:$0xff] %v4003_v62  ;;  %v1663_v2 = vstv %s2814_s11  ;;  %5570 = vst [vmem:[#allocation81_spill] sm:$0xff] %v4016_v7  ;;  %s2818_s11 = sld [smem:[#allocation7 + $0x14]] }
 0x189   : > { %v1664_v1 = vmul.f32 %v1663_v2, %v4005_v9 }
 0x18a   : > { %v3994_v54 = vpop.permute.xlu1 %1198  ;;  %v3996_v31 = vpop.permute.xlu0 %1196  ;;  %314 = vst.msk [vmem:[#allocation2 + $0x70] sm:$0x3] %vm311_vm1, %v310_v12  ;;  %v1688_v12 = vstv %s2841_s10  ;;  %s2858_s10 = sld [smem:[#allocation7 + $0x3c]] }
 0x18b   : > { %5564 = vst [vmem:[#allocation75_spill] sm:$0xff] %v3994_v54  ;;  %5565 = vst [vmem:[#allocation76_spill] sm:$0xff] %v3996_v31 }
 0x18c   : > { %1609 = vrot.lane.b32.xlu1 %v1600_v60, %s3151_s4  ;;  %1607 = vrot.lane.b32.xlu0 %v1599_v55, %s3151_s4  ;;  %v1665_v60 = vmul.f32 %v1663_v2, %v4003_v62  ;;  %v4018_v55 = vld [vmem:[#allocation2 + $0x3a] sm:$0xff] }
 0x18d   : > { %5571 = vst [vmem:[#allocation82_spill] sm:$0xff] %v4018_v55 }
 0x18e   : > { %v4007_v28 = vpop.permute.xlu1 %1219  ;;  %v4009_v54 = vpop.permute.xlu0 %1217 }
 0x18f   : > { %5568 = vst [vmem:[#allocation79_spill] sm:$0xff] %v4007_v28  ;;  %5569 = vst [vmem:[#allocation80_spill] sm:$0xff] %v4009_v54 }
 0x190   : > { %1613 = vrot.lane.b32.xlu1 %v1602_v3, %s3151_s4  ;;  %1611 = vrot.lane.b32.xlu0 %v1601_v6, %s3151_s4  ;;  %v1667_v3 = vmul.f32 %v1663_v2, %v4016_v7  ;;  %v1666_v6 = vmul.f32 %v1663_v2, %v4018_v55  ;;  %v1692_v2 = vmul.f32 %v1688_v12, %v4016_v7  ;;  %v925_v34 = vstv %s2858_s10  ;;  %s4480_s10 = sld [smem:[#allocation7 + $0xf]] }
 0x192   : > { %v4020_v31 = vpop.permute.xlu1 %1223  ;;  %v4022_v13 = vpop.permute.xlu0 %1221 }
 0x193   : > { %5572 = vst [vmem:[#allocation83_spill] sm:$0xff] %v4020_v31  ;;  %5573 = vst [vmem:[#allocation84_spill] sm:$0xff] %v4022_v13  ;;  %v1690_v13 = vmul.f32 %v1688_v12, %v4003_v62 }
 0x194   : > { %1674 = vrot.lane.b32.xlu1 %v1665_v60, %s3150_s23  ;;  %1672 = vrot.lane.b32.xlu0 %v1664_v1, %s3150_s23  ;;  %v1689_v60 = vmul.f32 %v1688_v12, %v4005_v9 }
 0x196   : > { %v4028_v54 = vpop.permute.xlu1 %1244  ;;  %v4030_v28 = vpop.permute.xlu0 %1242 }
 0x197   : > { %5574 = vst [vmem:[#allocation85_spill] sm:$0xff] %v4028_v54  ;;  %5575 = vst [vmem:[#allocation86_spill] sm:$0xff] %v4030_v28  ;;  %v1691_v28 = vmul.f32 %v1688_v12, %v4018_v55  ;;  %v1713_v54 = vstv %s2868_s22  ;;  %s4200_s22 = sld [smem:[#allocation7 + $0x57]] }
 0x198   : > { %1678 = vrot.lane.b32.xlu1 %v1667_v3, %s3150_s23  ;;  %1676 = vrot.lane.b32.xlu0 %v1666_v6, %s3150_s23  ;;  %v1717_v12 = vmul.f32 %v1713_v54, %v4016_v7 }
 0x19a   : > { %v4036_v31 = vpop.permute.xlu1 %1248  ;;  %v4038_v1 = vpop.permute.xlu0 %1246 }
 0x19b   : > { %5576 = vst [vmem:[#allocation87_spill] sm:$0xff] %v4036_v31  ;;  %5577 = vst [vmem:[#allocation88_spill] sm:$0xff] %v4038_v1  ;;  %v1715_v1 = vmul.f32 %v1713_v54, %v4003_v62 }
 0x19c   : > { %1699 = vrot.lane.b32.xlu1 %v1690_v13, %s3150_s23  ;;  %1697 = vrot.lane.b32.xlu0 %v1689_v60, %s3150_s23  ;;  %v1714_v13 = vmul.f32 %v1713_v54, %v4005_v9 }
 0x19d   : > { %v934_v10 = vstv %s4200_s22  ;;  %s4519_s22 = sld [smem:[#allocation7 + $0x31]] }
 0x19e   : > { %v4044_v3 = vpop.permute.xlu1 %1269  ;;  %v4046_v6 = vpop.permute.xlu0 %1267 }
 0x19f   : > { %5578 = vst [vmem:[#allocation89_spill] sm:$0xff] %v4044_v3  ;;  %5579 = vst [vmem:[#allocation90_spill] sm:$0xff] %v4046_v6  ;;  %v1716_v6 = vmul.f32 %v1713_v54, %v4018_v55  ;;  %v1738_v3 = vstv %s2895_s20  ;;  %s4202_s20 = sld [smem:[#allocation7 + $0x9]] }
 0x1a0   : > { %1703 = vrot.lane.b32.xlu1 %v1692_v2, %s3150_s23  ;;  %1701 = vrot.lane.b32.xlu0 %v1691_v28, %s3150_s23  ;;  %v1742_v54 = vmul.f32 %v1738_v3, %v4016_v7 }
 0x1a2   : > { %v4052_v31 = vpop.permute.xlu1 %1273  ;;  %v4054_v60 = vpop.permute.xlu0 %1271 }
 0x1a3   : > { %5580 = vst [vmem:[#allocation91_spill] sm:$0xff] %v4052_v31  ;;  %5581 = vst [vmem:[#allocation92_spill] sm:$0xff] %v4054_v60  ;;  %v1740_v60 = vmul.f32 %v1738_v3, %v4003_v62 }
 0x1a4   : > { %1724 = vrot.lane.b32.xlu1 %v1715_v1, %s3150_s23  ;;  %1722 = vrot.lane.b32.xlu0 %v1714_v13, %s3150_s23  ;;  %v1739_v1 = vmul.f32 %v1738_v3, %v4005_v9 }
 0x1a6   : > { %v4060_v2 = vpop.permute.xlu1 %1294  ;;  %v4062_v28 = vpop.permute.xlu0 %1292 }
 0x1a7   : > { %5582 = vst [vmem:[#allocation93_spill] sm:$0xff] %v4060_v2  ;;  %5583 = vst [vmem:[#allocation94_spill] sm:$0xff] %v4062_v28  ;;  %v1741_v28 = vmul.f32 %v1738_v3, %v4018_v55  ;;  %v1763_v2 = vstv %s2815_s19  ;;  %s4208_s19 = sld [smem:[#allocation7 + $0x24]] }
 0x1a8   : > { %1728 = vrot.lane.b32.xlu1 %v1717_v12, %s3150_s23  ;;  %1726 = vrot.lane.b32.xlu0 %v1716_v6, %s3150_s23  ;;  %v1767_v3 = vmul.f32 %v1763_v2, %v4016_v7 }
 0x1aa   : > { %v4068_v31 = vpop.permute.xlu1 %1298  ;;  %v4070_v13 = vpop.permute.xlu0 %1296 }
 0x1ab   : > { %5584 = vst [vmem:[#allocation95_spill] sm:$0xff] %v4068_v31  ;;  %5585 = vst [vmem:[#allocation96_spill] sm:$0xff] %v4070_v13  ;;  %v1765_v13 = vmul.f32 %v1763_v2, %v4003_v62 }
 0x1ac   : > { %1749 = vrot.lane.b32.xlu1 %v1740_v60, %s3150_s23  ;;  %1747 = vrot.lane.b32.xlu0 %v1739_v1, %s3150_s23  ;;  %v1764_v60 = vmul.f32 %v1763_v2, %v4005_v9 }
 0x1ae   : > { %v4076_v12 = vpop.permute.xlu1 %1319  ;;  %v4078_v6 = vpop.permute.xlu0 %1317 }
 0x1af   : > { %5586 = vst [vmem:[#allocation97_spill] sm:$0xff] %v4076_v12  ;;  %5587 = vst [vmem:[#allocation98_spill] sm:$0xff] %v4078_v6  ;;  %v1766_v6 = vmul.f32 %v1763_v2, %v4018_v55  ;;  %v1788_v12 = vstv %s2842_s1  ;;  %s4214_s1 = sld [smem:[#allocation7 + $0x3f]] }
 0x1b0   : > { %1753 = vrot.lane.b32.xlu1 %v1742_v54, %s3150_s23  ;;  %1751 = vrot.lane.b32.xlu0 %v1741_v28, %s3150_s23  ;;  %v1792_v2 = vmul.f32 %v1788_v12, %v4016_v7 }
 0x1b2   : > { %v4084_v31 = vpop.permute.xlu1 %1323  ;;  %v4086_v1 = vpop.permute.xlu0 %1321 }
 0x1b3   : > { %5588 = vst [vmem:[#allocation99_spill] sm:$0xff] %v4084_v31  ;;  %5589 = vst [vmem:[#allocation100_spill] sm:$0xff] %v4086_v1  ;;  %v1790_v1 = vmul.f32 %v1788_v12, %v4003_v62 }
 0x1b4   : > { %1774 = vrot.lane.b32.xlu1 %v1765_v13, %s3151_s4  ;;  %1772 = vrot.lane.b32.xlu0 %v1764_v60, %s3151_s4  ;;  %v1789_v13 = vmul.f32 %v1788_v12, %v4005_v9 }
 0x1b6   : > { %v4092_v54 = vpop.permute.xlu1 %1344  ;;  %v4094_v28 = vpop.permute.xlu0 %1342 }
 0x1b7   : > { %5590 = vst [vmem:[#allocation101_spill] sm:$0xff] %v4092_v54  ;;  %5591 = vst [vmem:[#allocation102_spill] sm:$0xff] %v4094_v28  ;;  %v1791_v28 = vmul.f32 %v1788_v12, %v4018_v55  ;;  %v1813_v54 = vstv %s2869_s21  ;;  %s4216_s21 = sld [smem:[#allocation7 + $0x5a]] }
 0x1b8   : > { %1778 = vrot.lane.b32.xlu1 %v1767_v3, %s3151_s4  ;;  %1776 = vrot.lane.b32.xlu0 %v1766_v6, %s3151_s4  ;;  %v1817_v12 = vmul.f32 %v1813_v54, %v4016_v7 }
 0x1ba   : > { %v4100_v31 = vpop.permute.xlu1 %1348  ;;  %v4102_v60 = vpop.permute.xlu0 %1346 }
 0x1bb   : > { %5592 = vst [vmem:[#allocation103_spill] sm:$0xff] %v4100_v31  ;;  %5593 = vst [vmem:[#allocation104_spill] sm:$0xff] %v4102_v60  ;;  %v1815_v60 = vmul.f32 %v1813_v54, %v4003_v62 }
 0x1bc   : > { %1799 = vrot.lane.b32.xlu1 %v1790_v1, %s3151_s4  ;;  %1797 = vrot.lane.b32.xlu0 %v1789_v13, %s3151_s4  ;;  %v1814_v1 = vmul.f32 %v1813_v54, %v4005_v9 }
 0x1be   : > { %v4108_v3 = vpop.permute.xlu1 %1369  ;;  %v4110_v6 = vpop.permute.xlu0 %1367 }
 0x1bf   : > { %5594 = vst [vmem:[#allocation105_spill] sm:$0xff] %v4108_v3  ;;  %5595 = vst [vmem:[#allocation106_spill] sm:$0xff] %v4110_v6  ;;  %v1816_v6 = vmul.f32 %v1813_v54, %v4018_v55  ;;  %v1838_v3 = vstv %s2896_s29  ;;  %s4222_s29 = sld [smem:[#allocation7 + $0x2f]] }
 0x1c0   : > { %1803 = vrot.lane.b32.xlu1 %v1792_v2, %s3151_s4  ;;  %1801 = vrot.lane.b32.xlu0 %v1791_v28, %s3151_s4  ;;  %v1842_v54 = vmul.f32 %v1838_v3, %v4016_v7 }
 0x1c2   : > { %v4116_v31 = vpop.permute.xlu1 %1373  ;;  %v4118_v13 = vpop.permute.xlu0 %1371 }
 0x1c3   : > { %5596 = vst [vmem:[#allocation107_spill] sm:$0xff] %v4116_v31  ;;  %5597 = vst [vmem:[#allocation108_spill] sm:$0xff] %v4118_v13  ;;  %v1840_v13 = vmul.f32 %v1838_v3, %v4003_v62 }
 0x1c4   : > { %1824 = vrot.lane.b32.xlu1 %v1815_v60, %s3151_s4  ;;  %1822 = vrot.lane.b32.xlu0 %v1814_v1, %s3151_s4  ;;  %v1839_v60 = vmul.f32 %v1838_v3, %v4005_v9 }
 0x1c6   : > { %v4124_v2 = vpop.permute.xlu1 %1434  ;;  %v4126_v28 = vpop.permute.xlu0 %1432 }
 0x1c7   : > { %5598 = vst [vmem:[#allocation109_spill] sm:$0xff] %v4124_v2  ;;  %5599 = vst [vmem:[#allocation110_spill] sm:$0xff] %v4126_v28  ;;  %v1841_v28 = vmul.f32 %v1838_v3, %v4018_v55  ;;  %v4140_v2 = vld [vmem:[#allocation2 + $0x58] sm:$0xff]  ;;  %v4154_v3 = vld [vmem:[#allocation2 + $0x60] sm:$0xff] }
 0x1c8   : > { %1828 = vrot.lane.b32.xlu1 %v1817_v12, %s3151_s4  ;;  %1826 = vrot.lane.b32.xlu0 %v1816_v6, %s3151_s4  ;;  %v1903_v12 = vstv %s2817_s30  ;;  %v4142_v6 = vld [vmem:[#allocation2 + $0x50] sm:$0xff]  ;;  %s4278_s30 = sld [smem:[#allocation7 + $0xc]] }
 0x1ca   : > { %v4132_v31 = vpop.permute.xlu1 %1438  ;;  %v4134_v1 = vpop.permute.xlu0 %1436 }
 0x1cb   : > { %5600 = vst [vmem:[#allocation111_spill] sm:$0xff] %v4132_v31  ;;  %5601 = vst [vmem:[#allocation112_spill] sm:$0xff] %v4134_v1  ;;  %v4152_v1 = vld [vmem:[#allocation2 + $0x68] sm:$0xff] }
 0x1cc   : > { %1849 = vrot.lane.b32.xlu1 %v1840_v13, %s3151_s4  ;;  %1847 = vrot.lane.b32.xlu0 %v1839_v60, %s3151_s4  ;;  %v1905_v13 = vmul.f32 %v1903_v12, %v4140_v2  ;;  %v1904_v60 = vmul.f32 %v1903_v12, %v4142_v6 }
 0x1ce   : > { %v4144_v62 = vpop.permute.xlu1 %1459  ;;  %v4146_v9 = vpop.permute.xlu0 %1457 }
 0x1cf   : > { %5602 = vst [vmem:[#allocation113_spill] sm:$0xff] %v4144_v62  ;;  %5603 = vst [vmem:[#allocation114_spill] sm:$0xff] %v4146_v9  ;;  %v1928_v9 = vstv %s2844_s26  ;;  %s4292_s26 = sld [smem:[#allocation7 + $0x4a]] }
 0x1d0   : > { %1853 = vrot.lane.b32.xlu1 %v1842_v54, %s3151_s4  ;;  %1851 = vrot.lane.b32.xlu0 %v1841_v28, %s3151_s4  ;;  %v1907_v54 = vmul.f32 %v1903_v12, %v4152_v1  ;;  %v1906_v28 = vmul.f32 %v1903_v12, %v4154_v3  ;;  %v1932_v12 = vmul.f32 %v1928_v9, %v4152_v1 }
 0x1d2   : > { %v4156_v31 = vpop.permute.xlu1 %1463  ;;  %v4158_v55 = vpop.permute.xlu0 %1461 }
 0x1d3   : > { %5604 = vst [vmem:[#allocation115_spill] sm:$0xff] %v4156_v31  ;;  %5605 = vst [vmem:[#allocation116_spill] sm:$0xff] %v4158_v55  ;;  %v1930_v55 = vmul.f32 %v1928_v9, %v4140_v2 }
 0x1d4   : > { %1914 = vrot.lane.b32.xlu1 %v1905_v13, %s3150_s23  ;;  %1912 = vrot.lane.b32.xlu0 %v1904_v60, %s3150_s23  ;;  %v1929_v13 = vmul.f32 %v1928_v9, %v4142_v6 }
 0x1d6   : > { %v4164_v62 = vpop.permute.xlu1 %1484  ;;  %v4166_v7 = vpop.permute.xlu0 %1482 }
 0x1d7   : > { %5606 = vst [vmem:[#allocation117_spill] sm:$0xff] %v4164_v62  ;;  %5607 = vst [vmem:[#allocation118_spill] sm:$0xff] %v4166_v7  ;;  %v1931_v7 = vmul.f32 %v1928_v9, %v4154_v3  ;;  %v1953_v62 = vstv %s2871_s27  ;;  %s4325_s27 = sld [smem:[#allocation7 + $0x27]] }
 0x1d8   : > { %1918 = vrot.lane.b32.xlu1 %v1907_v54, %s3150_s23  ;;  %1916 = vrot.lane.b32.xlu0 %v1906_v28, %s3150_s23  ;;  %v1957_v9 = vmul.f32 %v1953_v62, %v4152_v1 }
 0x1da   : > { %v4172_v31 = vpop.permute.xlu1 %1488  ;;  %v4174_v60 = vpop.permute.xlu0 %1486 }
 0x1db   : > { %5608 = vst [vmem:[#allocation119_spill] sm:$0xff] %v4172_v31  ;;  %5609 = vst [vmem:[#allocation120_spill] sm:$0xff] %v4174_v60  ;;  %v1955_v60 = vmul.f32 %v1953_v62, %v4140_v2 }
 0x1dc   : > { %1939 = vrot.lane.b32.xlu1 %v1930_v55, %s3150_s23  ;;  %1937 = vrot.lane.b32.xlu0 %v1929_v13, %s3150_s23  ;;  %v1954_v55 = vmul.f32 %v1953_v62, %v4142_v6 }
 0x1de   : > { %v4180_v54 = vpop.permute.xlu1 %1509  ;;  %v4182_v28 = vpop.permute.xlu0 %1507 }
 0x1df   : > { %5610 = vst [vmem:[#allocation121_spill] sm:$0xff] %v4180_v54  ;;  %5611 = vst [vmem:[#allocation122_spill] sm:$0xff] %v4182_v28  ;;  %v1978_v28 = vstv %s2898_s28  ;;  %s4364_s28 = sld [smem:[#allocation7 + $0x42]] }
 0x1e0   : > { %1943 = vrot.lane.b32.xlu1 %v1932_v12, %s3150_s23  ;;  %1941 = vrot.lane.b32.xlu0 %v1931_v7, %s3150_s23  ;;  %v1956_v12 = vmul.f32 %v1953_v62, %v4154_v3 }
 0x1e2   : > { %v4188_v31 = vpop.permute.xlu1 %1513  ;;  %v4190_v13 = vpop.permute.xlu0 %1511 }
 0x1e3   : > { %5612 = vst [vmem:[#allocation123_spill] sm:$0xff] %v4188_v31  ;;  %5613 = vst [vmem:[#allocation124_spill] sm:$0xff] %v4190_v13  ;;  %v2003_v31 = vstv %s2818_s11  ;;  %s4448_s11 = sld [smem:[#allocation7 + $0x16]] }
 0x1e4   : > { %1964 = vrot.lane.b32.xlu1 %v1955_v60, %s3150_s23  ;;  %1962 = vrot.lane.b32.xlu0 %v1954_v55, %s3150_s23  ;;  %v1980_v60 = vmul.f32 %v1978_v28, %v4140_v2  ;;  %v1979_v55 = vmul.f32 %v1978_v28, %v4142_v6 }
 0x1e6   : > { %v4196_v7 = vpop.permute.xlu1 %1534  ;;  %v4198_v54 = vpop.permute.xlu0 %1532 }
 0x1e7   : > { %5614 = vst [vmem:[#allocation125_spill] sm:$0xff] %v4196_v7  ;;  %5615 = vst [vmem:[#allocation126_spill] sm:$0xff] %v4198_v54  ;;  %v907_v7 = vstv %s2804_s6  ;;  %v916_v54 = vstv %s2831_s9  ;;  %s4374_s6 = sld [smem:[#allocation7 + $0x65]] }
 0x1e8   : > { %1968 = vrot.lane.b32.xlu1 %v1957_v9, %s3150_s23  ;;  %1966 = vrot.lane.b32.xlu0 %v1956_v12, %s3150_s23  ;;  %v1982_v9 = vmul.f32 %v1978_v28, %v4152_v1  ;;  %v1981_v12 = vmul.f32 %v1978_v28, %v4154_v3  ;;  %v4226_v8 = vmul.f32 %v3006_v37, %v907_v7  ;;  %s4398_s9 = sld [smem:[#allocation7 + $0x5d]] }
 0x1e9   : > { %v4234_v28 = vmul.f32 %v3008_v0, %v907_v7  ;;  %v4239_v29 = vmul.f32 %v3006_v37, %v916_v54 }
 0x1ea   : > { %v4210_v62 = vpop.permute.xlu1 %1538  ;;  %v4212_v13 = vpop.permute.xlu0 %1536  ;;  %5619 = vst [vmem:[#allocation130_spill] sm:$0xff] %v4226_v8  ;;  %v4256_v8 = vmul.f32 %v3008_v0, %v925_v34 }
 0x1eb   : > { %5616 = vst [vmem:[#allocation127_spill] sm:$0xff] %v4210_v62  ;;  %5617 = vst [vmem:[#allocation128_spill] sm:$0xff] %v4212_v13  ;;  %v3005_v13 = vld [vmem:[#allocation2 + $0xa] sm:$0xff] }
 0x1ec   : > { %1989 = vrot.lane.b32.xlu1 %v1980_v60, %s3150_s23  ;;  %1987 = vrot.lane.b32.xlu0 %v1979_v55, %s3150_s23  ;;  %v4224_v62 = vmul.f32 %v3005_v13, %v907_v7  ;;  %v3007_v55 = vld [vmem:[#allocation2 + $0x1a] sm:$0xff]  ;;  %5623 = vst [vmem:[#allocation134_spill] sm:$0xff] %v4234_v28  ;;  %v4236_v48 = vmul.f32 %v3005_v13, %v916_v54  ;;  %5625 = vst [vmem:[#allocation136_spill] sm:$0xff] %v4239_v29 }
 0x1ed   : > { %v4232_v30 = vmul.f32 %v3007_v55, %v907_v7  ;;  %v4248_v7 = vmul.f32 %v3008_v0, %v916_v54  ;;  %v4250_v28 = vmul.f32 %v3005_v13, %v925_v34  ;;  %v4254_v29 = vmul.f32 %v3007_v55, %v925_v34 }
 0x1ee   : > { %5618 = vst [vmem:[#allocation129_spill] sm:$0xff] %v4224_v62  ;;  %v4228_v5 = vpop.permute.xlu1 %1559  ;;  %v4230_v60 = vpop.permute.xlu0 %1557  ;;  %5624 = vst [vmem:[#allocation135_spill] sm:$0xff] %v4236_v48  ;;  %v1147_v62 = vstv %s4202_s20  ;;  %v4252_v48 = vmul.f32 %v3006_v37, %v925_v34  ;;  %s4527_s20 = sld [smem:[#allocation7 + $0x2a]] }
 0x1ef   : > { %5620 = vst [vmem:[#allocation131_spill] sm:$0xff] %v4228_v5  ;;  %5621 = vst [vmem:[#allocation132_spill] sm:$0xff] %v4230_v60  ;;  %v2005_v5 = vmul.f32 %v2003_v31, %v4140_v2  ;;  %v2004_v60 = vmul.f32 %v2003_v31, %v4142_v6  ;;  %v4275_v34 = vmul.f32 %v1147_v62, %v3712_v38 }
 0x1f0   : > { %5622 = vst [vmem:[#allocation133_spill] sm:$0xff] %v4232_v30  ;;  %1993 = vrot.lane.b32.xlu1 %v1982_v9, %s3150_s23  ;;  %1991 = vrot.lane.b32.xlu0 %v1981_v12, %s3150_s23  ;;  %v4246_v30 = vmul.f32 %v3007_v55, %v916_v54  ;;  %5626 = vst [vmem:[#allocation137_spill] sm:$0xff] %v4248_v7  ;;  %v4258_v9 = vmul.f32 %v3005_v13, %v934_v10  ;;  %v1165_v13 = vstv %s4214_s1  ;;  %s4579_s1 = sld [smem:[#allocation7 + $0x4c]] }
 0x1f1   : > { %5627 = vst [vmem:[#allocation138_spill] sm:$0xff] %v4252_v48  ;;  %5628 = vst [vmem:[#allocation139_spill] sm:$0xff] %v4254_v29  ;;  %v4260_v12 = vmul.f32 %v3006_v37, %v934_v10  ;;  %v4266_v54 = vmul.f32 %v3007_v55, %v934_v10  ;;  %v4268_v7 = vmul.f32 %v3008_v0, %v934_v10  ;;  %v1156_v29 = vstv %s4208_s19  ;;  %s4560_s19 = sld [smem:[#allocation7 + $0x45]] }
 0x1f2   : > { %v4262_v61 = vpop.permute.xlu1 %1563  ;;  %v4264_v20 = vpop.permute.xlu0 %1561  ;;  %v4271_v48 = vmul.f32 %v1147_v62, %v3710_v46  ;;  %5632 = vst [vmem:[#allocation143_spill] sm:$0xff] %v4275_v34  ;;  %v2007_v37 = vmul.f32 %v2003_v31, %v4152_v1  ;;  %v2006_v55 = vmul.f32 %v2003_v31, %v4154_v3  ;;  %v4285_v0 = vmul.f32 %v1147_v62, %v3722_v33 }
 0x1f3   : > { %5629 = vst [vmem:[#allocation140_spill] sm:$0xff] %v4262_v61  ;;  %5630 = vst [vmem:[#allocation141_spill] sm:$0xff] %v4264_v20  ;;  %v4288_v10 = vmul.f32 %v1147_v62, %v3724_v14  ;;  %v1174_v20 = vstv %s4216_s21  ;;  %v2028_v61 = vstv %s4222_s29  ;;  %v4295_v34 = vmul.f32 %v1156_v29, %v3710_v46  ;;  %s4591_s21 = sld [smem:[#allocation7 + $0x60]] }
 0x1f4   : > { %5631 = vst [vmem:[#allocation142_spill] sm:$0xff] %v4271_v48  ;;  %2014 = vrot.lane.b32.xlu1 %v2005_v5, %s3151_s4  ;;  %2012 = vrot.lane.b32.xlu0 %v2004_v60, %s3151_s4  ;;  %5633 = vst [vmem:[#allocation144_spill] sm:$0xff] %v4285_v0  ;;  %v4298_v5 = vmul.f32 %v1156_v29, %v3712_v38  ;;  %v4301_v60 = vmul.f32 %v1156_v29, %v3722_v33  ;;  %s4643_s29 = sld [smem:[#allocation7 + $0x67]] }
 0x1f5   : > { %5634 = vst [vmem:[#allocation145_spill] sm:$0xff] %v4288_v10  ;;  %5635 = vst [vmem:[#allocation146_spill] sm:$0xff] %v4295_v34  ;;  %v4304_v31 = vmul.f32 %v1156_v29, %v3724_v14  ;;  %v4311_v10 = vmul.f32 %v1165_v13, %v3710_v46  ;;  %v4314_v48 = vmul.f32 %v1165_v13, %v3712_v38 }
 0x1f6   : > { %5636 = vst [vmem:[#allocation147_spill] sm:$0xff] %v4298_v5  ;;  %5637 = vst [vmem:[#allocation148_spill] sm:$0xff] %v4301_v60  ;;  %v4306_v0 = vpop.permute.xlu1 %1584  ;;  %v4308_v62 = vpop.permute.xlu0 %1582  ;;  %v4317_v34 = vmul.f32 %v1165_v13, %v3722_v33  ;;  %v4320_v5 = vmul.f32 %v1165_v13, %v3724_v14  ;;  %v4323_v60 = vmul.f32 %v1174_v20, %v3710_v46 }
 0x1f7   : > { %5638 = vst [vmem:[#allocation149_spill] sm:$0xff] %v4306_v0  ;;  %5639 = vst [vmem:[#allocation150_spill] sm:$0xff] %v4308_v62  ;;  %v2030_v29 = vmul.f32 %v2028_v61, %v4140_v2  ;;  %v2029_v62 = vmul.f32 %v2028_v61, %v4142_v6  ;;  %v725_v0 = vadd.f32 %v3694_v22, %v3590_v41 }
 0x1f8   : > { %5640 = vst [vmem:[#allocation151_spill] sm:$0xff] %v4317_v34  ;;  %5641 = vst [vmem:[#allocation152_spill] sm:$0xff] %v4323_v60  ;;  %2018 = vrot.lane.b32.xlu1 %v2007_v37, %s3151_s4  ;;  %2016 = vrot.lane.b32.xlu0 %v2006_v55, %s3151_s4  ;;  %v4334_v34 = vmul.f32 %v1174_v20, %v3712_v38  ;;  %v4337_v13 = vmul.f32 %v1174_v20, %v3722_v33 }
 0x1f9   : > { %v4340_v46 = vmul.f32 %v1174_v20, %v3724_v14  ;;  %v724_v37 = vadd.f32 %v3696_v23, %v3592_v42  ;;  %v727_v55 = vadd.f32 %v3702_v11, %v3607_v24  ;;  %v726_v60 = vadd.f32 %v3704_v47, %v3609_v25 }
 0x1fa   : > { %v750_v41 = vadd.f32 %v3714_v58, %v3625_v52  ;;  %v4350_v22 = vpop.permute.xlu1 %1588  ;;  %v4352_v38 = vpop.permute.xlu0 %1586  ;;  %v749_v33 = vadd.f32 %v3716_v63, %v3627_v56  ;;  %v752_v42 = vadd.f32 %v3726_v27, %v3642_v49  ;;  %v751_v24 = vadd.f32 %v3728_v36, %v3644_v53 }
 0x1fb   : > { %5642 = vst [vmem:[#allocation153_spill] sm:$0xff] %v4350_v22  ;;  %5643 = vst [vmem:[#allocation154_spill] sm:$0xff] %v4352_v38  ;;  %v775_v25 = vadd.f32 %v3734_v39, %v3657_v40  ;;  %v774_v52 = vadd.f32 %v3736_v16, %v3659_v21  ;;  %v2032_v56 = vmul.f32 %v2028_v61, %v4152_v1  ;;  %v1387_v11 = vstv %s4278_s30  ;;  %v5646_v39 = vld [vmem:[#allocation20_spill] sm:$0xff]  ;;  %v5647_v16 = vld [vmem:[#allocation41_spill] sm:$0xff]  ;;  %s4659_s30 = sld [smem:[#allocation7 + $0x12]] }
 0x1fc   : > { %2039 = vrot.lane.b32.xlu1 %v2030_v29, %s3151_s4  ;;  %2037 = vrot.lane.b32.xlu0 %v2029_v62, %s3151_s4  ;;  %v2031_v23 = vmul.f32 %v2028_v61, %v4154_v3  ;;  %v825_v49 = vadd.f32 %v3766_v32, %v725_v0  ;;  %v824_v53 = vadd.f32 %v3768_v15, %v724_v37  ;;  %v2053_v40 = vstv %s4292_s26  ;;  %v5651_v32 = vld [vmem:[#allocation42_spill] sm:$0xff]  ;;  %v5653_v0 = vld [vmem:[#allocation23_spill] sm:$0xff]  ;;  %v5654_v62 = vld [vmem:[#allocation45_spill] sm:$0xff]  ;;  %s4695_s26 = sld [smem:[#allocation7 + $0x2d]] }
 0x1fd   : > { %v777_v21 = vadd.f32 %v3742_v51, %v3670_v17  ;;  %v776_v47 = vadd.f32 %v3744_v18, %v3672_v43  ;;  %v800_v58 = vadd.f32 %v3750_v35, %v3682_v50  ;;  %v799_v61 = vadd.f32 %v3752_v59, %v3684_v57  ;;  %v5648_v18 = vld [vmem:[#allocation21_spill] sm:$0xff]  ;;  %v5655_v37 = vld [vmem:[#allocation46_spill] sm:$0xff] }
 0x1fe   : > { %v4384_v63 = vpop.permute.xlu1 %1609  ;;  %v4386_v14 = vpop.permute.xlu0 %1607  ;;  %v802_v27 = vadd.f32 %v3758_v4, %v3690_v44  ;;  %v801_v36 = vadd.f32 %v3760_v26, %v3692_v45  ;;  %v827_v17 = vadd.f32 %v3774_v19, %v727_v55  ;;  %v826_v43 = vadd.f32 %v5646_v39, %v726_v60  ;;  %v5649_v35 = vld [vmem:[#allocation129_spill] sm:$0xff]  ;;  %v5650_v4 = vld [vmem:[#allocation130_spill] sm:$0xff] }
 0x1ff   : > { %5644 = vst [vmem:[#allocation155_spill] sm:$0xff] %v4384_v63  ;;  %5645 = vst [vmem:[#allocation156_spill] sm:$0xff] %v4386_v14  ;;  %v4395_v51 = vmul.f32 %v1387_v11, %v5647_v16  ;;  %v1396_v50 = vstv %s4325_s27  ;;  %v2055_v57 = vmul.f32 %v2053_v40, %v4140_v2  ;;  %v2054_v44 = vmul.f32 %v2053_v40, %v4142_v6  ;;  %v5652_v19 = vld [vmem:[#allocation22_spill] sm:$0xff]  ;;  %v5664_v14 = vld [vmem:[#allocation136_spill] sm:$0xff]  ;;  %s4707_s27 = sld [smem:[#allocation7 + $0x17]] }
 0x200   : > { %2043 = vrot.lane.b32.xlu1 %v2032_v56, %s3151_s4  ;;  %2041 = vrot.lane.b32.xlu0 %v2031_v23, %s3151_s4  ;;  %v850_v45 = vadd.f32 %v5648_v18, %v750_v41  ;;  %v4406_v59 = vadd.f32 %v5649_v35, %v825_v49  ;;  %v4409_v26 = vadd.f32 %v5650_v4, %v824_v53  ;;  %v5658_v23 = vld [vmem:[#allocation24_spill] sm:$0xff]  ;;  %v5659_v53 = vld [vmem:[#allocation133_spill] sm:$0xff]  ;;  %v5660_v18 = vld [vmem:[#allocation134_spill] sm:$0xff] }
 0x201   : > { %v4412_v15 = vmul.f32 %v1387_v11, %v5651_v32  ;;  %v849_v20 = vadd.f32 %v5652_v19, %v749_v33  ;;  %v852_v60 = vadd.f32 %v5653_v0, %v752_v42  ;;  %v4417_v29 = vmul.f32 %v1387_v11, %v5654_v62  ;;  %v5662_v0 = vld [vmem:[#allocation26_spill] sm:$0xff] }
 0x202   : > { %v4420_v55 = vmul.f32 %v1387_v11, %v5655_v37  ;;  %v4422_v41 = vpop.permute.xlu1 %1613  ;;  %v4424_v56 = vpop.permute.xlu0 %1611  ;;  %v851_v49 = vadd.f32 %v5658_v23, %v751_v24  ;;  %v4428_v39 = vadd.f32 %v5659_v53, %v827_v17  ;;  %v4431_v33 = vadd.f32 %v5660_v18, %v826_v43  ;;  %v5661_v17 = vld [vmem:[#allocation25_spill] sm:$0xff]  ;;  %v5663_v23 = vld [vmem:[#allocation135_spill] sm:$0xff] }
 0x203   : > { %5656 = vst [vmem:[#allocation20_spill] sm:$0xff] %v4422_v41  ;;  %5657 = vst [vmem:[#allocation41_spill] sm:$0xff] %v4424_v56  ;;  %v4434_v42 = vmul.f32 %v1396_v50, %v5647_v16  ;;  %v4437_v35 = vmul.f32 %v1396_v50, %v5651_v32  ;;  %v1405_v11 = vstv %s4364_s28  ;;  %v2057_v4 = vmul.f32 %v2053_v40, %v4152_v1  ;;  %v5699_v41 = vld [vmem:[#allocation57_spill] sm:$0xff]  ;;  %s4734_s28 = sld [smem:[#allocation7 + $0x48]] }
 0x204   : > { %2064 = vrot.lane.b32.xlu1 %v2055_v57, %s3151_s4  ;;  %2062 = vrot.lane.b32.xlu0 %v2054_v44, %s3151_s4  ;;  %v2056_v24 = vmul.f32 %v2053_v40, %v4154_v3  ;;  %v875_v19 = vadd.f32 %v5661_v17, %v775_v25  ;;  %v874_v43 = vadd.f32 %v5662_v0, %v774_v52  ;;  %v2078_v18 = vstv %s4374_s6  ;;  %v5667_v52 = vld [vmem:[#allocation27_spill] sm:$0xff]  ;;  %s4743_s6 = sld [smem:[#allocation7 + $0x32]] }
 0x205   : > { %v922_v53 = vadd.f32 %v5663_v23, %v850_v45  ;;  %v921_v63 = vadd.f32 %v5664_v14, %v849_v20  ;;  %v924_v57 = vadd.f32 %v4246_v30, %v852_v60  ;;  %v4453_v44 = vmul.f32 %v1396_v50, %v5654_v62  ;;  %v5668_v45 = vld [vmem:[#allocation28_spill] sm:$0xff]  ;;  %v5669_v23 = vld [vmem:[#allocation137_spill] sm:$0xff] }
 0x206   : > { %v4456_v38 = vmul.f32 %v1396_v50, %v5655_v37  ;;  %v4458_v40 = vpop.permute.xlu1 %1674  ;;  %v4460_v25 = vpop.permute.xlu0 %1672  ;;  %v877_v17 = vadd.f32 %v5667_v52, %v777_v21  ;;  %v876_v0 = vadd.f32 %v5668_v45, %v776_v47  ;;  %v923_v22 = vadd.f32 %v5669_v23, %v851_v49  ;;  %v5670_v30 = vld [vmem:[#allocation29_spill] sm:$0xff]  ;;  %v5672_v52 = vld [vmem:[#allocation138_spill] sm:$0xff] }
 0x207   : > { %5665 = vst [vmem:[#allocation21_spill] sm:$0xff] %v4458_v40  ;;  %5666 = vst [vmem:[#allocation129_spill] sm:$0xff] %v4460_v25  ;;  %v4466_v14 = vmul.f32 %v1405_v11, %v5647_v16  ;;  %v900_v20 = vadd.f32 %v5670_v30, %v800_v58  ;;  %v1414_v60 = vstv %s4398_s9  ;;  %v2080_v50 = vmul.f32 %v2078_v18, %v4140_v2  ;;  %v5671_v40 = vld [vmem:[#allocation30_spill] sm:$0xff]  ;;  %v5673_v58 = vld [vmem:[#allocation31_spill] sm:$0xff]  ;;  %s4791_s9 = sld [smem:[#allocation7 + $0x4d]] }
 0x208   : > { %2068 = vrot.lane.b32.xlu1 %v2057_v4, %s3151_s4  ;;  %2066 = vrot.lane.b32.xlu0 %v2056_v24, %s3151_s4  ;;  %v2079_v25 = vmul.f32 %v2078_v18, %v4142_v6  ;;  %v899_v21 = vadd.f32 %v5671_v40, %v799_v61  ;;  %v931_v47 = vadd.f32 %v4250_v28, %v875_v19  ;;  %v5674_v4 = vld [vmem:[#allocation32_spill] sm:$0xff]  ;;  %v5678_v19 = vld [vmem:[#allocation139_spill] sm:$0xff] }
 0x209   : > { %v930_v49 = vadd.f32 %v5672_v52, %v874_v43  ;;  %v4478_v45 = vmul.f32 %v1405_v11, %v5651_v32  ;;  %v902_v23 = vadd.f32 %v5673_v58, %v802_v27  ;;  %v901_v30 = vadd.f32 %v5674_v4, %v801_v36 }
 0x20a   : > { %v4485_v24 = vmul.f32 %v1405_v11, %v5654_v62  ;;  %v4488_v56 = vmul.f32 %v1405_v11, %v5655_v37  ;;  %v4490_v61 = vpop.permute.xlu1 %1678  ;;  %v4492_v28 = vpop.permute.xlu0 %1676  ;;  %v933_v43 = vadd.f32 %v5678_v19, %v877_v17  ;;  %v932_v40 = vadd.f32 %v4256_v8, %v876_v0  ;;  %v5689_v19 = vld [vmem:[#allocation38_spill] sm:$0xff] }
 0x20b   : > { %5676 = vst [vmem:[#allocation42_spill] sm:$0xff] %v4490_v61  ;;  %5677 = vst [vmem:[#allocation22_spill] sm:$0xff] %v4492_v28  ;;  %v4497_v52 = vmul.f32 %v1414_v60, %v5647_v16  ;;  %v4500_v27 = vmul.f32 %v1414_v60, %v5651_v32  ;;  %v940_v36 = vadd.f32 %v4258_v9, %v900_v20  ;;  %v4514_v32 = vld [vmem:[#allocation2 + $0x59] sm:$0xff]  ;;  %v2143_v0 = vstv %s4448_s11  ;;  %v4517_v9 = vld [vmem:[#allocation2 + $0x51] sm:$0xff]  ;;  %s4812_s11 = sld [smem:[#allocation7 + $0x68]] }
 0x20c   : > { %5675 = vst [vmem:[#allocation130_spill] sm:$0xff] %v4488_v56  ;;  %2089 = vrot.lane.b32.xlu1 %v2080_v50, %s3151_s4  ;;  %2087 = vrot.lane.b32.xlu0 %v2079_v25, %s3151_s4  ;;  %v2082_v11 = vmul.f32 %v2078_v18, %v4152_v1  ;;  %v2081_v58 = vmul.f32 %v2078_v18, %v4154_v3  ;;  %5683 = vst [vmem:[#allocation133_spill] sm:$0xff] %v4514_v32  ;;  %v5684_v25 = vld [vmem:[#allocation33_spill] sm:$0xff]  ;;  %v5685_v18 = vld [vmem:[#allocation34_spill] sm:$0xff] }
 0x20d   : > { %5679 = vst [vmem:[#allocation23_spill] sm:$0xff] %v4497_v52  ;;  %5680 = vst [vmem:[#allocation45_spill] sm:$0xff] %v4500_v27  ;;  %v939_v17 = vadd.f32 %v4260_v12, %v899_v21  ;;  %v4509_v8 = vmul.f32 %v1414_v60, %v5654_v62  ;;  %v4512_v16 = vmul.f32 %v1414_v60, %v5655_v37  ;;  %v5688_v21 = vld [vmem:[#allocation37_spill] sm:$0xff]  ;;  %v5695_v61 = vld [vmem:[#allocation50_spill] sm:$0xff] }
 0x20e   : > { %v965_v20 = vadd.f32 %v5684_v25, %v4406_v59  ;;  %v964_v50 = vadd.f32 %v5685_v18, %v4409_v26  ;;  %v942_v12 = vadd.f32 %v4266_v54, %v902_v23  ;;  %v941_v62 = vadd.f32 %v4268_v7, %v901_v30  ;;  %v4529_v37 = vpop.permute.xlu1 %1699  ;;  %v4531_v60 = vpop.permute.xlu0 %1697  ;;  %v5690_v25 = vld [vmem:[#allocation43_spill] sm:$0xff]  ;;  %v5691_v26 = vld [vmem:[#allocation44_spill] sm:$0xff] }
 0x20f   : > { %5681 = vst [vmem:[#allocation46_spill] sm:$0xff] %v4509_v8  ;;  %5682 = vst [vmem:[#allocation24_spill] sm:$0xff] %v4512_v16  ;;  %v967_v4 = vadd.f32 %v5688_v21, %v4428_v39  ;;  %v966_v59 = vadd.f32 %v5689_v19, %v4431_v33  ;;  %v990_v28 = vadd.f32 %v5690_v25, %v922_v53  ;;  %v5692_v54 = vld [vmem:[#allocation47_spill] sm:$0xff]  ;;  %v5694_v39 = vld [vmem:[#allocation49_spill] sm:$0xff]  ;;  %v1627_v19 = vstv %s4480_s10  ;;  %s4890_s10 = sld [smem:[#allocation7 + $0x19]] }
 0x210   : > { %5686 = vst [vmem:[#allocation134_spill] sm:$0xff] %v4529_v37  ;;  %5687 = vst [vmem:[#allocation25_spill] sm:$0xff] %v4531_v60  ;;  %v989_v18 = vadd.f32 %v5691_v26, %v921_v63  ;;  %v992_v23 = vadd.f32 %v5692_v54, %v924_v57  ;;  %2093 = vrot.lane.b32.xlu1 %v2082_v11, %s3151_s4  ;;  %2091 = vrot.lane.b32.xlu0 %v2081_v58, %s3151_s4  ;;  %v5693_v60 = vld [vmem:[#allocation48_spill] sm:$0xff]  ;;  %v4548_v53 = vld [vmem:[#allocation2 + $0x69] sm:$0xff] }
 0x211   : > { %v2145_v7 = vmul.f32 %v2143_v0, %v4514_v32  ;;  %v2144_v30 = vmul.f32 %v2143_v0, %v4517_v9  ;;  %v991_v37 = vadd.f32 %v5693_v60, %v923_v22  ;;  %v1015_v21 = vadd.f32 %v5694_v39, %v931_v47  ;;  %v4550_v63 = vld [vmem:[#allocation2 + $0x61] sm:$0xff]  ;;  %v5696_v57 = vld [vmem:[#allocation51_spill] sm:$0xff]  ;;  %v5697_v11 = vld [vmem:[#allocation52_spill] sm:$0xff] }
 0x212   : > { %v1014_v33 = vadd.f32 %v5695_v61, %v930_v49  ;;  %v1017_v25 = vadd.f32 %v5696_v57, %v933_v43  ;;  %v1016_v26 = vadd.f32 %v5697_v11, %v932_v40  ;;  %v5698_v58 = vld [vmem:[#allocation53_spill] sm:$0xff]  ;;  %v1065_v27 = vadd.f32 %v5699_v41, %v965_v20  ;;  %v4556_v52 = vpop.permute.xlu1 %1703  ;;  %v4558_v22 = vpop.permute.xlu0 %1701  ;;  %v5702_v47 = vld [vmem:[#allocation54_spill] sm:$0xff]  ;;  %v5703_v61 = vld [vmem:[#allocation55_spill] sm:$0xff] }
 0x213   : > { %v1040_v54 = vadd.f32 %v5698_v58, %v940_v36  ;;  %5700 = vst [vmem:[#allocation26_spill] sm:$0xff] %v4556_v52  ;;  %5701 = vst [vmem:[#allocation135_spill] sm:$0xff] %v4558_v22  ;;  %v1039_v49 = vadd.f32 %v5702_v47, %v939_v17  ;;  %v1042_v60 = vadd.f32 %v5703_v61, %v942_v12  ;;  %v5704_v39 = vld [vmem:[#allocation56_spill] sm:$0xff]  ;;  %v5705_v57 = vld [vmem:[#allocation58_spill] sm:$0xff] }
 0x214   : > { %v1041_v43 = vadd.f32 %v5704_v39, %v941_v62  ;;  %v1064_v40 = vadd.f32 %v5705_v57, %v964_v50  ;;  %v5706_v11 = vld [vmem:[#allocation77_spill] sm:$0xff]  ;;  %2154 = vrot.lane.b32.xlu1 %v2145_v7, %s3150_s23  ;;  %2152 = vrot.lane.b32.xlu0 %v2144_v30, %s3150_s23  ;;  %v2147_v41 = vmul.f32 %v2143_v0, %v4548_v53  ;;  %v5708_v58 = vld [vmem:[#allocation59_spill] sm:$0xff]  ;;  %v5709_v47 = vld [vmem:[#allocation60_spill] sm:$0xff]  ;;  %v2168_v62 = vstv %s4519_s22  ;;  %s4980_s22 = sld [smem:[#allocation7 + $0x63]] }
 0x215   : > { %v4567_v36 = vmul.f32 %v1627_v19, %v5706_v11  ;;  %v2146_v20 = vmul.f32 %v2143_v0, %v4550_v63  ;;  %v1067_v17 = vadd.f32 %v5708_v58, %v967_v4  ;;  %v1066_v12 = vadd.f32 %v5709_v47, %v966_v59  ;;  %v5710_v61 = vld [vmem:[#allocation78_spill] sm:$0xff]  ;;  %v5712_v50 = vld [vmem:[#allocation61_spill] sm:$0xff]  ;;  %v5717_v4 = vld [vmem:[#allocation63_spill] sm:$0xff] }
 0x216   : > { %v4576_v22 = vmul.f32 %v1627_v19, %v5710_v61  ;;  %v1090_v39 = vadd.f32 %v5712_v50, %v990_v28  ;;  %v5713_v57 = vld [vmem:[#allocation62_spill] sm:$0xff]  ;;  %v4587_v16 = vpop.permute.xlu1 %1724  ;;  %v4589_v0 = vpop.permute.xlu0 %1722  ;;  %v1092_v59 = vadd.f32 %v5717_v4, %v992_v23  ;;  %v5718_v58 = vld [vmem:[#allocation143_spill] sm:$0xff]  ;;  %v2169_v23 = vmul.f32 %v2168_v62, %v4517_v9  ;;  %v5724_v4 = vld [vmem:[#allocation144_spill] sm:$0xff] }
 0x217   : > { %5707 = vst [vmem:[#allocation136_spill] sm:$0xff] %v4567_v36  ;;  %v1089_v7 = vadd.f32 %v5713_v57, %v989_v18  ;;  %v5714_v52 = vld [vmem:[#allocation142_spill] sm:$0xff]  ;;  %v1636_v36 = vstv %s4527_s20  ;;  %5715 = vst [vmem:[#allocation28_spill] sm:$0xff] %v4587_v16  ;;  %v4595_v47 = vadd.f32 %v5718_v58, %v1064_v40  ;;  %v2170_v57 = vmul.f32 %v2168_v62, %v4514_v32  ;;  %v5725_v40 = vld [vmem:[#allocation145_spill] sm:$0xff]  ;;  %s4996_s20 = sld [smem:[#allocation7 + $0x34]] }
 0x218   : > { %5711 = vst [vmem:[#allocation27_spill] sm:$0xff] %v4576_v22  ;;  %v4584_v30 = vadd.f32 %v5714_v52, %v1065_v27  ;;  %5716 = vst [vmem:[#allocation137_spill] sm:$0xff] %v4589_v0  ;;  %v5719_v22 = vld [vmem:[#allocation81_spill] sm:$0xff]  ;;  %v5721_v18 = vld [vmem:[#allocation82_spill] sm:$0xff]  ;;  %2158 = vrot.lane.b32.xlu1 %v2147_v41, %s3150_s23  ;;  %2156 = vrot.lane.b32.xlu0 %v2146_v20, %s3150_s23  ;;  %v1155_v0 = vadd.f32 %v5724_v4, %v1067_v17 }
 0x219   : > { %v4598_v28 = vmul.f32 %v1627_v19, %v5719_v22  ;;  %v4601_v50 = vmul.f32 %v1627_v19, %v5721_v18  ;;  %v5723_v52 = vld [vmem:[#allocation64_spill] sm:$0xff]  ;;  %v1154_v58 = vadd.f32 %v5725_v40, %v1066_v12  ;;  %v4611_v16 = vmul.f32 %v1636_v36, %v5706_v11  ;;  %v5732_v12 = vld [vmem:[#allocation65_spill] sm:$0xff]  ;;  %v5733_v40 = vld [vmem:[#allocation66_spill] sm:$0xff] }
 0x21a   : > { %v1091_v27 = vadd.f32 %v5723_v52, %v991_v37  ;;  %v4614_v19 = vmul.f32 %v1636_v36, %v5710_v61  ;;  %v5729_v52 = vld [vmem:[#allocation147_spill] sm:$0xff]  ;;  %v4619_v20 = vmul.f32 %v1636_v36, %v5719_v22  ;;  %v4622_v8 = vpop.permute.xlu1 %1728  ;;  %v4624_v17 = vpop.permute.xlu0 %1726  ;;  %v1115_v4 = vadd.f32 %v5732_v12, %v1015_v21  ;;  %v5734_v56 = vld [vmem:[#allocation148_spill] sm:$0xff] }
 0x21b   : > { %5720 = vst [vmem:[#allocation29_spill] sm:$0xff] %v4598_v28  ;;  %5722 = vst [vmem:[#allocation30_spill] sm:$0xff] %v4601_v50  ;;  %v5728_v50 = vld [vmem:[#allocation146_spill] sm:$0xff]  ;;  %v1161_v41 = vadd.f32 %v5729_v52, %v1089_v7  ;;  %v1645_v28 = vstv %s4560_s19  ;;  %v2171_v52 = vmul.f32 %v2168_v62, %v4550_v63  ;;  %v5737_v12 = vld [vmem:[#allocation68_spill] sm:$0xff]  ;;  %s5051_s19 = sld [smem:[#allocation7 + $0x4f]] }
 0x21c   : > { %5726 = vst [vmem:[#allocation138_spill] sm:$0xff] %v4611_v16  ;;  %5727 = vst [vmem:[#allocation31_spill] sm:$0xff] %v4614_v19  ;;  %v1162_v37 = vadd.f32 %v5728_v50, %v1090_v39  ;;  %v1114_v16 = vadd.f32 %v5733_v40, %v1014_v33  ;;  %v1164_v19 = vadd.f32 %v5734_v56, %v1092_v59  ;;  %2179 = vrot.lane.b32.xlu1 %v2170_v57, %s3150_s23  ;;  %v5740_v59 = vld [vmem:[#allocation70_spill] sm:$0xff] }
 0x21d   : > { %5730 = vst [vmem:[#allocation32_spill] sm:$0xff] %v4622_v8  ;;  %5731 = vst [vmem:[#allocation139_spill] sm:$0xff] %v4624_v17  ;;  %v4630_v39 = vmul.f32 %v1636_v36, %v5721_v18  ;;  %v1163_v7 = vadd.f32 %v4304_v31, %v1091_v27  ;;  %2177 = vrot.lane.b32.xlu0 %v2169_v23, %s3150_s23  ;;  %v2172_v50 = vmul.f32 %v2168_v62, %v4548_v53  ;;  %v5736_v17 = vld [vmem:[#allocation67_spill] sm:$0xff]  ;;  %v5739_v36 = vld [vmem:[#allocation69_spill] sm:$0xff] }
 0x21e   : > { %v1117_v21 = vadd.f32 %v5736_v17, %v1017_v25  ;;  %v1116_v33 = vadd.f32 %v5737_v12, %v1016_v26  ;;  %v4640_v40 = vmul.f32 %v1645_v28, %v5706_v11  ;;  %v2193_v56 = vstv %s4579_s1  ;;  %v4651_v8 = vpop.permute.xlu1 %1749  ;;  %v4653_v62 = vpop.permute.xlu0 %1747  ;;  %v5743_v25 = vld [vmem:[#allocation71_spill] sm:$0xff]  ;;  %v5744_v17 = vld [vmem:[#allocation72_spill] sm:$0xff]  ;;  %s2904_s1 = sld [smem:[#allocation7 + $0x6a]] }
 0x21f   : > { %5735 = vst [vmem:[#allocation33_spill] sm:$0xff] %v4630_v39  ;;  %v1140_v31 = vadd.f32 %v5739_v36, %v1040_v54  ;;  %v1139_v27 = vadd.f32 %v5740_v59, %v1039_v49  ;;  %v4648_v57 = vmul.f32 %v1645_v28, %v5710_v61  ;;  %v1654_v23 = vstv %s4591_s21  ;;  %5741 = vst [vmem:[#allocation37_spill] sm:$0xff] %v4651_v8  ;;  %s2824_s21 = sld [smem:[#allocation7 + $0x1a]] }
 0x220   : > { %5738 = vst [vmem:[#allocation34_spill] sm:$0xff] %v4640_v40  ;;  %5742 = vst [vmem:[#allocation38_spill] sm:$0xff] %v4653_v62  ;;  %v1142_v26 = vadd.f32 %v5743_v25, %v1042_v60  ;;  %v1141_v12 = vadd.f32 %v5744_v17, %v1041_v43  ;;  %v1171_v40 = vadd.f32 %v4311_v10, %v1115_v4  ;;  %2183 = vrot.lane.b32.xlu1 %v2172_v50, %s3150_s23  ;;  %v5746_v60 = vld [vmem:[#allocation151_spill] sm:$0xff] }
 0x221   : > { %v1170_v39 = vadd.f32 %v4314_v48, %v1114_v16  ;;  %v4662_v54 = vmul.f32 %v1645_v28, %v5719_v22  ;;  %2181 = vrot.lane.b32.xlu0 %v2171_v52, %s3150_s23  ;;  %v2195_v49 = vmul.f32 %v2193_v56, %v4514_v32  ;;  %v2194_v36 = vmul.f32 %v2193_v56, %v4517_v9  ;;  %v5749_v16 = vld [vmem:[#allocation152_spill] sm:$0xff] }
 0x222   : > { %v1173_v59 = vadd.f32 %v5746_v60, %v1117_v21  ;;  %v1172_v43 = vadd.f32 %v4320_v5, %v1116_v33  ;;  %v4671_v10 = vmul.f32 %v1645_v28, %v5721_v18  ;;  %v4674_v48 = vmul.f32 %v1654_v23, %v5706_v11  ;;  %v4684_v21 = vpop.permute.xlu1 %1753  ;;  %v4686_v5 = vpop.permute.xlu0 %1751  ;;  %v5751_v28 = vld [vmem:[#allocation73_spill] sm:$0xff]  ;;  %v5756_v60 = vld [vmem:[#allocation80_spill] sm:$0xff] }
 0x223   : > { %5745 = vst [vmem:[#allocation43_spill] sm:$0xff] %v4662_v54  ;;  %v1180_v4 = vadd.f32 %v5749_v16, %v1140_v31  ;;  %v1179_v50 = vadd.f32 %v4334_v34, %v1139_v27  ;;  %v4679_v52 = vmul.f32 %v1654_v23, %v5710_v61  ;;  %v4682_v25 = vmul.f32 %v1654_v23, %v5719_v22  ;;  %v5752_v22 = vld [vmem:[#allocation74_spill] sm:$0xff]  ;;  %v5757_v16 = vld [vmem:[#allocation83_spill] sm:$0xff] }
 0x224   : > { %5747 = vst [vmem:[#allocation44_spill] sm:$0xff] %v4671_v10  ;;  %5748 = vst [vmem:[#allocation47_spill] sm:$0xff] %v4674_v48  ;;  %v1205_v33 = vadd.f32 %v5751_v28, %v4584_v30  ;;  %v1182_v11 = vadd.f32 %v4337_v13, %v1142_v26  ;;  %v1181_v31 = vadd.f32 %v4340_v46, %v1141_v12  ;;  %2204 = vrot.lane.b32.xlu1 %v2195_v49, %s3150_s23  ;;  %v5753_v13 = vld [vmem:[#allocation75_spill] sm:$0xff]  ;;  %v5754_v46 = vld [vmem:[#allocation76_spill] sm:$0xff] }
 0x225   : > { %5750 = vst [vmem:[#allocation48_spill] sm:$0xff] %v4679_v52  ;;  %v4693_v34 = vmul.f32 %v1654_v23, %v5721_v18  ;;  %v1204_v61 = vadd.f32 %v5752_v22, %v4595_v47  ;;  %2202 = vrot.lane.b32.xlu0 %v2194_v36, %s3150_s23  ;;  %v2197_v27 = vmul.f32 %v2193_v56, %v4548_v53  ;;  %v5755_v18 = vld [vmem:[#allocation79_spill] sm:$0xff]  ;;  %v2218_v12 = vstv %s4643_s29  ;;  %v5758_v28 = vld [vmem:[#allocation84_spill] sm:$0xff]  ;;  %v5759_v22 = vld [vmem:[#allocation85_spill] sm:$0xff]  ;;  %s2851_s29 = sld [smem:[#allocation7 + $0x35]] }
 0x226   : > { %v2196_v30 = vmul.f32 %v2193_v56, %v4550_v63  ;;  %v1207_v26 = vadd.f32 %v5753_v13, %v1155_v0  ;;  %v1206_v17 = vadd.f32 %v5754_v46, %v1154_v58  ;;  %v1230_v23 = vadd.f32 %v5755_v18, %v1162_v37  ;;  %v4713_v8 = vpop.permute.xlu1 %1774  ;;  %v4715_v56 = vpop.permute.xlu0 %1772  ;;  %v5760_v0 = vld [vmem:[#allocation86_spill] sm:$0xff]  ;;  %v5761_v58 = vld [vmem:[#allocation87_spill] sm:$0xff]  ;;  %v5762_v37 = vld [vmem:[#allocation88_spill] sm:$0xff] }
 0x227   : > { %v1229_v47 = vadd.f32 %v5756_v60, %v1161_v41  ;;  %v1232_v49 = vadd.f32 %v5757_v16, %v1164_v19  ;;  %v1231_v36 = vadd.f32 %v5758_v28, %v1163_v7  ;;  %v1255_v62 = vadd.f32 %v5759_v22, %v1171_v40  ;;  %v5763_v48 = vld [vmem:[#allocation93_spill] sm:$0xff]  ;;  %v5767_v16 = vld [vmem:[#allocation94_spill] sm:$0xff]  ;;  %v5770_v22 = vld [vmem:[#allocation96_spill] sm:$0xff] }
 0x228   : > { %v1254_v13 = vadd.f32 %v5760_v0, %v1170_v39  ;;  %v1257_v46 = vadd.f32 %v5761_v58, %v1173_v59  ;;  %v1256_v18 = vadd.f32 %v5762_v37, %v1172_v43  ;;  %v1867_v52 = vstv %s4659_s30  ;;  %2208 = vrot.lane.b32.xlu1 %v2197_v27, %s3150_s23  ;;  %v5764_v7 = vld [vmem:[#allocation89_spill] sm:$0xff]  ;;  %v5765_v39 = vld [vmem:[#allocation90_spill] sm:$0xff]  ;;  %v5766_v59 = vld [vmem:[#allocation91_spill] sm:$0xff]  ;;  %s2819_s30 = sld [smem:[#allocation7 + $0x15]] }
 0x229   : > { %v1305_v10 = vadd.f32 %v5763_v48, %v1205_v33  ;;  %2206 = vrot.lane.b32.xlu0 %v2196_v30, %s3150_s23  ;;  %v2220_v19 = vmul.f32 %v2218_v12, %v4514_v32  ;;  %v2219_v41 = vmul.f32 %v2218_v12, %v4517_v9  ;;  %v4727_v40 = vadd.f32 %v5764_v7, %v1180_v4  ;;  %v5768_v48 = vld [vmem:[#allocation92_spill] sm:$0xff]  ;;  %v5769_v27 = vld [vmem:[#allocation95_spill] sm:$0xff]  ;;  %v5772_v37 = vld [vmem:[#allocation98_spill] sm:$0xff] }
 0x22a   : > { %v4730_v60 = vadd.f32 %v5765_v39, %v1179_v50  ;;  %v1282_v43 = vadd.f32 %v5766_v59, %v1182_v11  ;;  %v1304_v28 = vadd.f32 %v5767_v16, %v1204_v61  ;;  %v1281_v33 = vadd.f32 %v5768_v48, %v1181_v31  ;;  %v4739_v58 = vpop.permute.xlu1 %1778  ;;  %v4741_v4 = vpop.permute.xlu0 %1776  ;;  %v5771_v11 = vld [vmem:[#allocation97_spill] sm:$0xff] }
 0x22b   : > { %v1307_v30 = vadd.f32 %v5769_v27, %v1207_v26  ;;  %v1306_v0 = vadd.f32 %v5770_v22, %v1206_v17  ;;  %v4746_v50 = vmul.f32 %v1867_v52, %v4140_v2  ;;  %v1330_v61 = vadd.f32 %v5771_v11, %v1230_v23  ;;  %v5773_v27 = vld [vmem:[#allocation99_spill] sm:$0xff] }
 0x22c   : > { %v1329_v7 = vadd.f32 %v5772_v37, %v1229_v47  ;;  %v4751_v31 = vmul.f32 %v1867_v52, %v4142_v6  ;;  %v1876_v26 = vstv %s4695_s26  ;;  %v1393_v39 = vadd.f32 %v4395_v51, %v1305_v10  ;;  %2229 = vrot.lane.b32.xlu1 %v2220_v19, %s3150_s23  ;;  %s5152_s26 = sld [smem:[#allocation7 + $0x6b]] }
 0x22d   : > { %2227 = vrot.lane.b32.xlu0 %v2219_v41, %s3150_s23  ;;  %v2222_v17 = vmul.f32 %v2218_v12, %v4548_v53  ;;  %v2221_v59 = vmul.f32 %v2218_v12, %v4550_v63  ;;  %v1392_v16 = vadd.f32 %v4412_v15, %v1304_v28  ;;  %v2243_v48 = vstv %s4707_s27  ;;  %v5774_v12 = vld [vmem:[#allocation100_spill] sm:$0xff]  ;;  %s5154_s27 = sld [smem:[#allocation7 + $0x30]] }
 0x22e   : > { %v4762_v23 = vmul.f32 %v1867_v52, %v4152_v1  ;;  %v4765_v47 = vmul.f32 %v1867_v52, %v4154_v3  ;;  %v1332_v22 = vadd.f32 %v5773_v27, %v1232_v49  ;;  %v1395_v51 = vadd.f32 %v4417_v29, %v1307_v30  ;;  %v4770_v19 = vpop.permute.xlu1 %1799  ;;  %v4772_v41 = vpop.permute.xlu0 %1797  ;;  %v5778_v30 = vld [vmem:[#allocation102_spill] sm:$0xff] }
 0x22f   : > { %v1394_v10 = vadd.f32 %v4420_v55, %v1306_v0  ;;  %v4775_v15 = vmul.f32 %v1876_v26, %v4140_v2  ;;  %v1331_v28 = vadd.f32 %v5774_v12, %v1231_v36  ;;  %v4779_v11 = vadd.f32 %v4434_v42, %v1330_v61  ;;  %v5777_v36 = vld [vmem:[#allocation101_spill] sm:$0xff] }
 0x230   : > { %v4782_v52 = vadd.f32 %v4437_v35, %v1329_v7  ;;  %v4785_v29 = vmul.f32 %v1876_v26, %v4142_v6  ;;  %2233 = vrot.lane.b32.xlu1 %v2222_v17, %s3150_s23  ;;  %v2245_v55 = vmul.f32 %v2243_v48, %v4514_v32  ;;  %v2244_v49 = vmul.f32 %v2243_v48, %v4517_v9  ;;  %v5781_v7 = vld [vmem:[#allocation103_spill] sm:$0xff] }
 0x231   : > { %2231 = vrot.lane.b32.xlu0 %v2221_v59, %s3150_s23  ;;  %v4794_v42 = vmul.f32 %v1876_v26, %v4152_v1  ;;  %v1355_v35 = vadd.f32 %v5777_v36, %v1255_v62  ;;  %v1354_v0 = vadd.f32 %v5778_v30, %v1254_v13  ;;  %v4799_v61 = vmul.f32 %v1876_v26, %v4154_v3  ;;  %v5782_v59 = vld [vmem:[#allocation104_spill] sm:$0xff]  ;;  %v5783_v62 = vld [vmem:[#allocation107_spill] sm:$0xff]  ;;  %v5789_v30 = vld [vmem:[#allocation130_spill] sm:$0xff] }
 0x232   : > { %5775 = vst [vmem:[#allocation49_spill] sm:$0xff] %v4785_v29  ;;  %v4802_v37 = vstv %s4734_s28  ;;  %v1357_v17 = vadd.f32 %v5781_v7, %v1257_v46  ;;  %v1356_v27 = vadd.f32 %v5782_v59, %v1256_v18  ;;  %v1404_v12 = vadd.f32 %v4453_v44, %v1332_v22  ;;  %v4807_v54 = vpop.permute.xlu1 %1803  ;;  %v4809_v29 = vpop.permute.xlu0 %1801  ;;  %v5784_v36 = vld [vmem:[#allocation108_spill] sm:$0xff]  ;;  %v5792_v59 = vld [vmem:[#allocation110_spill] sm:$0xff]  ;;  %s2925_s28 = smul.u32 1536, %s3136_s15 }
 0x233   : > { %5776 = vst [vmem:[#allocation50_spill] sm:$0xff] %v4794_v42  ;;  %5779 = vst [vmem:[#allocation51_spill] sm:$0xff] %v4799_v61  ;;  %v2268_v1 = vstv %s4743_s6  ;;  %v1382_v13 = vadd.f32 %v5783_v62, %v1282_v43  ;;  %v1381_v3 = vadd.f32 %v5784_v36, %v1281_v33  ;;  %v4817_v26 = vadd.f32 %v4456_v38, %v1331_v28  ;;  %v5793_v36 = vld [vmem:[#allocation46_spill] sm:$0xff]  ;;  %s219_s6 = scalar_lea.vmem [#allocation8], %s2924_s18 }
 0x234   : > { %5780 = vst [vmem:[#allocation52_spill] sm:$0xff] %v4802_v37  ;;  %v2247_v46 = vmul.f32 %v2243_v48, %v4548_v53  ;;  %2254 = vrot.lane.b32.xlu1 %v2245_v55, %s3151_s4  ;;  %v2246_v44 = vmul.f32 %v2243_v48, %v4550_v63  ;;  %v4825_v18 = vmul.f32 %v4802_v37, %v4140_v2  ;;  %v5787_v48 = vld [vmem:[#allocation105_spill] sm:$0xff]  ;;  %v5788_v2 = vld [vmem:[#allocation106_spill] sm:$0xff]  ;;  %s2628_s18 = sshll.u32 %s219_s6, 4  ;;  %s5215_s18 = int_to_ptr.vmem [resolvable:$true] %s2628_s18 }
 0x235   : > { %2252 = vrot.lane.b32.xlu0 %v2244_v49, %s3151_s4  ;;  %v4829_v43 = vmul.f32 %v4802_v37, %v4142_v6  ;;  %v4832_v33 = vadd.f32 %v4466_v14, %v1355_v35  ;;  %v4835_v38 = vadd.f32 %v4478_v45, %v1354_v0  ;;  %v2270_v22 = vmul.f32 %v2268_v1, %v4514_v32  ;;  %v5791_v0 = vld [vmem:[#allocation109_spill] sm:$0xff] }
 0x236   : > { %5785 = vst [vmem:[#allocation53_spill] sm:$0xff] %v4825_v18  ;;  %v2269_v28 = vmul.f32 %v2268_v1, %v4517_v9  ;;  %v1380_v55 = vadd.f32 %v5787_v48, %v4727_v40  ;;  %v1379_v49 = vadd.f32 %v5788_v2, %v4730_v60  ;;  %v4844_v6 = vadd.f32 %v4485_v24, %v1357_v17  ;;  %v4849_v35 = vpop.permute.xlu1 %1824  ;;  %v4851_v45 = vpop.permute.xlu0 %1822  ;;  %v5794_v40 = vld [vmem:[#allocation24_spill] sm:$0xff]  ;;  %v5795_v18 = vld [vmem:[#allocation111_spill] sm:$0xff] }
 0x237   : > { %5786 = vst [vmem:[#allocation57_spill] sm:$0xff] %v4829_v43  ;;  %v4847_v14 = vadd.f32 %v5789_v30, %v1356_v27  ;;  %5790 = vst [vmem:[#allocation54_spill] sm:$0xff] %v4851_v45  ;;  %v1445_v7 = vadd.f32 %v5791_v0, %v1393_v39  ;;  %v1444_v62 = vadd.f32 %v5792_v59, %v1392_v16  ;;  %v2293_v27 = vstv %s4791_s9  ;;  %v5796_v2 = vld [vmem:[#allocation123_spill] sm:$0xff]  ;;  %v5797_v30 = vld [vmem:[#allocation124_spill] sm:$0xff] }
 0x238   : > { %v1422_v43 = vadd.f32 %v5793_v36, %v1382_v13  ;;  %v1421_v48 = vadd.f32 %v5794_v40, %v1381_v3  ;;  %v1447_v60 = vadd.f32 %v5795_v18, %v1395_v51  ;;  %2258 = vrot.lane.b32.xlu1 %v2247_v46, %s3151_s4  ;;  %v2272_v24 = vmul.f32 %v2268_v1, %v4548_v53  ;;  %v5798_v0 = vld [vmem:[#allocation125_spill] sm:$0xff]  ;;  %v5799_v59 = vld [vmem:[#allocation126_spill] sm:$0xff]  ;;  %v5800_v36 = vld [vmem:[#allocation112_spill] sm:$0xff] }
 0x239   : > { %2256 = vrot.lane.b32.xlu0 %v2246_v44, %s3151_s4  ;;  %v2271_v17 = vmul.f32 %v2268_v1, %v4550_v63  ;;  %v1545_v13 = vadd.f32 %v5798_v0, %v1445_v7  ;;  %v1544_v3 = vadd.f32 %v5799_v59, %v1444_v62  ;;  %v1446_v40 = vadd.f32 %v5800_v36, %v1394_v10  ;;  %v5801_v51 = vld [vmem:[#allocation23_spill] sm:$0xff]  ;;  %v5808_v0 = vld [vmem:[#allocation128_spill] sm:$0xff] }
 0x23a   : > { %v1522_v39 = vadd.f32 %v5796_v2, %v1422_v43  ;;  %v1521_v16 = vadd.f32 %v5797_v30, %v1421_v48  ;;  %v4869_v18 = vadd.f32 %v5801_v51, %v1380_v55  ;;  %v5802_v46 = vld [vmem:[#allocation127_spill] sm:$0xff]  ;;  %v4872_v37 = vpop.permute.xlu1 %1828  ;;  %v4874_v61 = vpop.permute.xlu0 %1826  ;;  %v4877_v1 = vstv %s4812_s11  ;;  %v5805_v43 = vld [vmem:[#allocation45_spill] sm:$0xff]  ;;  %v5806_v48 = vld [vmem:[#allocation20_spill] sm:$0xff] }
 0x23b   : > { %v1547_v44 = vadd.f32 %v5802_v46, %v1447_v60  ;;  %5803 = vst [vmem:[#allocation55_spill] sm:$0xff] %v4872_v37  ;;  %5804 = vst [vmem:[#allocation56_spill] sm:$0xff] %v4874_v61  ;;  %v4880_v2 = vadd.f32 %v5805_v43, %v1379_v49  ;;  %v5807_v30 = vld [vmem:[#allocation41_spill] sm:$0xff]  ;;  %v2295_v10 = vmul.f32 %v2293_v27, %v4514_v32  ;;  %v5809_v49 = vld [vmem:[#allocation136_spill] sm:$0xff] }
 0x23c   : > { %v1622_v7 = vadd.f32 %v5806_v48, %v1522_v39  ;;  %v1621_v62 = vadd.f32 %v5807_v30, %v1521_v16  ;;  %v1546_v55 = vadd.f32 %v5808_v0, %v1446_v40  ;;  %2279 = vrot.lane.b32.xlu1 %v2270_v22, %s3151_s4  ;;  %v2294_v60 = vmul.f32 %v2293_v27, %v4517_v9  ;;  %v5810_v51 = vld [vmem:[#allocation27_spill] sm:$0xff]  ;;  %v5811_v22 = vld [vmem:[#allocation113_spill] sm:$0xff]  ;;  %v5818_v45 = vld [vmem:[#allocation132_spill] sm:$0xff] }
 0x23d   : > { %2277 = vrot.lane.b32.xlu0 %v2269_v28, %s3151_s4  ;;  %v2297_v59 = vmul.f32 %v2293_v27, %v4548_v53  ;;  %v1633_v36 = vadd.f32 %v5809_v49, %v1545_v13  ;;  %v1632_v39 = vadd.f32 %v5810_v51, %v1544_v3  ;;  %v2296_v16 = vmul.f32 %v2293_v27, %v4550_v63  ;;  %v5812_v28 = vld [vmem:[#allocation114_spill] sm:$0xff]  ;;  %v5813_v48 = vld [vmem:[#allocation115_spill] sm:$0xff]  ;;  %v5814_v0 = vld [vmem:[#allocation29_spill] sm:$0xff] }
 0x23e   : > { %v4897_v46 = vmul.f32 %v4877_v1, %v4514_v32  ;;  %v1470_v40 = vadd.f32 %v5811_v22, %v4779_v11  ;;  %v1469_v43 = vadd.f32 %v5812_v28, %v4782_v52  ;;  %v1472_v30 = vadd.f32 %v5813_v48, %v1404_v12  ;;  %v4905_v37 = vpop.permute.xlu1 %1849  ;;  %v4907_v13 = vpop.permute.xlu0 %1847  ;;  %v5815_v3 = vld [vmem:[#allocation21_spill] sm:$0xff]  ;;  %v5817_v11 = vld [vmem:[#allocation131_spill] sm:$0xff]  ;;  %v5819_v28 = vld [vmem:[#allocation30_spill] sm:$0xff] }
 0x23f   : > { %v1635_v61 = vadd.f32 %v5814_v0, %v1547_v44  ;;  %v1685_v27 = vadd.f32 %v5815_v3, %v1633_v36  ;;  %v5816_v49 = vld [vmem:[#allocation129_spill] sm:$0xff]  ;;  %v1662_v32 = vadd.f32 %v4682_v25, %v1622_v7  ;;  %v1661_v42 = vadd.f32 %v4693_v34, %v1621_v62  ;;  %v5820_v34 = vld [vmem:[#allocation116_spill] sm:$0xff]  ;;  %v5825_v48 = vld [vmem:[#allocation138_spill] sm:$0xff] }
 0x240   : > { %v1684_v51 = vadd.f32 %v5816_v49, %v1632_v39  ;;  %v1570_v22 = vadd.f32 %v5817_v11, %v1470_v40  ;;  %v1569_v52 = vadd.f32 %v5818_v45, %v1469_v43  ;;  %v1634_v12 = vadd.f32 %v5819_v28, %v1546_v55  ;;  %2283 = vrot.lane.b32.xlu1 %v2272_v24, %s3151_s4  ;;  %v5821_v62 = vld [vmem:[#allocation140_spill] sm:$0xff]  ;;  %v5826_v0 = vld [vmem:[#allocation31_spill] sm:$0xff]  ;;  %v5827_v28 = vld [vmem:[#allocation117_spill] sm:$0xff] }
 0x241   : > { %2281 = vrot.lane.b32.xlu0 %v2271_v17, %s3151_s4  ;;  %v1762_v44 = vadd.f32 %v4684_v21, %v1662_v32  ;;  %v1761_v36 = vadd.f32 %v4686_v5, %v1661_v42  ;;  %v1785_v39 = vadd.f32 %v4713_v8, %v1685_v27  ;;  %v1471_v7 = vadd.f32 %v5820_v34, %v4817_v26  ;;  %v5822_v21 = vld [vmem:[#allocation42_spill] sm:$0xff]  ;;  %v5824_v26 = vld [vmem:[#allocation141_spill] sm:$0xff] }
 0x242   : > { %v1784_v25 = vadd.f32 %v4715_v56, %v1684_v51  ;;  %v1572_v45 = vadd.f32 %v5821_v62, %v1472_v30  ;;  %v1854_v40 = vpop.permute.xlu1 %1853  ;;  %v1852_v55 = vpop.permute.xlu0 %1851  ;;  %v2319_v24 = vmul.f32 %v4877_v1, %v4517_v9  ;;  %v4929_v32 = vmul.f32 %v4877_v1, %v4548_v53  ;;  %v5823_v8 = vld [vmem:[#allocation22_spill] sm:$0xff] }
 0x243   : > { %v1687_v5 = vadd.f32 %v5822_v21, %v1635_v61  ;;  %v1686_v42 = vadd.f32 %v5823_v8, %v1634_v12  ;;  %v4933_v56 = vadd.f32 %v1854_v40, %v1762_v44  ;;  %v4935_v17 = vadd.f32 %v1852_v55, %v1761_v36  ;;  %v5834_v55 = vld [vmem:[#allocation33_spill] sm:$0xff]  ;;  %v5835_v8 = vld [vmem:[#allocation120_spill] sm:$0xff] }
 0x244   : > { %v1571_v43 = vadd.f32 %v5824_v26, %v1471_v7  ;;  %v1642_v30 = vadd.f32 %v5825_v48, %v1570_v22  ;;  %v1641_v3 = vadd.f32 %v5826_v0, %v1569_v52  ;;  %2304 = vrot.lane.b32.xlu1 %v2295_v10, %s3151_s4  ;;  %v4943_v27 = vstv %s4890_s10  ;;  %v5828_v22 = vld [vmem:[#allocation118_spill] sm:$0xff]  ;;  %v5829_v10 = vld [vmem:[#allocation119_spill] sm:$0xff]  ;;  %v5836_v26 = vld [vmem:[#allocation153_spill] sm:$0xff]  ;;  %s5209_s10 = scalar_lea.hbm %s5456_s2, %s2925_s28 }
 0x245   : > { %2302 = vrot.lane.b32.xlu0 %v2294_v60, %s3151_s4  ;;  %v1787_v61 = vadd.f32 %v4739_v58, %v1687_v5  ;;  %v1786_v49 = vadd.f32 %v4741_v4, %v1686_v42  ;;  %v1873_v51 = vadd.f32 %v4746_v50, %v1785_v39  ;;  %v1872_v11 = vadd.f32 %v4751_v31, %v1784_v25  ;;  %v5830_v58 = vld [vmem:[#allocation134_spill] sm:$0xff]  ;;  %v5831_v4 = vld [vmem:[#allocation25_spill] sm:$0xff] }
 0x246   : > { %v1495_v12 = vadd.f32 %v5827_v28, %v4832_v33  ;;  %v1494_v52 = vadd.f32 %v5828_v22, %v4835_v38  ;;  %v1497_v44 = vadd.f32 %v5829_v10, %v4844_v6  ;;  %v1644_v60 = vadd.f32 %v4619_v20, %v1572_v45  ;;  %v1915_v36 = vpop.permute.xlu1 %1914  ;;  %v1913_v34 = vpop.permute.xlu0 %1912  ;;  %v4962_v39 = vld [vmem:[#allocation2 + $0x5a] sm:$0xff]  ;;  %v5833_v38 = vld [vmem:[#allocation150_spill] sm:$0xff] }
 0x247   : > { %v1710_v7 = vadd.f32 %v5830_v58, %v1642_v30  ;;  %v1709_v62 = vadd.f32 %v5831_v4, %v1641_v3  ;;  %v4958_v50 = vadd.f32 %v1915_v36, %v1873_v51  ;;  %v4960_v31 = vadd.f32 %v1913_v34, %v1872_v11  ;;  %v5832_v33 = vld [vmem:[#allocation149_spill] sm:$0xff]  ;;  %v5840_v51 = vld [vmem:[#allocation34_spill] sm:$0xff]  ;;  %v5844_v34 = vld [vmem:[#allocation43_spill] sm:$0xff] }
 0x248   : > { %v1595_v25 = vadd.f32 %v5832_v33, %v1495_v12  ;;  %v1594_v40 = vadd.f32 %v5833_v38, %v1494_v52  ;;  %v1643_v6 = vadd.f32 %v5834_v55, %v1571_v43  ;;  %2308 = vrot.lane.b32.xlu1 %v2297_v59, %s3151_s4  ;;  %v1875_v21 = vadd.f32 %v4762_v23, %v1787_v61  ;;  %v5838_v23 = vld [vmem:[#allocation135_spill] sm:$0xff]  ;;  %v5839_v61 = vld [vmem:[#allocation154_spill] sm:$0xff]  ;;  %v5841_v52 = vld [vmem:[#allocation49_spill] sm:$0xff] }
 0x249   : > { %2306 = vrot.lane.b32.xlu0 %v2296_v16, %s3151_s4  ;;  %v1810_v20 = vadd.f32 %v4770_v19, %v1710_v7  ;;  %v1809_v45 = vadd.f32 %v4772_v41, %v1709_v62  ;;  %v1874_v5 = vadd.f32 %v4765_v47, %v1786_v49  ;;  %v1496_v42 = vadd.f32 %v5835_v8, %v4847_v14  ;;  %v5837_v19 = vld [vmem:[#allocation26_spill] sm:$0xff]  ;;  %v4988_v14 = vld [vmem:[#allocation2 + $0x52] sm:$0xff] }
 0x24a   : > { %v1597_v48 = vadd.f32 %v5836_v26, %v1497_v44  ;;  %v1919_v30 = vpop.permute.xlu1 %1918  ;;  %v1917_v0 = vpop.permute.xlu0 %1916  ;;  %v2321_v59 = vmul.f32 %v4877_v1, %v4550_v63  ;;  %v2385_v16 = vmul.f32 %v4943_v27, %v4962_v39  ;;  %v1712_v41 = vadd.f32 %v5837_v19, %v1644_v60  ;;  %v5842_v44 = vld [vmem:[#allocation121_spill] sm:$0xff]  ;;  %v5849_v55 = vld [vmem:[#allocation44_spill] sm:$0xff] }
 0x24b   : > { %v1711_v43 = vadd.f32 %v5838_v23, %v1643_v6  ;;  %v4984_v47 = vadd.f32 %v1919_v30, %v1875_v21  ;;  %v4986_v3 = vadd.f32 %v1917_v0, %v1874_v5  ;;  %v1596_v49 = vadd.f32 %v5839_v61, %v1496_v42  ;;  %v5851_v5 = vld [vmem:[#allocation50_spill] sm:$0xff]  ;;  %v5852_v42 = vld [vmem:[#allocation51_spill] sm:$0xff]  ;;  %v5854_v61 = vld [vmem:[#allocation32_spill] sm:$0xff] }
 0x24c   : > { %v1651_v11 = vadd.f32 %v5840_v51, %v1595_v25  ;;  %v1650_v1 = vadd.f32 %v4648_v57, %v1594_v40  ;;  %2329 = vrot.lane.b32.xlu1 %v4897_v46, %s3151_s4  ;;  %v1812_v28 = vadd.f32 %v4807_v54, %v1712_v41  ;;  %v1882_v22 = vadd.f32 %v4775_v15, %v1810_v20  ;;  %v5843_v57 = vld [vmem:[#allocation122_spill] sm:$0xff]  ;;  %v5845_v54 = vld [vmem:[#allocation28_spill] sm:$0xff]  ;;  %v5855_v51 = vld [vmem:[#allocation139_spill] sm:$0xff] }
 0x24d   : > { %2327 = vrot.lane.b32.xlu0 %v2319_v24, %s3151_s4  ;;  %v1811_v12 = vadd.f32 %v4809_v29, %v1711_v43  ;;  %v1881_v10 = vadd.f32 %v5841_v52, %v1809_v45  ;;  %v1520_v60 = vadd.f32 %v5842_v44, %v4869_v18  ;;  %v1519_v36 = vadd.f32 %v5843_v57, %v4880_v2  ;;  %v5846_v29 = vld [vmem:[#allocation137_spill] sm:$0xff]  ;;  %v5015_v25 = vld [vmem:[#allocation2 + $0x6a] sm:$0xff]  ;;  %v5848_v2 = vld [vmem:[#allocation156_spill] sm:$0xff] }
 0x24e   : > { %v1653_v46 = vadd.f32 %v5844_v34, %v1597_v48  ;;  %v1940_v58 = vpop.permute.xlu1 %1939  ;;  %v1938_v24 = vpop.permute.xlu0 %1937  ;;  %v2384_v7 = vmul.f32 %v4943_v27, %v4988_v14  ;;  %v1735_v4 = vadd.f32 %v5845_v54, %v1651_v11  ;;  %v1734_v62 = vadd.f32 %v5846_v29, %v1650_v1  ;;  %v5847_v18 = vld [vmem:[#allocation155_spill] sm:$0xff]  ;;  %v5850_v45 = vld [vmem:[#allocation54_spill] sm:$0xff]  ;;  %v5857_v52 = vld [vmem:[#allocation48_spill] sm:$0xff] }
 0x24f   : > { %v5011_v15 = vadd.f32 %v1940_v58, %v1882_v22  ;;  %v5013_v33 = vadd.f32 %v1938_v24, %v1881_v10  ;;  %v1620_v38 = vadd.f32 %v5847_v18, %v1520_v60  ;;  %v1619_v40 = vadd.f32 %v5848_v2, %v1519_v36  ;;  %v5027_v48 = vld [vmem:[#allocation2 + $0x62] sm:$0xff]  ;;  %v5858_v57 = vld [vmem:[#allocation55_spill] sm:$0xff]  ;;  %v5859_v34 = vld [vmem:[#allocation56_spill] sm:$0xff] }
 0x250   : > { %v1652_v6 = vadd.f32 %v5849_v55, %v1596_v49  ;;  %2333 = vrot.lane.b32.xlu1 %v4929_v32, %s3151_s4  ;;  %v1835_v20 = vadd.f32 %v4849_v35, %v1735_v4  ;;  %v1834_v21 = vadd.f32 %v5850_v45, %v1734_v62  ;;  %v1884_v8 = vadd.f32 %v5851_v5, %v1812_v28  ;;  %v3009_v41 = vld [vmem:[#allocation2 + $0x68] sm:$0xff]  ;;  %v5853_v32 = vld [vmem:[#allocation52_spill] sm:$0xff]  ;;  %v5860_v58 = vld [vmem:[#allocation53_spill] sm:$0xff] }
 0x251   : > { %2331 = vrot.lane.b32.xlu0 %v2321_v59, %s3151_s4  ;;  %v1883_v26 = vadd.f32 %v5852_v42, %v1811_v12  ;;  %v2387_v19 = vmul.f32 %v4943_v27, %v5015_v25  ;;  %v1889_v23 = vmul.f32 %v3009_v41, %v5853_v32  ;;  %v3010_v59 = vld [vmem:[#allocation2 + $0x60] sm:$0xff]  ;;  %v1894_v43 = vstv %s4980_s22  ;;  %v5856_v12 = vld [vmem:[#allocation47_spill] sm:$0xff]  ;;  %v3011_v18 = vld [vmem:[#allocation2 + $0x58] sm:$0xff]  ;;  %s5218_s22 = sld [smem:[#allocation7 + $0x4b]] }
 0x252   : > { %v1944_v30 = vpop.permute.xlu1 %1943  ;;  %v1942_v0 = vpop.permute.xlu0 %1941  ;;  %v1888_v35 = vmul.f32 %v3010_v59, %v5853_v32  ;;  %v1737_v49 = vadd.f32 %v5854_v61, %v1653_v46  ;;  %v1736_v11 = vadd.f32 %v5855_v51, %v1652_v6  ;;  %v1660_v22 = vadd.f32 %v5856_v12, %v1620_v38  ;;  %v5861_v54 = vld [vmem:[#allocation57_spill] sm:$0xff]  ;;  %v5863_v2 = vld [vmem:[#allocation38_spill] sm:$0xff]  ;;  %v3012_v45 = vld [vmem:[#allocation2 + $0x50] sm:$0xff] }
 0x253   : > { %v5036_v1 = vadd.f32 %v1944_v30, %v1884_v8  ;;  %v5038_v28 = vadd.f32 %v1942_v0, %v1883_v26  ;;  %v1659_v10 = vadd.f32 %v5857_v52, %v1619_v40  ;;  %v2386_v44 = vmul.f32 %v4943_v27, %v5027_v48  ;;  %v5862_v38 = vld [vmem:[#allocation37_spill] sm:$0xff] }
 0x254   : > { %2394 = vrot.lane.b32.xlu1 %v2385_v16, %s3150_s23  ;;  %v2408_v60 = vstv %s4996_s20  ;;  %v1837_v36 = vadd.f32 %v5858_v57, %v1737_v49  ;;  %v1836_v46 = vadd.f32 %v5859_v34, %v1736_v11  ;;  %v1891_v24 = vadd.f32 %v5860_v58, %v1835_v20  ;;  %s2604_s20 = scalar_lea.sflag [#allocation5], %s3292_s7 }
 0x255   : > { %2392 = vrot.lane.b32.xlu0 %v2384_v7, %s3150_s23  ;;  %v1890_v4 = vadd.f32 %v5861_v54, %v1834_v21  ;;  %v1896_v16 = vmul.f32 %v3011_v18, %v1894_v43  ;;  %v1760_v7 = vadd.f32 %v5862_v38, %v1660_v22  ;;  %v1759_v40 = vadd.f32 %v5863_v2, %v1659_v10 }
 0x256   : > { %v1965_v29 = vpop.permute.xlu1 %1964  ;;  %v1963_v62 = vpop.permute.xlu0 %1962  ;;  %v2410_v6 = vmul.f32 %v2408_v60, %v4962_v39  ;;  %v2409_v20 = vmul.f32 %v2408_v60, %v4988_v14  ;;  %v1895_v21 = vmul.f32 %v3012_v45, %v1894_v43  ;;  %v1893_v42 = vadd.f32 %v1889_v23, %v1837_v36 }
 0x257   : > { %v5055_v27 = vadd.f32 %v1965_v29, %v1891_v24  ;;  %v5057_v55 = vadd.f32 %v1963_v62, %v1890_v4  ;;  %v1860_v5 = vadd.f32 %v4905_v37, %v1760_v7  ;;  %v1859_v8 = vadd.f32 %v4907_v13, %v1759_v40 }
 0x258   : > { %2398 = vrot.lane.b32.xlu1 %v2387_v19, %s3150_s23  ;;  %v1892_v26 = vadd.f32 %v1888_v35, %v1836_v46  ;;  %v2412_v61 = vmul.f32 %v2408_v60, %v5015_v25  ;;  %v2411_v49 = vmul.f32 %v2408_v60, %v5027_v48  ;;  %v1898_v37 = vmul.f32 %v3009_v41, %v1894_v43 }
 0x259   : > { %2396 = vrot.lane.b32.xlu0 %v2386_v44, %s3150_s23  ;;  %v1900_v51 = vadd.f32 %v1896_v16, %v1860_v5  ;;  %v1899_v11 = vadd.f32 %v1895_v21, %v1859_v8  ;;  %v1897_v13 = vmul.f32 %v3010_v59, %v1894_v43  ;;  %v2433_v23 = vstv %s5051_s19  ;;  %s3060_s19 = scalar_lea.vmem %s5215_s18, 1536 }
 0x25a   : > { %v1969_v30 = vpop.permute.xlu1 %1968  ;;  %v1967_v0 = vpop.permute.xlu0 %1966  ;;  %v2435_v10 = vmul.f32 %v2433_v23, %v4962_v39  ;;  %v2434_v44 = vmul.f32 %v2433_v23, %v4988_v14  ;;  %v1902_v41 = vadd.f32 %v1898_v37, %v4933_v56  ;;  %v2437_v34 = vmul.f32 %v2433_v23, %v5015_v25  ;;  %p3061_p3 = scmp.ne.s32.totalorder %s5215_s18, %s3060_s19 }
 0x25b   : > { %v5065_v32 = vadd.f32 %v1969_v30, %v1893_v42  ;;  %v5067_v19 = vadd.f32 %v1967_v0, %v1892_v26  ;;  %v1901_v59 = vadd.f32 %v1897_v13, %v4935_v17  ;;  %v2436_v46 = vmul.f32 %v2433_v23, %v5027_v48 }
 0x25c   : > { %2419 = vrot.lane.b32.xlu1 %v2410_v6, %s3150_s23  ;;  %v2458_v58 = vstv %s2904_s1  ;;  %v2483_v7 = vstv %s2824_s21  ;;  %v2508_v42 = vstv %s2851_s29  ;;  %p3062_p12 = pnand %p3061_p3, %p5877_p7  ;;  %s3152_s1 = smov [#allocation8]  }
 0x25d   : > { %2417 = vrot.lane.b32.xlu0 %v2409_v20, %s3150_s23  ;;  %v2460_v4 = vmul.f32 %v2458_v58, %v4962_v39  ;;  %v2459_v29 = vmul.f32 %v2458_v58, %v4988_v14  ;;  %v2484_v20 = vmul.f32 %v2483_v7, %v4988_v14  ;;  %s3064_s21 = sshll.u32 %s3152_s1, 4  ;;  %s3065_s21 = int_to_ptr.vmem [resolvable:$false] %s3064_s21 }
 0x25e   : > { %v1990_v35 = vpop.permute.xlu1 %1989  ;;  %v1988_v12 = vpop.permute.xlu0 %1987  ;;  %p3063_p2 = pneg %p3062_p12  ;;  %s3066_s29 = scalar_lea.vmem %s3065_s21, 3072 }
 0x25f   : > { %v5074_v22 = vadd.f32 %v1990_v35, %v1900_v51  ;;  %v5076_v52 = vadd.f32 %v1988_v12, %v1899_v11  ;;  %p3067_p1 = scmp.lt.s32.totalorder %s5215_s18, %s3065_s21  ;;  %p3068_p9 = scmp.lt.s32.totalorder %s3066_s29, %s3060_s19 }
 0x260   : > { %2423 = vrot.lane.b32.xlu1 %v2412_v61, %s3150_s23  ;;  %v2509_v61 = vmul.f32 %v2508_v42, %v4988_v14 }
 0x261   : > { %2421 = vrot.lane.b32.xlu0 %v2411_v49, %s3150_s23  ;;  %p3069_p8 = por %p3068_p9, %p3067_p1 }
 0x262   : > { %v1994_v43 = vpop.permute.xlu1 %1993  ;;  %v1992_v60 = vpop.permute.xlu0 %1991 }
 0x263   : > { %v5084_v57 = vadd.f32 %v1994_v43, %v1902_v41  ;;  %v5086_v36 = vadd.f32 %v1992_v60, %v1901_v59  ;;  %v5864_v41 = vld [vmem:[#allocation133_spill] sm:$0xff]  ;;  %p3070_p13 = pnand %p3069_p8, %p3063_p2 }
 0x264   : > { %2444 = vrot.lane.b32.xlu1 %v2435_v10, %s3150_s23 }
 0x265   : > { %2442 = vrot.lane.b32.xlu0 %v2434_v44, %s3150_s23 }
 0x266   : > { %v2015_v24 = vpop.permute.xlu1 %2014  ;;  %v2013_v56 = vpop.permute.xlu0 %2012 }
 0x267   : > { %v5093_v17 = vadd.f32 %v2015_v24, %v4958_v50  ;;  %v5096_v54 = vadd.f32 %v2013_v56, %v4960_v31  ;;  %v2462_v50 = vmul.f32 %v2458_v58, %v5015_v25  ;;  %v2461_v31 = vmul.f32 %v2458_v58, %v5027_v48  ;;  %v5866_v58 = vld [vmem:[#allocation15_spill] sm:$0xff]  ;;  %v5867_v24 = vld [vmem:[#allocation12_spill] sm:$0xff]  ;;  %v5869_v56 = vld [vmem:[#allocation17_spill] sm:$0xff] }
 0x268   : > { %2448 = vrot.lane.b32.xlu1 %v2437_v34, %s3150_s23  ;;  %254 = vst.msk [vmem:[%s219_s6 + $0x8] sm:$0xff] %vm252_vm0, %v5866_v58  ;;  %255 = vst.msk [vmem:[%s219_s6 + $0x10] sm:$0xff] %vm252_vm0, %v5867_v24 }
 0x269   : > { %2446 = vrot.lane.b32.xlu0 %v2436_v46, %s3150_s23  ;;  %v5865_v46 = vld [vmem:[#allocation13_spill] sm:$0xff]  ;;  %2787 = vst.msk [vmem:[%s219_s6 + $0x20] sm:$0xff] %vm252_vm0, %v5869_v56 }
 0x26a   : > { %v2019_v62 = vpop.permute.xlu1 %2018  ;;  %v2017_v18 = vpop.permute.xlu0 %2016  ;;  %253 = vst.msk [vmem:[%s219_s6] sm:$0xff] %vm252_vm0, %v5865_v46 }
 0x26b   : > { %v5103_v16 = vadd.f32 %v2019_v62, %v4984_v47  ;;  %v5106_v38 = vadd.f32 %v2017_v18, %v4986_v3  ;;  %v2485_v3 = vmul.f32 %v2483_v7, %v4962_v39  ;;  %v5874_v62 = vld [vmem:[#allocation35_spill] sm:$0xff]  ;;  %v5875_v18 = vld [vmem:[#allocation40_spill] sm:$0xff] }
 0x26c   : > { %2469 = vrot.lane.b32.xlu1 %v2460_v4, %s3150_s23  ;;  %v5872_v4 = vld [vmem:[#allocation18_spill] sm:$0xff]  ;;  %2796 = vst.msk [vmem:[%s219_s6 + $0x48] sm:$0xff] %vm252_vm0, %v5874_v62  ;;  %2797 = vst.msk [vmem:[%s219_s6 + $0x50] sm:$0xff] %vm252_vm0, %v5875_v18 }
 0x26d   : > { %2467 = vrot.lane.b32.xlu0 %v2459_v29, %s3150_s23  ;;  %2790 = vst.msk [vmem:[%s219_s6 + $0x38] sm:$0xff] %vm252_vm0, %v5872_v4  ;;  %v5873_v29 = vld [vmem:[#allocation36_spill] sm:$0xff] }
 0x26e   : > { %v2040_v2 = vpop.permute.xlu1 %2039  ;;  %v2038_v40 = vpop.permute.xlu0 %2037  ;;  %2795 = vst.msk [vmem:[%s219_s6 + $0x40] sm:$0xff] %vm252_vm0, %v5873_v29 }
 0x26f   : > { %v5113_v6 = vadd.f32 %v2040_v2, %v5011_v15  ;;  %v5116_v47 = vadd.f32 %v2038_v40, %v5013_v33  ;;  %v2487_v15 = vmul.f32 %v2483_v7, %v5015_v25  ;;  %v2486_v33 = vmul.f32 %v2483_v7, %v5027_v48 }
 0x270   : > { %2473 = vrot.lane.b32.xlu1 %v2462_v50, %s3150_s23  ;;  %v5876_v50 = vld [vmem:[#allocation39_spill] sm:$0xff] }
 0x271   : > { %2471 = vrot.lane.b32.xlu0 %v2461_v31, %s3150_s23  ;;  %s2878_s23 = sld [smem:[#allocation7 + $0x50]]  ;;  %2798 = vst.msk [vmem:[%s219_s6 + $0x58] sm:$0xff] %vm252_vm0, %v5876_v50 }
 0x272   : > { %v2044_v45 = vpop.permute.xlu1 %2043  ;;  %v2042_v21 = vpop.permute.xlu0 %2041 }
 0x273   : > { %v5123_v5 = vadd.f32 %v2044_v45, %v5036_v1  ;;  %v5126_v8 = vadd.f32 %v2042_v21, %v5038_v28  ;;  %v2510_v28 = vmul.f32 %v2508_v42, %v4962_v39  ;;  %v2558_v45 = vstv %s5152_s26 }
 0x274   : > { %2494 = vrot.lane.b32.xlu1 %v2485_v3, %s3151_s4 }
 0x275   : > { %2492 = vrot.lane.b32.xlu0 %v2484_v20, %s3151_s4 }
 0x276   : > { %v2065_v26 = vpop.permute.xlu1 %2064  ;;  %v2063_v30 = vpop.permute.xlu0 %2062 }
 0x277   : > { %v5133_v0 = vadd.f32 %v2065_v26, %v5055_v27  ;;  %v5136_v1 = vadd.f32 %v2063_v30, %v5057_v55  ;;  %v2512_v27 = vmul.f32 %v2508_v42, %v5015_v25  ;;  %v2511_v55 = vmul.f32 %v2508_v42, %v5027_v48 }
 0x278   : > { %2498 = vrot.lane.b32.xlu1 %v2487_v15, %s3151_s4  ;;  %v2533_v13 = vstv %s2878_s23  ;;  %v2116_v15 = vstv %s5154_s27 }
 0x279   : > { %2496 = vrot.lane.b32.xlu0 %v2486_v33, %s3151_s4  ;;  %v2535_v10 = vmul.f32 %v2533_v13, %v4962_v39  ;;  %v2534_v44 = vmul.f32 %v2533_v13, %v4988_v14  ;;  %v2537_v31 = vmul.f32 %v2533_v13, %v5015_v25  ;;  %v2536_v7 = vmul.f32 %v2533_v13, %v5027_v48 }
 0x27a   : > { %v2069_v49 = vpop.permute.xlu1 %2068  ;;  %v2067_v37 = vpop.permute.xlu0 %2066 }
 0x27b   : > { %v5143_v51 = vadd.f32 %v2069_v49, %v5065_v32  ;;  %v5146_v11 = vadd.f32 %v2067_v37, %v5067_v19  ;;  %v2107_v32 = vstv %s2819_s30 }
 0x27c   : > { %2519 = vrot.lane.b32.xlu1 %v2510_v28, %s3151_s4  ;;  %v2109_v59 = vmul.f32 %v2107_v32, %v5864_v41  ;;  %v2108_v43 = vmul.f32 %v2107_v32, %v4517_v9  ;;  %v5868_v9 = vld [vmem:[#allocation14_spill] sm:$0xff]  ;;  %v2111_v2 = vmul.f32 %v2107_v32, %v4548_v53  ;;  %v2110_v20 = vmul.f32 %v2107_v32, %v4550_v63 }
 0x27d   : > { %2517 = vrot.lane.b32.xlu0 %v2509_v61, %s3151_s4  ;;  %256 = vst.msk [vmem:[%s219_s6 + $0x18] sm:$0xff] %vm252_vm0, %v5868_v9 }
 0x27e   : > { %v2090_v23 = vpop.permute.xlu1 %2089  ;;  %v2088_v35 = vpop.permute.xlu0 %2087  ;;  %v2113_v40 = vadd.f32 %v2109_v59, %v5093_v17  ;;  %v2112_v3 = vadd.f32 %v2108_v43, %v5096_v54 }
 0x27f   : > { %v5157_v19 = vadd.f32 %v2090_v23, %v5074_v22  ;;  %v5160_v12 = vadd.f32 %v2088_v35, %v5076_v52 }
 0x280   : > { %2523 = vrot.lane.b32.xlu1 %v2512_v27, %s3151_s4 }
 0x281   : > { %2521 = vrot.lane.b32.xlu0 %v2511_v55, %s3151_s4 }
 0x282   : > { %v2094_v60 = vpop.permute.xlu1 %2093  ;;  %v2092_v34 = vpop.permute.xlu0 %2091 }
 0x283   : > { %v5170_v22 = vadd.f32 %v2094_v60, %v5084_v57  ;;  %v5173_v52 = vadd.f32 %v2092_v34, %v5086_v36  ;;  %v5870_v57 = vld [vmem:[#allocation16_spill] sm:$0xff]  ;;  %v5871_v36 = vld [vmem:[#allocation19_spill] sm:$0xff] }
 0x284   : > { %2788 = vst.msk [vmem:[%s219_s6 + $0x28] sm:$0xff] %vm252_vm0, %v5870_v57  ;;  %2789 = vst.msk [vmem:[%s219_s6 + $0x30] sm:$0xff] %vm252_vm0, %v5871_v36  ;;  %2544 = vrot.lane.b32.xlu1 %v2535_v10, %s3151_s4 }
 0x285   : > { %2542 = vrot.lane.b32.xlu0 %v2534_v44, %s3151_s4 }
 0x286   : > { %v2155_v21 = vpop.permute.xlu1 %2154  ;;  %v2153_v53 = vpop.permute.xlu0 %2152 }
 0x287   : > { %v5220_v33 = vadd.f32 %v2155_v21, %v2113_v40  ;;  %v5222_v42 = vadd.f32 %v2153_v53, %v2112_v3 }
 0x288   : > { %3073 = shalt.err (!%p3070_p13)
}
 0x289   : > { %s3074_s23 = scalar_lea.hbm %s5209_s10, 1536  ;;  %s3078_s27 = scalar_lea.hbm %s5456_s2, 3072 }
 0x28a   : > { %p3075_p4 = scmp.ne.s32.totalorder %s5209_s10, %s3074_s23  ;;  %p3079_p11 = scmp.lt.s32.totalorder %s5209_s10, %s5456_s2 }
 0x28b   : > { %p3080_p5 = scmp.lt.s32.totalorder %s3078_s27, %s3074_s23 }
 0x28c   : > { %p3076_p6 = pnand %p3075_p4, %p5877_p7 }
 0x28d   : > { %p3081_p0 = por %p3080_p5, %p3079_p11 }
 0x28e   : > { %p3077_p10 = pneg %p3076_p6 }
 0x290   : > { %p3082_p3 = pnand %p3081_p0, %p3077_p10 }
 0x292   : > { %3085 = shalt.err (!%p3082_p3)
}
 0x293   : > { %s3153_s9 = smov 128   ;;  %s3154_s11 = smov 8   ;;  %2548 = vrot.lane.b32.xlu1 %v2537_v31, %s3151_s4  ;;  %2546 = vrot.lane.b32.xlu0 %v2536_v7, %s3151_s4  ;;  %v2560_v63 = vmul.f32 %v2558_v45, %v4962_v39  ;;  %v2559_v17 = vmul.f32 %v2558_v45, %v4988_v14  ;;  %v2115_v54 = vadd.f32 %v2111_v2, %v5103_v16  ;;  %v3013_v30 = vld [vmem:[#allocation2 + $0x59] sm:$0xff]  ;;  %v3014_v61 = vld [vmem:[#allocation2 + $0x51] sm:$0xff]  ;;  %v2159_v37 = vpop.permute.xlu1 %2158  ;;  %v2157_v27 = vpop.permute.xlu0 %2156  ;;  %v3015_v32 = vld [vmem:[#allocation2 + $0x69] sm:$0xff]  ;;  %v2125_v60 = vstv %s5218_s22 }
 0x294   : > { %2932 = dma.vmem_to_hbm [thread:$0]  (%p5877_p7), %s5215_s18, 1536, %s5209_s10, %s2604_s20, %s3153_s9, %s3153_s9, %s3154_s11   ;;  %v2114_v26 = vadd.f32 %v2110_v20, %v5106_v38  ;;  %v2118_v28 = vmul.f32 %v3013_v30, %v2116_v15  ;;  %v2117_v49 = vmul.f32 %v3014_v61, %v2116_v15  ;;  %v2562_v23 = vmul.f32 %v2558_v45, %v5015_v25  ;;  %v3016_v44 = vld [vmem:[#allocation2 + $0x61] sm:$0xff] }
 0x295   : > { %v5253_v55 = vadd.f32 %v2159_v37, %v2115_v54  ;;  %v2561_v16 = vmul.f32 %v2558_v45, %v5027_v48  ;;  %v2120_v10 = vmul.f32 %v3015_v32, %v2116_v15  ;;  %v2119_v41 = vmul.f32 %v3016_v44, %v2116_v15  ;;  %s2900_s24 = sld [smem:[#allocation7 + $0x66]]  ;;  %p233_p7 = scmp.lt.s32.totalorder %s3136_s15, 1 }
 0x296   : > { %v5255_v13 = vadd.f32 %v2157_v27, %v2114_v26  ;;  %v2122_v38 = vadd.f32 %v2118_v28, %v5113_v6  ;;  %v2121_v35 = vadd.f32 %v2117_v49, %v5116_v47  ;;  %v2127_v58 = vmul.f32 %v3013_v30, %v2125_v60  ;;  %s2822_s7 = sld [smem:[#allocation7 + $0x18]] }
 0x297   : > { %2569 = vrot.lane.b32.xlu1 %v2560_v63, %s3151_s4  ;;  %2567 = vrot.lane.b32.xlu0 %v2559_v17, %s3151_s4  ;;  %v2180_v59 = vpop.permute.xlu1 %2179  ;;  %v2178_v43 = vpop.permute.xlu0 %2177  ;;  %v2124_v6 = vadd.f32 %v2120_v10, %v5123_v5  ;;  %v2123_v47 = vadd.f32 %v2119_v41, %v5126_v8  ;;  %v2126_v24 = vmul.f32 %v3014_v61, %v2125_v60  ;;  %s5892_s15 = smov (!%p233_p7, %s3136_s15), 1  ;;  %s2876_s18 = sld [smem:[#allocation7 + $0x4e]]  ;;  %vm2583_vm2 = vcmask 244736  }
 0x298   : > { %v5264_v34 = vadd.f32 %v2180_v59, %v2122_v38  ;;  %v5266_v46 = vadd.f32 %v2178_v43, %v2121_v35  ;;  %v2131_v4 = vadd.f32 %v2127_v58, %v5133_v0  ;;  %v2129_v62 = vmul.f32 %v3015_v32, %v2125_v60  ;;  %s2921_s10 = sshll.u32 %s5892_s15, 7  ;;  %s2903_s15 = sld [smem:[#allocation7 + $0x69]] }
 0x299   : > { %v2130_v29 = vadd.f32 %v2126_v24, %v5136_v1  ;;  %v2128_v18 = vmul.f32 %v3016_v44, %v2125_v60  ;;  %s5357_s19 = scalar_lea.vmem %s5457_s3, %s2921_s10 }
 0x29a   : > { %v2133_v2 = vadd.f32 %v2129_v62, %v5143_v51 }
 0x29b   : > { %2573 = vrot.lane.b32.xlu1 %v2562_v23, %s3151_s4  ;;  %2571 = vrot.lane.b32.xlu0 %v2561_v16, %s3151_s4  ;;  %v2184_v9 = vpop.permute.xlu1 %2183  ;;  %v2182_v56 = vpop.permute.xlu0 %2181  ;;  %v2134_v7 = vstv %s2900_s24  ;;  %v2132_v40 = vadd.f32 %v2128_v18, %v5146_v11  ;;  %s2849_s4 = sld [smem:[#allocation7 + $0x33]] }
 0x29c   : > { %v5272_v57 = vadd.f32 %v2184_v9, %v2124_v6  ;;  %v5274_v36 = vadd.f32 %v2182_v56, %v2123_v47  ;;  %v2136_v3 = vmul.f32 %v3013_v30, %v2134_v7  ;;  %v2135_v20 = vmul.f32 %v3014_v61, %v2134_v7 }
 0x29d   : > { %v2138_v63 = vmul.f32 %v3015_v32, %v2134_v7  ;;  %v2137_v17 = vmul.f32 %v3016_v44, %v2134_v7 }
 0x29e   : > { %v2140_v53 = vadd.f32 %v2136_v3, %v5157_v19  ;;  %v2139_v15 = vadd.f32 %v2135_v20, %v5160_v12 }
 0x29f   : > { %v2205_v50 = vpop.permute.xlu1 %2204  ;;  %v2203_v31 = vpop.permute.xlu0 %2202  ;;  %v2142_v11 = vadd.f32 %v2138_v63, %v5170_v22  ;;  %v2141_v30 = vadd.f32 %v2137_v17, %v5173_v52 }
 0x2a0   : > { %v5278_v5 = vadd.f32 %v2205_v50, %v2131_v4  ;;  %v5280_v8 = vadd.f32 %v2203_v31, %v2130_v29 }
 0x2a1   : > { %v2356_v17 = vstv %s2849_s4 }
 0x2a3   : > { %v2209_v45 = vpop.permute.xlu1 %2208  ;;  %v2207_v21 = vpop.permute.xlu0 %2206 }
 0x2a4   : > { %v5284_v0 = vadd.f32 %v2209_v45, %v2133_v2  ;;  %v5286_v1 = vadd.f32 %v2207_v21, %v2132_v40  ;;  %v2347_v2 = vstv %s2822_s7 }
 0x2a5   : > { %v2349_v21 = vmul.f32 %v2347_v2, %v4962_v39  ;;  %v2350_v63 = vmul.f32 %v2347_v2, %v5027_v48 }
 0x2a7   : > { %v2230_v54 = vpop.permute.xlu1 %2229  ;;  %v2228_v26 = vpop.permute.xlu0 %2227 }
 0x2a8   : > { %v5290_v28 = vadd.f32 %v2230_v54, %v2140_v53  ;;  %v5292_v51 = vadd.f32 %v2228_v26, %v2139_v15  ;;  %v2348_v53 = vmul.f32 %v2347_v2, %v4988_v14  ;;  %v2351_v15 = vmul.f32 %v2347_v2, %v5015_v25 }
 0x2ab   : > { %v2234_v61 = vpop.permute.xlu1 %2233  ;;  %v2232_v49 = vpop.permute.xlu0 %2231 }
 0x2ac   : > { %v5296_v37 = vadd.f32 %v2234_v61, %v2142_v11  ;;  %v5298_v27 = vadd.f32 %v2232_v49, %v2141_v30 }
 0x2af   : > { %v2255_v19 = vpop.permute.xlu1 %2254  ;;  %v2253_v12 = vpop.permute.xlu0 %2252 }
 0x2b0   : > { %v2265_v20 = vadd.f32 %v2255_v19, %v5220_v33  ;;  %v2264_v45 = vadd.f32 %v2253_v12, %v5222_v42  ;;  %v2358_v19 = vmul.f32 %v2356_v17, %v4962_v39 }
 0x2b2   : > { %v2353_v42 = vadd.f32 %v2349_v21, %v2265_v20  ;;  %v2352_v30 = vadd.f32 %v2348_v53, %v2264_v45  ;;  %v2359_v20 = vmul.f32 %v2356_v17, %v5027_v48  ;;  %v2365_v45 = vstv %s2876_s18 }
 0x2b3   : > { %v2259_v23 = vpop.permute.xlu1 %2258  ;;  %v2257_v16 = vpop.permute.xlu0 %2256 }
 0x2b4   : > { %v2267_v11 = vadd.f32 %v2259_v23, %v5253_v55  ;;  %v2266_v33 = vadd.f32 %v2257_v16, %v5255_v13 }
 0x2b6   : > { %v2355_v13 = vadd.f32 %v2351_v15, %v2267_v11  ;;  %v2354_v23 = vadd.f32 %v2350_v63, %v2266_v33 }
 0x2b7   : > { %v2280_v38 = vpop.permute.xlu1 %2279  ;;  %v2278_v35 = vpop.permute.xlu0 %2277 }
 0x2b8   : > { %v2290_v12 = vadd.f32 %v2280_v38, %v5264_v34  ;;  %v2289_v2 = vadd.f32 %v2278_v35, %v5266_v46  ;;  %v2360_v46 = vmul.f32 %v2356_v17, %v5015_v25 }
 0x2ba   : > { %v2362_v38 = vadd.f32 %v2358_v19, %v2290_v12 }
 0x2bb   : > { %v5300_v32 = vpop.permute.xlu1 %2283  ;;  %v5302_v10 = vpop.permute.xlu0 %2281 }
 0x2bf   : > { %v5304_v44 = vpop.permute.xlu1 %2304  ;;  %v5306_v22 = vpop.permute.xlu0 %2302 }
 0x2c3   : > { %v5308_v52 = vpop.permute.xlu1 %2308  ;;  %v5310_v41 = vpop.permute.xlu0 %2306 }
 0x2c7   : > { %v5312_v59 = vpop.permute.xlu1 %2329  ;;  %v5314_v43 = vpop.permute.xlu0 %2327 }
 0x2cb   : > { %v5316_v60 = vpop.permute.xlu1 %2333  ;;  %v5318_v6 = vpop.permute.xlu0 %2331 }
 0x2cf   : > { %v2395_v47 = vpop.permute.xlu1 %2394  ;;  %v2393_v58 = vpop.permute.xlu0 %2392 }
 0x2d0   : > { %v2405_v61 = vadd.f32 %v2395_v47, %v2353_v42  ;;  %v2404_v49 = vadd.f32 %v2393_v58, %v2352_v30 }
 0x2d3   : > { %v2399_v24 = vpop.permute.xlu1 %2398  ;;  %v2397_v9 = vpop.permute.xlu0 %2396 }
 0x2d4   : > { %v2407_v58 = vadd.f32 %v2399_v24, %v2355_v13  ;;  %v2406_v34 = vadd.f32 %v2397_v9, %v2354_v23  ;;  %v2292_v24 = vadd.f32 %v5300_v32, %v5272_v57  ;;  %v2291_v9 = vadd.f32 %v5302_v10, %v5274_v36 }
 0x2d5   : > { %v2367_v57 = vmul.f32 %v2365_v45, %v4962_v39  ;;  %v2366_v36 = vmul.f32 %v2365_v45, %v4988_v14 }
 0x2d7   : > { %v2420_v56 = vpop.permute.xlu1 %2419  ;;  %v2418_v4 = vpop.permute.xlu0 %2417 }
 0x2db   : > { %v5320_v29 = vpop.permute.xlu1 %2423  ;;  %v5322_v62 = vpop.permute.xlu0 %2421 }
 0x2df   : > { %v5324_v18 = vpop.permute.xlu1 %2444  ;;  %v5326_v50 = vpop.permute.xlu0 %2442 }
 0x2e3   : > { %v5328_v31 = vpop.permute.xlu1 %2448  ;;  %v5330_v7 = vpop.permute.xlu0 %2446 }
 0x2e7   : > { %v5333_v40 = vpop.permute.xlu1 %2469  ;;  %v5335_v3 = vpop.permute.xlu0 %2467 }
 0x2e8   : > { %5878 = vst [vmem:[#allocation58_spill] sm:$0xff] %v5335_v3  ;;  %v2357_v3 = vmul.f32 %v2356_v17, %v4988_v14  ;;  %v2314_v17 = vadd.f32 %v5306_v22, %v5280_v8  ;;  %v2368_v22 = vmul.f32 %v2365_v45, %v5027_v48 }
 0x2ea   : > { %v2361_v35 = vadd.f32 %v2357_v3, %v2289_v2  ;;  %v2315_v3 = vadd.f32 %v5304_v44, %v5278_v5  ;;  %v2369_v5 = vmul.f32 %v2365_v45, %v5015_v25  ;;  %v2370_v44 = vadd.f32 %v2366_v36, %v2314_v17 }
 0x2eb   : > { %v5344_v54 = vpop.permute.xlu1 %2473  ;;  %v5346_v26 = vpop.permute.xlu0 %2471 }
 0x2ec   : > { %5879 = vst [vmem:[#allocation77_spill] sm:$0xff] %v5344_v54  ;;  %v2429_v11 = vadd.f32 %v2418_v4, %v2361_v35  ;;  %v2363_v4 = vadd.f32 %v2359_v20, %v2291_v9  ;;  %v2371_v8 = vadd.f32 %v2367_v57, %v2315_v3  ;;  %v2454_v23 = vadd.f32 %v5326_v50, %v2370_v44 }
 0x2ed   : > { %v2342_v35 = vadd.f32 %v5316_v60, %v5296_v37 }
 0x2ee   : > { %v2455_v13 = vadd.f32 %v5324_v18, %v2371_v8 }
 0x2ef   : > { %v2495_v54 = vpop.permute.xlu1 %2494  ;;  %v2493_v55 = vpop.permute.xlu0 %2492 }
 0x2f0   : > { %v2505_v16 = vadd.f32 %v2495_v54, %v2405_v61  ;;  %v2504_v47 = vadd.f32 %v2493_v55, %v2404_v49  ;;  %v2430_v54 = vadd.f32 %v2420_v56, %v2362_v38  ;;  %v2364_v56 = vadd.f32 %v2360_v46, %v2292_v24 }
 0x2f1   : > { %v2431_v61 = vadd.f32 %v5322_v62, %v2363_v4  ;;  %v2374_v49 = vstv %s2903_s15  ;;  %v2316_v62 = vadd.f32 %v5310_v41, %v5286_v1 }
 0x2f2   : > { %2585 = vst.msk [vmem:[%s5357_s19 + $0x8] sm:$0xff] %vm2583_vm2, %v2505_v16  ;;  %2584 = vst.msk [vmem:[%s5357_s19] sm:$0xff] %vm2583_vm2, %v2504_v47  ;;  %v2432_v30 = vadd.f32 %v5320_v29, %v2364_v56  ;;  %v2317_v29 = vadd.f32 %v5308_v52, %v5284_v0  ;;  %v2340_v16 = vadd.f32 %v5312_v59, %v5290_v28 }
 0x2f3   : > { %v2499_v21 = vpop.permute.xlu1 %2498  ;;  %v2497_v53 = vpop.permute.xlu0 %2496  ;;  %v2339_v0 = vadd.f32 %v5314_v43, %v5292_v51  ;;  %v2376_v1 = vmul.f32 %v2374_v49, %v4962_v39  ;;  %v2375_v52 = vmul.f32 %v2374_v49, %v4988_v14  ;;  %v2378_v14 = vmul.f32 %v2374_v49, %v5015_v25 }
 0x2f4   : > { %v2507_v15 = vadd.f32 %v2499_v21, %v2407_v58  ;;  %v2506_v63 = vadd.f32 %v2497_v53, %v2406_v34  ;;  %v2373_v47 = vadd.f32 %v2369_v5, %v2317_v29  ;;  %v2372_v58 = vadd.f32 %v2368_v22, %v2316_v62  ;;  %v5880_v21 = vld [vmem:[#allocation58_spill] sm:$0xff] }
 0x2f5   : > { %v2380_v28 = vadd.f32 %v2376_v1, %v2340_v16  ;;  %v2379_v39 = vadd.f32 %v2375_v52, %v2339_v0  ;;  %v2377_v51 = vmul.f32 %v2374_v49, %v5027_v48  ;;  %v2382_v37 = vadd.f32 %v2378_v14, %v2342_v35 }
 0x2f6   : > { %2587 = vst.msk [vmem:[%s5357_s19 + $0x18] sm:$0xff] %vm2583_vm2, %v2507_v15  ;;  %2586 = vst.msk [vmem:[%s5357_s19 + $0x10] sm:$0xff] %vm2583_vm2, %v2506_v63  ;;  %v2457_v46 = vadd.f32 %v5328_v31, %v2373_v47  ;;  %v2456_v38 = vadd.f32 %v5330_v7, %v2372_v58  ;;  %v2341_v31 = vadd.f32 %v5318_v6, %v5298_v27  ;;  %v5881_v27 = vld [vmem:[#allocation77_spill] sm:$0xff] }
 0x2f7   : > { %v2520_v32 = vpop.permute.xlu1 %2519  ;;  %v2518_v10 = vpop.permute.xlu0 %2517  ;;  %v2480_v45 = vadd.f32 %v5333_v40, %v2380_v28  ;;  %v2479_v53 = vadd.f32 %v5880_v21, %v2379_v39  ;;  %v2482_v6 = vadd.f32 %v5881_v27, %v2382_v37 }
 0x2f8   : > { %v2530_v33 = vadd.f32 %v2520_v32, %v2430_v54  ;;  %v2529_v42 = vadd.f32 %v2518_v10, %v2429_v11  ;;  %v2381_v60 = vadd.f32 %v2377_v51, %v2341_v31 }
 0x2fa   : > { %2907 = vst.msk [vmem:[%s5357_s19 + $0x28] sm:$0xff] %vm2583_vm2, %v2530_v33  ;;  %2906 = vst.msk [vmem:[%s5357_s19 + $0x20] sm:$0xff] %vm2583_vm2, %v2529_v42  ;;  %v2481_v15 = vadd.f32 %v5346_v26, %v2381_v60 }
 0x2fb   : > { %v2524_v19 = vpop.permute.xlu1 %2523  ;;  %v2522_v12 = vpop.permute.xlu0 %2521 }
 0x2fc   : > { %v2532_v2 = vadd.f32 %v2524_v19, %v2432_v30  ;;  %v2531_v55 = vadd.f32 %v2522_v12, %v2431_v61 }
 0x2fe   : > { %2909 = vst.msk [vmem:[%s5357_s19 + $0x38] sm:$0xff] %vm2583_vm2, %v2532_v2  ;;  %2908 = vst.msk [vmem:[%s5357_s19 + $0x30] sm:$0xff] %vm2583_vm2, %v2531_v55 }
 0x2ff   : > { %v2545_v41 = vpop.permute.xlu1 %2544  ;;  %v2543_v18 = vpop.permute.xlu0 %2542 }
 0x300   : > { %v2555_v50 = vadd.f32 %v2545_v41, %v2455_v13  ;;  %v2554_v34 = vadd.f32 %v2543_v18, %v2454_v23 }
 0x302   : > { %2911 = vst.msk [vmem:[%s5357_s19 + $0x48] sm:$0xff] %vm2583_vm2, %v2555_v50  ;;  %2910 = vst.msk [vmem:[%s5357_s19 + $0x40] sm:$0xff] %vm2583_vm2, %v2554_v34 }
 0x305   : > { %v2549_v59 = vpop.permute.xlu1 %2548  ;;  %v2547_v43 = vpop.permute.xlu0 %2546 }
 0x306   : > { %v2557_v7 = vadd.f32 %v2549_v59, %v2457_v46  ;;  %v2556_v20 = vadd.f32 %v2547_v43, %v2456_v38 }
 0x308   : > { %2913 = vst.msk [vmem:[%s5357_s19 + $0x58] sm:$0xff] %vm2583_vm2, %v2557_v7  ;;  %2912 = vst.msk [vmem:[%s5357_s19 + $0x50] sm:$0xff] %vm2583_vm2, %v2556_v20 }
 0x309   : > { %v2570_v25 = vpop.permute.xlu1 %2569  ;;  %v2568_v48 = vpop.permute.xlu0 %2567 }
 0x30a   : > { %v2580_v24 = vadd.f32 %v2570_v25, %v2480_v45  ;;  %v2579_v9 = vadd.f32 %v2568_v48, %v2479_v53 }
 0x30c   : > { %2915 = vst.msk [vmem:[%s5357_s19 + $0x68] sm:$0xff] %vm2583_vm2, %v2580_v24  ;;  %2914 = vst.msk [vmem:[%s5357_s19 + $0x60] sm:$0xff] %vm2583_vm2, %v2579_v9 }
 0x30d   : > { %v2574_v40 = vpop.permute.xlu1 %2573  ;;  %v2572_v63 = vpop.permute.xlu0 %2571 }
 0x30e   : > { %v2582_v54 = vadd.f32 %v2574_v40, %v2482_v6  ;;  %v2581_v11 = vadd.f32 %v2572_v63, %v2481_v15 }
 0x310   : > { %2917 = vst.msk [vmem:[%s5357_s19 + $0x78] sm:$0xff] %vm2583_vm2, %v2582_v54  ;;  %2916 = vst.msk [vmem:[%s5357_s19 + $0x70] sm:$0xff] %vm2583_vm2, %v2581_v11 }
 0x311 PF: > { %s2647_s1 = sand.u32 1, %s3124_s12   ;;  %p5882_p12 = scmp.ne.s32.totalorder %s5495_s25, 0 }
 0x312   : > { %p5883_p2 = scmp.ge.s32.totalorder %s3144_s17, 2  ;;  %s2648_s21 = scalar_lea.sflag [#allocation5], %s2647_s1 }
 0x314   : > { %p2943_p1 = pnand %p5883_p2, %p5882_p12 }
 0x316   : > { %p2944_p9 = pneg %p2943_p1 }
 0x318   : > { %3119 = dma.done.wait (%p2944_p9), %s2648_s21, 1536  }
 0x319   : > { %3121 = vsyncadd (%p2944_p9), %s2648_s21, 4294965760  ;;  %s21_s17 = sadd.s32 1, %s3144_s17   ;;  %s5884_s12 = smov %s3128_s13 }
 0x31a   : > { %p18_p8 = scmp.ge.s32.totalorder %s21_s17, 4   ;;  %s5885_s13 = smov %s3132_s14 }
 0x31b   : > { %s5886_s14 = smov %s3283_s8  ;;  %s5887_s15 = smov %s3140_s16 }
 0x31c   : > { %s5888_s16 = smov %s5890_s5  ;;  %20 = sbr.rel (!%p18_p8) target bundleno = 9 (0x9), region = 104 }
 0x321   :  { %2665 = vsyncpa [#allocation4], 1 }
 0x322   :  { %2667 = vsyncpa [#allocation4 + $0x1], 1 }
 0x323   :  { %2668 = vsyncpa [#allocation5], 1 }
 0x324   :  { %2670 = vsyncpa [#allocation5 + $0x1], 1 }
 0x325   :  { %2671 = vsyncpa [#allocation6], 1 }
 0x326   :  { %2673 = vsyncpa [#allocation6 + $0x1], 1 }

</bundles_post_ra>
